<compile_context>
chip_gen: v6e
topology: v6e:2x2x1
jax: 0.10.0
libtpu: 0.0.40
codegen_flags: <defaults>
</compile_context>

<pallas_src>
import numpy as np
import jax
import jax.numpy as jnp
from jax.experimental import pallas as pl
from jax.experimental.pallas import tpu as pltpu


HP = 128  # padded hidden (lane) width


# ----------------------------------------------------------------------------
# Fused Pallas kernel: n_layers GNN cells + gather + attention read-out
# ----------------------------------------------------------------------------
def _make_srgnn_kernel(n_layers):
    def kernel(a_in_ref, a_out_ref, h0_ref, alias_oh_ref, ht_oh_ref, mask_ref,
               w_sq_ref, w_gate_ref, b_h_ref, b_g_ref,
               sh_ref, so_ref):
        f32 = jnp.float32
        TB, n, Hp = h0_ref.shape
        L = alias_oh_ref.shape[1]

        # ---- packed weights (constant index_map -> resident across grid) ----
        w_ein_t, w_eout_t = w_sq_ref[0], w_sq_ref[1]
        w1_t, w2_t, w3_t = w_sq_ref[2], w_sq_ref[3], w_sq_ref[4]
        wt_a_t, wt_b_t = w_sq_ref[5], w_sq_ref[6]
        w_ih_a_t, w_ih_b_t, w_hh_t = w_gate_ref[0], w_gate_ref[1], w_gate_ref[2]
        b_ein, b_eout = b_h_ref[0:1, :], b_h_ref[1:2, :]
        b_iah, b_oah = b_h_ref[2:3, :], b_h_ref[3:4, :]
        b1, b2 = b_h_ref[4:5, :], b_h_ref[5:6, :]
        b3, bt = b_h_ref[6:7, :], b_h_ref[7:8, :]
        b_ih, b_hh = b_g_ref[0:1, :], b_g_ref[1:2, :]

        a_in = a_in_ref[...]                     # (TB, n, n)
        a_out = a_out_ref[...]                   # (TB, n, n)
        hidden = h0_ref[...]                     # (TB, n, Hp)

        def gnn_cell(h):
            hf = h.reshape(TB * n, Hp)
            edge_in = jnp.dot(hf, w_ein_t, preferred_element_type=f32) + b_ein
            edge_out = jnp.dot(hf, w_eout_t, preferred_element_type=f32) + b_eout
            input_in = jnp.einsum('bij,bjh->bih', a_in,
                                  edge_in.reshape(TB, n, Hp),
                                  preferred_element_type=f32
                                  ).reshape(TB * n, Hp) + b_iah
            input_out = jnp.einsum('bij,bjh->bih', a_out,
                                   edge_out.reshape(TB, n, Hp),
                                   preferred_element_type=f32
                                   ).reshape(TB * n, Hp) + b_oah
            # concat([input_in, input_out]) @ W_ih.T  ==  two K-split matmuls
            gi = (jnp.dot(input_in, w_ih_a_t, preferred_element_type=f32)
                  + jnp.dot(input_out, w_ih_b_t, preferred_element_type=f32) + b_ih)
            gh = jnp.dot(hf, w_hh_t, preferred_element_type=f32) + b_hh
            # gate slices are at 128-aligned lane offsets (Hp = 128)
            i_r, i_i, i_n = gi[:, :Hp], gi[:, Hp:2 * Hp], gi[:, 2 * Hp:]
            h_r, h_i, h_n = gh[:, :Hp], gh[:, Hp:2 * Hp], gh[:, 2 * Hp:]
            resetgate = jax.nn.sigmoid(i_r + h_r)
            inputgate = jax.nn.sigmoid(i_i + h_i)
            newgate = jnp.tanh(i_n + resetgate * h_n)
            hy = newgate + inputgate * (hf - newgate)
            return hy.reshape(TB, n, Hp)

        for _ in range(n_layers):                # fused layer loop, VMEM-resident
            hidden = gnn_cell(hidden)

        # ---- alias gather as one-hot matmul (MXU) ----
        seq_hidden = jnp.einsum('bln,bnh->blh', alias_oh_ref[...], hidden,
                                preferred_element_type=f32)       # (TB, L, Hp)
        sh_ref[...] = seq_hidden

        ht = jnp.einsum('bln,bnh->blh', ht_oh_ref[...], hidden,
                        preferred_element_type=f32)[:, 0, :]      # (TB, Hp)

        # ---- attention read-out + linear_transform ----
        q1 = jnp.dot(ht, w1_t, preferred_element_type=f32) + b1              # (TB, Hp)
        shf = seq_hidden.reshape(TB * L, Hp)
        q2 = jnp.dot(shf, w2_t, preferred_element_type=f32) + b2             # (TB*L, Hp)
        sig = jax.nn.sigmoid(q1.reshape(TB, 1, Hp) + q2.reshape(TB, L, Hp))
        alp = jnp.dot(sig.reshape(TB * L, Hp), w3_t,
                      preferred_element_type=f32) + b3                       # (TB*L, Hp)
        prod = alp.reshape(TB, L, Hp) * seq_hidden                           # (TB, L, Hp)
        # masked sum over L as a (1, L) @ (L, Hp) matmul per session
        a = jnp.einsum('bol,blh->boh', mask_ref[...], prod,
                       preferred_element_type=f32)[:, 0, :]                  # (TB, Hp)
        # concat([a, ht]) @ W_transform.T  ==  two K-split matmuls
        so = (jnp.dot(a, wt_a_t, preferred_element_type=f32)
              + jnp.dot(ht, wt_b_t, preferred_element_type=f32) + bt)
        so_ref[...] = so.reshape(TB, 1, Hp)

    return kernel


# ----------------------------------------------------------------------------
# Host-side weight packing: pre-transpose, zero-pad H -> HP, pack into 4 slabs
# ----------------------------------------------------------------------------
def pack_params(params, Hp=HP):
    H = params["embedding"].shape[1]
    f32 = jnp.float32

    def pad_sq(w_t):                              # (H, H) -> (Hp, Hp)
        return jnp.zeros((Hp, Hp), f32).at[:H, :H].set(w_t)

    def pad_vec(b):                               # (H,) -> (Hp,)
        return jnp.zeros((Hp,), f32).at[:H].set(b)

    def pad_gate_w(w_t):                          # (H, 3H) -> (Hp, 3Hp), per-gate
        out = jnp.zeros((Hp, 3 * Hp), f32)
        for g in range(3):
            out = out.at[:H, g * Hp:g * Hp + H].set(w_t[:, g * H:(g + 1) * H])
        return out

    def pad_gate_b(b):                            # (3H,) -> (3Hp,), per-gate
        out = jnp.zeros((3 * Hp,), f32)
        for g in range(3):
            out = out.at[g * Hp:g * Hp + H].set(b[g * H:(g + 1) * H])
        return out

    w_sq = jnp.stack([
        pad_sq(params["w_edge_in"].T),
        pad_sq(params["w_edge_out"].T),
        pad_sq(params["w1"].T),
        pad_sq(params["w2"].T),
        pad_sq(params["w3"].T),
        pad_sq(params["w_transform"][:, :H].T),   # acts on `a`
        pad_sq(params["w_transform"][:, H:].T),   # acts on `ht`
    ])
    w_gate = jnp.stack([
        pad_gate_w(params["w_ih"][:, :H].T),      # acts on input_in
        pad_gate_w(params["w_ih"][:, H:].T),      # acts on input_out
        pad_gate_w(params["w_hh"].T),
    ])
    b_h = jnp.stack([
        pad_vec(params["b_edge_in"]), pad_vec(params["b_edge_out"]),
        pad_vec(params["b_iah"]), pad_vec(params["b_oah"]),
        pad_vec(params["b1"]), pad_vec(params["b2"]), pad_vec(params["b3"]),
        pad_vec(params["b_transform"]),
    ])
    b_g = jnp.stack([pad_gate_b(params["b_ih"]), pad_gate_b(params["b_hh"])])
    emb = jnp.zeros((params["embedding"].shape[0], Hp), f32
                    ).at[:, :H].set(params["embedding"])
    return {"w_sq": w_sq, "w_gate": w_gate, "b_h": b_h, "b_g": b_g,
            "emb": emb, "H": H}


# ----------------------------------------------------------------------------
# Host-side graph construction (exact replica of SRGNN._get_slice, numpy)
# ----------------------------------------------------------------------------
# TODO(synk): data-dependent per-session graph building has no clean Pallas
# equivalent; it stays on host exactly as in the PyTorch module.
def get_slice_np(seqs_np, n_items):
    mask = (seqs_np > 0)
    max_n_nodes = seqs_np.shape[1]
    alias_inputs, A_list, items_list = [], [], []
    max_alias_len = 0
    for seq in seqs_np:
        valid_idx = np.where(seq > 0)[0]
        if len(valid_idx) == 0:
            A_list.append(np.zeros((max_n_nodes, 2 * max_n_nodes), dtype=np.float32))
            items_list.append([0] * max_n_nodes)
            alias_inputs.append([0])
            continue
        node = np.unique(seq[valid_idx])
        node = np.clip(node, 0, n_items + 1)
        u_A = np.zeros((max_n_nodes, max_n_nodes), dtype=np.float32)
        for i in range(len(valid_idx) - 1):
            cur_item = seq[valid_idx[i]]
            nxt_item = seq[valid_idx[i + 1]]
            u_c = np.where(node == cur_item)[0]
            v_c = np.where(node == nxt_item)[0]
            if len(u_c) == 0 or len(v_c) == 0:
                continue
            u_A[u_c[0]][v_c[0]] = 1
        u_sum_in = np.sum(u_A, axis=0)
        u_sum_in[u_sum_in == 0] = 1
        u_A_in = u_A / u_sum_in
        u_sum_out = np.sum(u_A, axis=1)
        u_sum_out[u_sum_out == 0] = 1
        u_A_out = (u_A.T / u_sum_out).T
        u_A_ = np.concatenate([u_A_in, u_A_out], axis=0).T
        items_pad = list(node) + [0] * (max_n_nodes - len(node))
        alias = []
        for idx_ in valid_idx:
            cand = np.where(node == seq[idx_])[0]
            alias.append(int(cand[0]) if len(cand) > 0 else 0)
        max_alias_len = max(max_alias_len, len(alias))
        A_list.append(u_A_)
        items_list.append(items_pad)
        alias_inputs.append(alias)
    for i in range(len(alias_inputs)):
        if len(alias_inputs[i]) < max_alias_len:
            alias_inputs[i] += [0] * (max_alias_len - len(alias_inputs[i]))
    return (np.asarray(alias_inputs, dtype=np.int32),
            np.asarray(A_list, dtype=np.float32),
            np.asarray(items_list, dtype=np.int32),
            mask)


# ----------------------------------------------------------------------------
# Parameters (mirrors SRGNN._init_weights: U(-stdv, stdv) on every tensor)
# ----------------------------------------------------------------------------
def init_params(key, n_items, H):
    stdv = 1.0 / np.sqrt(H)
    shapes = {
        "embedding": (n_items + 2, H),
        "w_ih": (3 * H, 2 * H), "w_hh": (3 * H, H),
        "b_ih": (3 * H,), "b_hh": (3 * H,),
        "b_iah": (H,), "b_oah": (H,),
        "w_edge_in": (H, H), "b_edge_in": (H,),
        "w_edge_out": (H, H), "b_edge_out": (H,),
        # linear_edge_f exists in the PyTorch module but is unused in forward.
        "w1": (H, H), "b1": (H,),
        "w2": (H, H), "b2": (H,),
        "w3": (H, H), "b3": (H,),
        "w_transform": (H, 2 * H), "b_transform": (H,),
    }
    params = {}
    keys = jax.random.split(key, len(shapes))
    for k, (name, shp) in zip(keys, shapes.items()):
        params[name] = jax.random.uniform(k, shp, jnp.float32, -stdv, stdv)
    return params


# ----------------------------------------------------------------------------
# Full SRGNN forward
# ----------------------------------------------------------------------------
def srgnn_forward(params, seqs_np, lengths_np, n_items, n_layers, tb=None):
    H = params["embedding"].shape[1]
    packed = pack_params(params, HP)

    alias_np, A_np, items_np, mask_np = get_slice_np(seqs_np, n_items)
    B, L = seqs_np.shape
    n = items_np.shape[1]                        # n_nodes == seq_len

    # pad alias positions out to L (== PyTorch when any session is full length;
    # well-defined and non-crashing otherwise)
    if alias_np.shape[1] < L:
        alias_np = np.pad(alias_np, ((0, 0), (0, L - alias_np.shape[1])))

    # one-hot gather matrices so gather / last-item pick run as in-kernel matmuls
    alias_oh = np.zeros((B, L, n), np.float32)
    alias_oh[np.arange(B)[:, None], np.arange(L)[None, :], alias_np] = 1.0
    last_pos = np.maximum(np.asarray(lengths_np, np.int64) - 1, 0)
    last_node = alias_np[np.arange(B), last_pos]
    ht_oh = np.zeros((B, 1, n), np.float32)
    ht_oh[np.arange(B), 0, last_node] = 1.0
    mask_row = mask_np.astype(np.float32)[:, None, :]            # (B, 1, L)

    A_in = np.ascontiguousarray(A_np[:, :, :n])
    A_out = np.ascontiguousarray(A_np[:, :, n:])

    # sessions per grid step: fill MXU sublanes (TB*n rows), bounded by B
    if tb is None:
        tb = min(B, max(1, -(-256 // n)))
    B_pad = -(-B // tb) * tb

    def pad_b(x):
        if x.shape[0] == B_pad:
            return x
        pad = [(0, B_pad - x.shape[0])] + [(0, 0)] * (x.ndim - 1)
        return np.pad(x, pad)

    items = jnp.asarray(pad_b(items_np))
    hidden0 = packed["emb"][items]                               # (B_pad, n, HP)
    a_in = jnp.asarray(pad_b(A_in))
    a_out = jnp.asarray(pad_b(A_out))
    alias_oh_j = jnp.asarray(pad_b(alias_oh))
    ht_oh_j = jnp.asarray(pad_b(ht_oh))
    mask_j = jnp.asarray(pad_b(mask_row))

    kernel = _make_srgnn_kernel(n_layers)
    sh_pad, so_pad = pl.pallas_call(
        kernel,
        out_shape=[jax.ShapeDtypeStruct((B_pad, L, HP), jnp.float32),
                   jax.ShapeDtypeStruct((B_pad, 1, HP), jnp.float32)],
        grid=(B_pad // tb,),
        in_specs=[
            pl.BlockSpec((tb, n, n), lambda i: (i, 0, 0)),       # A_in
            pl.BlockSpec((tb, n, n), lambda i: (i, 0, 0)),       # A_out
            pl.BlockSpec((tb, n, HP), lambda i: (i, 0, 0)),      # hidden0
            pl.BlockSpec((tb, L, n), lambda i: (i, 0, 0)),       # alias one-hot
            pl.BlockSpec((tb, 1, n), lambda i: (i, 0, 0)),       # last-item one-hot
            pl.BlockSpec((tb, 1, L), lambda i: (i, 0, 0)),       # mask row
            pl.BlockSpec((7, HP, HP), lambda i: (0, 0, 0)),      # square weights
            pl.BlockSpec((3, HP, 3 * HP), lambda i: (0, 0, 0)),  # gate weights
            pl.BlockSpec((8, HP), lambda i: (0, 0)),             # H-width biases
            pl.BlockSpec((2, 3 * HP), lambda i: (0, 0)),         # gate biases
        ],
        out_specs=[
            pl.BlockSpec((tb, L, HP), lambda i: (i, 0, 0)),
            pl.BlockSpec((tb, 1, HP), lambda i: (i, 0, 0)),
        ],
        compiler_params=pltpu.CompilerParams(
            dimension_semantics=("parallel",)),
    )(a_in, a_out, hidden0, alias_oh_j, ht_oh_j, mask_j,
      packed["w_sq"], packed["w_gate"], packed["b_h"], packed["b_g"])

    seq_hidden = sh_pad[:B, :, :H]
    seq_output = so_pad[:B, 0, :H]
    return seq_hidden, seq_output


# ----------------------------------------------------------------------------
if __name__ == "__main__":
    B, seq_len, H = 2, 8, 32
    n_items, n_layers = 20, 2

    key = jax.random.PRNGKey(0)
    k_param, k_seq = jax.random.split(key)
    params = init_params(k_param, n_items, H)

    # Deterministic small batch: session 0 is full length, session 1 has 5 items.
    # np.array(...) makes a writable host copy of the device array.
    seqs = np.array(jax.random.randint(k_seq, (B, seq_len), 1, n_items + 1))
    lengths = np.array([seq_len, 5], dtype=np.int32)
    seqs[1, lengths[1]:] = 0

    seq_hidden, seq_output = srgnn_forward(params, seqs, lengths, n_items, n_layers)
    jax.block_until_ready(seq_hidden)
    jax.block_until_ready(seq_output)

    assert seq_hidden.shape == (B, seq_len, H)
    assert seq_output.shape == (B, H)
    assert bool(jnp.all(jnp.isfinite(seq_hidden))) and bool(jnp.all(jnp.isfinite(seq_output)))
    print("KERNEL_OK")
</pallas_src>

<mosaic_0001>
module attributes {stable_mosaic.version = 11 : i64} {
  func.func @kernel(%arg0: i32, %arg1: memref<2x8x8xf32, #tpu.memory_space<vmem>>, %arg2: memref<2x8x8xf32, #tpu.memory_space<vmem>>, %arg3: memref<2x8x128xf32, #tpu.memory_space<vmem>>, %arg4: memref<2x8x8xf32, #tpu.memory_space<vmem>>, %arg5: memref<2x1x8xf32, #tpu.memory_space<vmem>>, %arg6: memref<2x1x8xf32, #tpu.memory_space<vmem>>, %arg7: memref<7x128x128xf32, #tpu.memory_space<vmem>>, %arg8: memref<3x128x384xf32, #tpu.memory_space<vmem>>, %arg9: memref<8x128xf32, #tpu.memory_space<vmem>>, %arg10: memref<2x384xf32, #tpu.memory_space<vmem>>, %arg11: memref<2x8x128xf32, #tpu.memory_space<vmem>>, %arg12: memref<2x1x128xf32, #tpu.memory_space<vmem>>) attributes {dimension_semantics = [#tpu.dimension_semantics<parallel>], iteration_bounds = array<i64: 1>, scalar_prefetch = 0 : i64, scratch_operands = 0 : i64, tpu.core_type = #tpu.core_type<tc>, window_params = [{transform_indices = @transform_0, window_bounds = array<i64: 2, 8, 8>}, {transform_indices = @transform_1, window_bounds = array<i64: 2, 8, 8>}, {transform_indices = @transform_2, window_bounds = array<i64: 2, 8, 128>}, {transform_indices = @transform_3, window_bounds = array<i64: 2, 8, 8>}, {transform_indices = @transform_4, window_bounds = array<i64: 2, 1, 8>}, {transform_indices = @transform_5, window_bounds = array<i64: 2, 1, 8>}, {pipeline_mode = #tpu.pipeline_mode<synchronous>, transform_indices = @transform_6, window_bounds = array<i64: 7, 128, 128>}, {pipeline_mode = #tpu.pipeline_mode<synchronous>, transform_indices = @transform_7, window_bounds = array<i64: 3, 128, 384>}, {pipeline_mode = #tpu.pipeline_mode<synchronous>, transform_indices = @transform_8, window_bounds = array<i64: 8, 128>}, {pipeline_mode = #tpu.pipeline_mode<synchronous>, transform_indices = @transform_9, window_bounds = array<i64: 2, 384>}, {transform_indices = @transform_10, window_bounds = array<i64: 2, 8, 128>}, {transform_indices = @transform_11, window_bounds = array<i64: 2, 1, 128>}]} {
    %c0 = arith.constant 0 : index
    %c0_0 = arith.constant 0 : index
    %c0_1 = arith.constant 0 : index
    %0 = vector.load %arg7[%c0, %c0_0, %c0_1] : memref<7x128x128xf32, #tpu.memory_space<vmem>>, vector<1x128x128xf32>
    %1 = vector.shape_cast %0 : vector<1x128x128xf32> to vector<128x128xf32>
    %c1 = arith.constant 1 : index
    %c0_2 = arith.constant 0 : index
    %c0_3 = arith.constant 0 : index
    %2 = vector.load %arg7[%c1, %c0_2, %c0_3] : memref<7x128x128xf32, #tpu.memory_space<vmem>>, vector<1x128x128xf32>
    %3 = vector.shape_cast %2 : vector<1x128x128xf32> to vector<128x128xf32>
    %c2 = arith.constant 2 : index
    %c0_4 = arith.constant 0 : index
    %c0_5 = arith.constant 0 : index
    %4 = vector.load %arg7[%c2, %c0_4, %c0_5] : memref<7x128x128xf32, #tpu.memory_space<vmem>>, vector<1x128x128xf32>
    %5 = vector.shape_cast %4 : vector<1x128x128xf32> to vector<128x128xf32>
    %c3 = arith.constant 3 : index
    %c0_6 = arith.constant 0 : index
    %c0_7 = arith.constant 0 : index
    %6 = vector.load %arg7[%c3, %c0_6, %c0_7] : memref<7x128x128xf32, #tpu.memory_space<vmem>>, vector<1x128x128xf32>
    %7 = vector.shape_cast %6 : vector<1x128x128xf32> to vector<128x128xf32>
    %c4 = arith.constant 4 : index
    %c0_8 = arith.constant 0 : index
    %c0_9 = arith.constant 0 : index
    %8 = vector.load %arg7[%c4, %c0_8, %c0_9] : memref<7x128x128xf32, #tpu.memory_space<vmem>>, vector<1x128x128xf32>
    %9 = vector.shape_cast %8 : vector<1x128x128xf32> to vector<128x128xf32>
    %c5 = arith.constant 5 : index
    %c0_10 = arith.constant 0 : index
    %c0_11 = arith.constant 0 : index
    %10 = vector.load %arg7[%c5, %c0_10, %c0_11] : memref<7x128x128xf32, #tpu.memory_space<vmem>>, vector<1x128x128xf32>
    %11 = vector.shape_cast %10 : vector<1x128x128xf32> to vector<128x128xf32>
    %c6 = arith.constant 6 : index
    %c0_12 = arith.constant 0 : index
    %c0_13 = arith.constant 0 : index
    %12 = vector.load %arg7[%c6, %c0_12, %c0_13] : memref<7x128x128xf32, #tpu.memory_space<vmem>>, vector<1x128x128xf32>
    %13 = vector.shape_cast %12 : vector<1x128x128xf32> to vector<128x128xf32>
    %c0_14 = arith.constant 0 : index
    %c0_15 = arith.constant 0 : index
    %c0_16 = arith.constant 0 : index
    %14 = vector.load %arg8[%c0_14, %c0_15, %c0_16] : memref<3x128x384xf32, #tpu.memory_space<vmem>>, vector<1x128x384xf32>
    %15 = vector.shape_cast %14 : vector<1x128x384xf32> to vector<128x384xf32>
    %c1_17 = arith.constant 1 : index
    %c0_18 = arith.constant 0 : index
    %c0_19 = arith.constant 0 : index
    %16 = vector.load %arg8[%c1_17, %c0_18, %c0_19] : memref<3x128x384xf32, #tpu.memory_space<vmem>>, vector<1x128x384xf32>
    %17 = vector.shape_cast %16 : vector<1x128x384xf32> to vector<128x384xf32>
    %c2_20 = arith.constant 2 : index
    %c0_21 = arith.constant 0 : index
    %c0_22 = arith.constant 0 : index
    %18 = vector.load %arg8[%c2_20, %c0_21, %c0_22] : memref<3x128x384xf32, #tpu.memory_space<vmem>>, vector<1x128x384xf32>
    %19 = vector.shape_cast %18 : vector<1x128x384xf32> to vector<128x384xf32>
    %c0_23 = arith.constant 0 : index
    %c0_24 = arith.constant 0 : index
    %20 = vector.load %arg9[%c0_23, %c0_24] : memref<8x128xf32, #tpu.memory_space<vmem>>, vector<1x128xf32>
    %c1_25 = arith.constant 1 : index
    %c0_26 = arith.constant 0 : index
    %21 = vector.load %arg9[%c1_25, %c0_26] : memref<8x128xf32, #tpu.memory_space<vmem>>, vector<1x128xf32>
    %c2_27 = arith.constant 2 : index
    %c0_28 = arith.constant 0 : index
    %22 = vector.load %arg9[%c2_27, %c0_28] : memref<8x128xf32, #tpu.memory_space<vmem>>, vector<1x128xf32>
    %c3_29 = arith.constant 3 : index
    %c0_30 = arith.constant 0 : index
    %23 = vector.load %arg9[%c3_29, %c0_30] : memref<8x128xf32, #tpu.memory_space<vmem>>, vector<1x128xf32>
    %c4_31 = arith.constant 4 : index
    %c0_32 = arith.constant 0 : index
    %24 = vector.load %arg9[%c4_31, %c0_32] : memref<8x128xf32, #tpu.memory_space<vmem>>, vector<1x128xf32>
    %c5_33 = arith.constant 5 : index
    %c0_34 = arith.constant 0 : index
    %25 = vector.load %arg9[%c5_33, %c0_34] : memref<8x128xf32, #tpu.memory_space<vmem>>, vector<1x128xf32>
    %c6_35 = arith.constant 6 : index
    %c0_36 = arith.constant 0 : index
    %26 = vector.load %arg9[%c6_35, %c0_36] : memref<8x128xf32, #tpu.memory_space<vmem>>, vector<1x128xf32>
    %c7 = arith.constant 7 : index
    %c0_37 = arith.constant 0 : index
    %27 = vector.load %arg9[%c7, %c0_37] : memref<8x128xf32, #tpu.memory_space<vmem>>, vector<1x128xf32>
    %c0_38 = arith.constant 0 : index
    %c0_39 = arith.constant 0 : index
    %28 = vector.load %arg10[%c0_38, %c0_39] : memref<2x384xf32, #tpu.memory_space<vmem>>, vector<1x384xf32>
    %c1_40 = arith.constant 1 : index
    %c0_41 = arith.constant 0 : index
    %29 = vector.load %arg10[%c1_40, %c0_41] : memref<2x384xf32, #tpu.memory_space<vmem>>, vector<1x384xf32>
    %c0_42 = arith.constant 0 : index
    %c0_43 = arith.constant 0 : index
    %c0_44 = arith.constant 0 : index
    %30 = vector.load %arg1[%c0_42, %c0_43, %c0_44] : memref<2x8x8xf32, #tpu.memory_space<vmem>>, vector<2x8x8xf32>
    %c0_45 = arith.constant 0 : index
    %c0_46 = arith.constant 0 : index
    %c0_47 = arith.constant 0 : index
    %31 = vector.load %arg2[%c0_45, %c0_46, %c0_47] : memref<2x8x8xf32, #tpu.memory_space<vmem>>, vector<2x8x8xf32>
    %c0_48 = arith.constant 0 : index
    %c0_49 = arith.constant 0 : index
    %c0_50 = arith.constant 0 : index
    %32 = vector.load %arg3[%c0_48, %c0_49, %c0_50] : memref<2x8x128xf32, #tpu.memory_space<vmem>>, vector<2x8x128xf32>
    %33 = vector.shape_cast %32 : vector<2x8x128xf32> to vector<16x128xf32>
    %cst = arith.constant dense<0.000000e+00> : vector<16x128xf32>
    %34 = tpu.matmul %33, %1, %cst {dimension_numbers = #tpu.dot_dimension_numbers<[1], [0], [0], [1], [0, 0, 1, 1], [], []>} : vector<16x128xf32>, vector<128x128xf32>, vector<16x128xf32> -> vector<16x128xf32>
    %35 = vector.broadcast %20 : vector<1x128xf32> to vector<16x128xf32>
    %36 = arith.addf %34, %35 : vector<16x128xf32>
    %cst_51 = arith.constant dense<0.000000e+00> : vector<16x128xf32>
    %37 = tpu.matmul %33, %3, %cst_51 {dimension_numbers = #tpu.dot_dimension_numbers<[1], [0], [0], [1], [0, 0, 1, 1], [], []>} : vector<16x128xf32>, vector<128x128xf32>, vector<16x128xf32> -> vector<16x128xf32>
    %38 = vector.broadcast %21 : vector<1x128xf32> to vector<16x128xf32>
    %39 = arith.addf %37, %38 : vector<16x128xf32>
    %40 = vector.shape_cast %36 : vector<16x128xf32> to vector<2x8x128xf32>
    "tpu.trace_start"() <{level = 10 : i32, message = "bij,bjh->bih"}> : () -> ()
    %cst_52 = arith.constant dense<0.000000e+00> : vector<2x8x128xf32>
    %41 = tpu.matmul %30, %40, %cst_52 {dimension_numbers = #tpu.dot_dimension_numbers<[2], [1], [1], [2], [0, 0, 0, 1, 1, 2], [0], [0]>} : vector<2x8x8xf32>, vector<2x8x128xf32>, vector<2x8x128xf32> -> vector<2x8x128xf32>
    "tpu.trace_stop"() : () -> ()
    %42 = vector.shape_cast %41 : vector<2x8x128xf32> to vector<16x128xf32>
    %43 = vector.broadcast %22 : vector<1x128xf32> to vector<16x128xf32>
    %44 = arith.addf %42, %43 : vector<16x128xf32>
    %45 = vector.shape_cast %39 : vector<16x128xf32> to vector<2x8x128xf32>
    "tpu.trace_start"() <{level = 10 : i32, message = "bij,bjh->bih"}> : () -> ()
    %cst_53 = arith.constant dense<0.000000e+00> : vector<2x8x128xf32>
    %46 = tpu.matmul %31, %45, %cst_53 {dimension_numbers = #tpu.dot_dimension_numbers<[2], [1], [1], [2], [0, 0, 0, 1, 1, 2], [0], [0]>} : vector<2x8x8xf32>, vector<2x8x128xf32>, vector<2x8x128xf32> -> vector<2x8x128xf32>
    "tpu.trace_stop"() : () -> ()
    %47 = vector.shape_cast %46 : vector<2x8x128xf32> to vector<16x128xf32>
    %48 = vector.broadcast %23 : vector<1x128xf32> to vector<16x128xf32>
    %49 = arith.addf %47, %48 : vector<16x128xf32>
    %cst_54 = arith.constant dense<0.000000e+00> : vector<16x384xf32>
    %50 = tpu.matmul %44, %15, %cst_54 {dimension_numbers = #tpu.dot_dimension_numbers<[1], [0], [0], [1], [0, 0, 1, 1], [], []>} : vector<16x128xf32>, vector<128x384xf32>, vector<16x384xf32> -> vector<16x384xf32>
    %cst_55 = arith.constant dense<0.000000e+00> : vector<16x384xf32>
    %51 = tpu.matmul %49, %17, %cst_55 {dimension_numbers = #tpu.dot_dimension_numbers<[1], [0], [0], [1], [0, 0, 1, 1], [], []>} : vector<16x128xf32>, vector<128x384xf32>, vector<16x384xf32> -> vector<16x384xf32>
    %52 = arith.addf %50, %51 : vector<16x384xf32>
    %53 = vector.broadcast %28 : vector<1x384xf32> to vector<16x384xf32>
    %54 = arith.addf %52, %53 : vector<16x384xf32>
    %cst_56 = arith.constant dense<0.000000e+00> : vector<16x384xf32>
    %55 = tpu.matmul %33, %19, %cst_56 {dimension_numbers = #tpu.dot_dimension_numbers<[1], [0], [0], [1], [0, 0, 1, 1], [], []>} : vector<16x128xf32>, vector<128x384xf32>, vector<16x384xf32> -> vector<16x384xf32>
    %56 = vector.broadcast %29 : vector<1x384xf32> to vector<16x384xf32>
    %57 = arith.addf %55, %56 : vector<16x384xf32>
    %58 = vector.extract_strided_slice %54 {offsets = [0, 0], sizes = [16, 128], strides = [1, 1]} : vector<16x384xf32> to vector<16x128xf32>
    %59 = vector.extract_strided_slice %54 {offsets = [0, 128], sizes = [16, 128], strides = [1, 1]} : vector<16x384xf32> to vector<16x128xf32>
    %60 = vector.extract_strided_slice %54 {offsets = [0, 256], sizes = [16, 128], strides = [1, 1]} : vector<16x384xf32> to vector<16x128xf32>
    %61 = vector.extract_strided_slice %57 {offsets = [0, 0], sizes = [16, 128], strides = [1, 1]} : vector<16x384xf32> to vector<16x128xf32>
    %62 = vector.extract_strided_slice %57 {offsets = [0, 128], sizes = [16, 128], strides = [1, 1]} : vector<16x384xf32> to vector<16x128xf32>
    %63 = vector.extract_strided_slice %57 {offsets = [0, 256], sizes = [16, 128], strides = [1, 1]} : vector<16x384xf32> to vector<16x128xf32>
    %64 = arith.addf %58, %61 : vector<16x128xf32>
    %65 = arith.negf %64 : vector<16x128xf32>
    %66 = math.exp %65 : vector<16x128xf32>
    %cst_57 = arith.constant 1.000000e+00 : f32
    %67 = vector.broadcast %cst_57 : f32 to vector<16x128xf32>
    %68 = arith.addf %67, %66 : vector<16x128xf32>
    %69 = arith.divf %67, %68 : vector<16x128xf32>
    %70 = arith.addf %59, %62 : vector<16x128xf32>
    %71 = arith.negf %70 : vector<16x128xf32>
    %72 = math.exp %71 : vector<16x128xf32>
    %cst_58 = arith.constant 1.000000e+00 : f32
    %73 = vector.broadcast %cst_58 : f32 to vector<16x128xf32>
    %74 = arith.addf %73, %72 : vector<16x128xf32>
    %75 = arith.divf %73, %74 : vector<16x128xf32>
    %76 = arith.mulf %69, %63 : vector<16x128xf32>
    %77 = arith.addf %60, %76 : vector<16x128xf32>
    %78 = math.tanh %77 : vector<16x128xf32>
    %79 = arith.subf %33, %78 : vector<16x128xf32>
    %80 = arith.mulf %75, %79 : vector<16x128xf32>
    %81 = arith.addf %78, %80 : vector<16x128xf32>
    %82 = vector.shape_cast %81 : vector<16x128xf32> to vector<2x8x128xf32>
    %83 = vector.shape_cast %82 : vector<2x8x128xf32> to vector<16x128xf32>
    %cst_59 = arith.constant dense<0.000000e+00> : vector<16x128xf32>
    %84 = tpu.matmul %83, %1, %cst_59 {dimension_numbers = #tpu.dot_dimension_numbers<[1], [0], [0], [1], [0, 0, 1, 1], [], []>} : vector<16x128xf32>, vector<128x128xf32>, vector<16x128xf32> -> vector<16x128xf32>
    %85 = vector.broadcast %20 : vector<1x128xf32> to vector<16x128xf32>
    %86 = arith.addf %84, %85 : vector<16x128xf32>
    %cst_60 = arith.constant dense<0.000000e+00> : vector<16x128xf32>
    %87 = tpu.matmul %83, %3, %cst_60 {dimension_numbers = #tpu.dot_dimension_numbers<[1], [0], [0], [1], [0, 0, 1, 1], [], []>} : vector<16x128xf32>, vector<128x128xf32>, vector<16x128xf32> -> vector<16x128xf32>
    %88 = vector.broadcast %21 : vector<1x128xf32> to vector<16x128xf32>
    %89 = arith.addf %87, %88 : vector<16x128xf32>
    %90 = vector.shape_cast %86 : vector<16x128xf32> to vector<2x8x128xf32>
    "tpu.trace_start"() <{level = 10 : i32, message = "bij,bjh->bih"}> : () -> ()
    %cst_61 = arith.constant dense<0.000000e+00> : vector<2x8x128xf32>
    %91 = tpu.matmul %30, %90, %cst_61 {dimension_numbers = #tpu.dot_dimension_numbers<[2], [1], [1], [2], [0, 0, 0, 1, 1, 2], [0], [0]>} : vector<2x8x8xf32>, vector<2x8x128xf32>, vector<2x8x128xf32> -> vector<2x8x128xf32>
    "tpu.trace_stop"() : () -> ()
    %92 = vector.shape_cast %91 : vector<2x8x128xf32> to vector<16x128xf32>
    %93 = vector.broadcast %22 : vector<1x128xf32> to vector<16x128xf32>
    %94 = arith.addf %92, %93 : vector<16x128xf32>
    %95 = vector.shape_cast %89 : vector<16x128xf32> to vector<2x8x128xf32>
    "tpu.trace_start"() <{level = 10 : i32, message = "bij,bjh->bih"}> : () -> ()
    %cst_62 = arith.constant dense<0.000000e+00> : vector<2x8x128xf32>
    %96 = tpu.matmul %31, %95, %cst_62 {dimension_numbers = #tpu.dot_dimension_numbers<[2], [1], [1], [2], [0, 0, 0, 1, 1, 2], [0], [0]>} : vector<2x8x8xf32>, vector<2x8x128xf32>, vector<2x8x128xf32> -> vector<2x8x128xf32>
    "tpu.trace_stop"() : () -> ()
    %97 = vector.shape_cast %96 : vector<2x8x128xf32> to vector<16x128xf32>
    %98 = vector.broadcast %23 : vector<1x128xf32> to vector<16x128xf32>
    %99 = arith.addf %97, %98 : vector<16x128xf32>
    %cst_63 = arith.constant dense<0.000000e+00> : vector<16x384xf32>
    %100 = tpu.matmul %94, %15, %cst_63 {dimension_numbers = #tpu.dot_dimension_numbers<[1], [0], [0], [1], [0, 0, 1, 1], [], []>} : vector<16x128xf32>, vector<128x384xf32>, vector<16x384xf32> -> vector<16x384xf32>
    %cst_64 = arith.constant dense<0.000000e+00> : vector<16x384xf32>
    %101 = tpu.matmul %99, %17, %cst_64 {dimension_numbers = #tpu.dot_dimension_numbers<[1], [0], [0], [1], [0, 0, 1, 1], [], []>} : vector<16x128xf32>, vector<128x384xf32>, vector<16x384xf32> -> vector<16x384xf32>
    %102 = arith.addf %100, %101 : vector<16x384xf32>
    %103 = vector.broadcast %28 : vector<1x384xf32> to vector<16x384xf32>
    %104 = arith.addf %102, %103 : vector<16x384xf32>
    %cst_65 = arith.constant dense<0.000000e+00> : vector<16x384xf32>
    %105 = tpu.matmul %83, %19, %cst_65 {dimension_numbers = #tpu.dot_dimension_numbers<[1], [0], [0], [1], [0, 0, 1, 1], [], []>} : vector<16x128xf32>, vector<128x384xf32>, vector<16x384xf32> -> vector<16x384xf32>
    %106 = vector.broadcast %29 : vector<1x384xf32> to vector<16x384xf32>
    %107 = arith.addf %105, %106 : vector<16x384xf32>
    %108 = vector.extract_strided_slice %104 {offsets = [0, 0], sizes = [16, 128], strides = [1, 1]} : vector<16x384xf32> to vector<16x128xf32>
    %109 = vector.extract_strided_slice %104 {offsets = [0, 128], sizes = [16, 128], strides = [1, 1]} : vector<16x384xf32> to vector<16x128xf32>
    %110 = vector.extract_strided_slice %104 {offsets = [0, 256], sizes = [16, 128], strides = [1, 1]} : vector<16x384xf32> to vector<16x128xf32>
    %111 = vector.extract_strided_slice %107 {offsets = [0, 0], sizes = [16, 128], strides = [1, 1]} : vector<16x384xf32> to vector<16x128xf32>
    %112 = vector.extract_strided_slice %107 {offsets = [0, 128], sizes = [16, 128], strides = [1, 1]} : vector<16x384xf32> to vector<16x128xf32>
    %113 = vector.extract_strided_slice %107 {offsets = [0, 256], sizes = [16, 128], strides = [1, 1]} : vector<16x384xf32> to vector<16x128xf32>
    %114 = arith.addf %108, %111 : vector<16x128xf32>
    %115 = arith.negf %114 : vector<16x128xf32>
    %116 = math.exp %115 : vector<16x128xf32>
    %cst_66 = arith.constant 1.000000e+00 : f32
    %117 = vector.broadcast %cst_66 : f32 to vector<16x128xf32>
    %118 = arith.addf %117, %116 : vector<16x128xf32>
    %119 = arith.divf %117, %118 : vector<16x128xf32>
    %120 = arith.addf %109, %112 : vector<16x128xf32>
    %121 = arith.negf %120 : vector<16x128xf32>
    %122 = math.exp %121 : vector<16x128xf32>
    %cst_67 = arith.constant 1.000000e+00 : f32
    %123 = vector.broadcast %cst_67 : f32 to vector<16x128xf32>
    %124 = arith.addf %123, %122 : vector<16x128xf32>
    %125 = arith.divf %123, %124 : vector<16x128xf32>
    %126 = arith.mulf %119, %113 : vector<16x128xf32>
    %127 = arith.addf %110, %126 : vector<16x128xf32>
    %128 = math.tanh %127 : vector<16x128xf32>
    %129 = arith.subf %83, %128 : vector<16x128xf32>
    %130 = arith.mulf %125, %129 : vector<16x128xf32>
    %131 = arith.addf %128, %130 : vector<16x128xf32>
    %132 = vector.shape_cast %131 : vector<16x128xf32> to vector<2x8x128xf32>
    %c0_68 = arith.constant 0 : index
    %c0_69 = arith.constant 0 : index
    %c0_70 = arith.constant 0 : index
    %133 = vector.load %arg4[%c0_68, %c0_69, %c0_70] : memref<2x8x8xf32, #tpu.memory_space<vmem>>, vector<2x8x8xf32>
    "tpu.trace_start"() <{level = 10 : i32, message = "bln,bnh->blh"}> : () -> ()
    %cst_71 = arith.constant dense<0.000000e+00> : vector<2x8x128xf32>
    %134 = tpu.matmul %133, %132, %cst_71 {dimension_numbers = #tpu.dot_dimension_numbers<[2], [1], [1], [2], [0, 0, 0, 1, 1, 2], [0], [0]>} : vector<2x8x8xf32>, vector<2x8x128xf32>, vector<2x8x128xf32> -> vector<2x8x128xf32>
    "tpu.trace_stop"() : () -> ()
    %c0_72 = arith.constant 0 : index
    %c0_73 = arith.constant 0 : index
    %c0_74 = arith.constant 0 : index
    %135 = vector.load %arg11[%c0_72, %c0_73, %c0_74] : memref<2x8x128xf32, #tpu.memory_space<vmem>>, vector<2x8x128xf32>
    tpu.vector_store %arg11[%c0_72, %c0_73, %c0_74], %134 {strides = array<i32>} : memref<2x8x128xf32, #tpu.memory_space<vmem>>, vector<2x8x128xf32>,
    %c0_75 = arith.constant 0 : index
    %c0_76 = arith.constant 0 : index
    %c0_77 = arith.constant 0 : index
    %136 = vector.load %arg5[%c0_75, %c0_76, %c0_77] : memref<2x1x8xf32, #tpu.memory_space<vmem>>, vector<2x1x8xf32>
    "tpu.trace_start"() <{level = 10 : i32, message = "bln,bnh->blh"}> : () -> ()
    %cst_78 = arith.constant dense<0.000000e+00> : vector<2x1x128xf32>
    %137 = tpu.matmul %136, %132, %cst_78 {dimension_numbers = #tpu.dot_dimension_numbers<[2], [1], [1], [2], [0, 0, 0, 1, 1, 2], [0], [0]>} : vector<2x1x8xf32>, vector<2x8x128xf32>, vector<2x1x128xf32> -> vector<2x1x128xf32>
    "tpu.trace_stop"() : () -> ()
    %138 = vector.shape_cast %137 : vector<2x1x128xf32> to vector<2x128xf32>
    %cst_79 = arith.constant dense<0.000000e+00> : vector<2x128xf32>
    %139 = tpu.matmul %138, %5, %cst_79 {dimension_numbers = #tpu.dot_dimension_numbers<[1], [0], [0], [1], [0, 0, 1, 1], [], []>} : vector<2x128xf32>, vector<128x128xf32>, vector<2x128xf32> -> vector<2x128xf32>
    %140 = vector.broadcast %24 : vector<1x128xf32> to vector<2x128xf32>
    %141 = arith.addf %139, %140 : vector<2x128xf32>
    %142 = vector.shape_cast %134 : vector<2x8x128xf32> to vector<16x128xf32>
    %cst_80 = arith.constant dense<0.000000e+00> : vector<16x128xf32>
    %143 = tpu.matmul %142, %7, %cst_80 {dimension_numbers = #tpu.dot_dimension_numbers<[1], [0], [0], [1], [0, 0, 1, 1], [], []>} : vector<16x128xf32>, vector<128x128xf32>, vector<16x128xf32> -> vector<16x128xf32>
    %144 = vector.broadcast %25 : vector<1x128xf32> to vector<16x128xf32>
    %145 = arith.addf %143, %144 : vector<16x128xf32>
    %146 = vector.shape_cast %141 : vector<2x128xf32> to vector<2x1x128xf32>
    %147 = vector.shape_cast %145 : vector<16x128xf32> to vector<2x8x128xf32>
    %148 = vector.broadcast %146 : vector<2x1x128xf32> to vector<2x8x128xf32>
    %149 = arith.addf %148, %147 : vector<2x8x128xf32>
    %150 = arith.negf %149 : vector<2x8x128xf32>
    %151 = math.exp %150 : vector<2x8x128xf32>
    %cst_81 = arith.constant 1.000000e+00 : f32
    %152 = vector.broadcast %cst_81 : f32 to vector<2x8x128xf32>
    %153 = arith.addf %152, %151 : vector<2x8x128xf32>
    %154 = arith.divf %152, %153 : vector<2x8x128xf32>
    %155 = vector.shape_cast %154 : vector<2x8x128xf32> to vector<16x128xf32>
    %cst_82 = arith.constant dense<0.000000e+00> : vector<16x128xf32>
    %156 = tpu.matmul %155, %9, %cst_82 {dimension_numbers = #tpu.dot_dimension_numbers<[1], [0], [0], [1], [0, 0, 1, 1], [], []>} : vector<16x128xf32>, vector<128x128xf32>, vector<16x128xf32> -> vector<16x128xf32>
    %157 = vector.broadcast %26 : vector<1x128xf32> to vector<16x128xf32>
    %158 = arith.addf %156, %157 : vector<16x128xf32>
    %159 = vector.shape_cast %158 : vector<16x128xf32> to vector<2x8x128xf32>
    %160 = arith.mulf %159, %134 : vector<2x8x128xf32>
    %c0_83 = arith.constant 0 : index
    %c0_84 = arith.constant 0 : index
    %c0_85 = arith.constant 0 : index
    %161 = vector.load %arg6[%c0_83, %c0_84, %c0_85] : memref<2x1x8xf32, #tpu.memory_space<vmem>>, vector<2x1x8xf32>
    "tpu.trace_start"() <{level = 10 : i32, message = "bol,blh->boh"}> : () -> ()
    %cst_86 = arith.constant dense<0.000000e+00> : vector<2x1x128xf32>
    %162 = tpu.matmul %161, %160, %cst_86 {dimension_numbers = #tpu.dot_dimension_numbers<[2], [1], [1], [2], [0, 0, 0, 1, 1, 2], [0], [0]>} : vector<2x1x8xf32>, vector<2x8x128xf32>, vector<2x1x128xf32> -> vector<2x1x128xf32>
    "tpu.trace_stop"() : () -> ()
    %163 = vector.shape_cast %162 : vector<2x1x128xf32> to vector<2x128xf32>
    %cst_87 = arith.constant dense<0.000000e+00> : vector<2x128xf32>
    %164 = tpu.matmul %163, %11, %cst_87 {dimension_numbers = #tpu.dot_dimension_numbers<[1], [0], [0], [1], [0, 0, 1, 1], [], []>} : vector<2x128xf32>, vector<128x128xf32>, vector<2x128xf32> -> vector<2x128xf32>
    %cst_88 = arith.constant dense<0.000000e+00> : vector<2x128xf32>
    %165 = tpu.matmul %138, %13, %cst_88 {dimension_numbers = #tpu.dot_dimension_numbers<[1], [0], [0], [1], [0, 0, 1, 1], [], []>} : vector<2x128xf32>, vector<128x128xf32>, vector<2x128xf32> -> vector<2x128xf32>
    %166 = arith.addf %164, %165 : vector<2x128xf32>
    %167 = vector.broadcast %27 : vector<1x128xf32> to vector<2x128xf32>
    %168 = arith.addf %166, %167 : vector<2x128xf32>
    %169 = vector.shape_cast %168 : vector<2x128xf32> to vector<2x1x128xf32>
    %c0_89 = arith.constant 0 : index
    %c0_90 = arith.constant 0 : index
    %c0_91 = arith.constant 0 : index
    %170 = vector.load %arg12[%c0_89, %c0_90, %c0_91] : memref<2x1x128xf32, #tpu.memory_space<vmem>>, vector<2x1x128xf32>
    tpu.vector_store %arg12[%c0_89, %c0_90, %c0_91], %169 {strides = array<i32>} : memref<2x1x128xf32, #tpu.memory_space<vmem>>, vector<2x1x128xf32>,
    return
  }
  func.func @transform_0(%arg0: i32) -> (i32, i32, i32) {
    %c0_i32 = arith.constant 0 : i32
    %c0_i32_0 = arith.constant 0 : i32
    %c0_i32_1 = arith.constant 0 : i32
    return %arg0, %c0_i32, %c0_i32_0 : i32, i32, i32
  }
  func.func @transform_1(%arg0: i32) -> (i32, i32, i32) {
    %c0_i32 = arith.constant 0 : i32
    %c0_i32_0 = arith.constant 0 : i32
    %c0_i32_1 = arith.constant 0 : i32
    return %arg0, %c0_i32, %c0_i32_0 : i32, i32, i32
  }
  func.func @transform_2(%arg0: i32) -> (i32, i32, i32) {
    %c0_i32 = arith.constant 0 : i32
    %c0_i32_0 = arith.constant 0 : i32
    %c0_i32_1 = arith.constant 0 : i32
    return %arg0, %c0_i32, %c0_i32_0 : i32, i32, i32
  }
  func.func @transform_3(%arg0: i32) -> (i32, i32, i32) {
    %c0_i32 = arith.constant 0 : i32
    %c0_i32_0 = arith.constant 0 : i32
    %c0_i32_1 = arith.constant 0 : i32
    return %arg0, %c0_i32, %c0_i32_0 : i32, i32, i32
  }
  func.func @transform_4(%arg0: i32) -> (i32, i32, i32) {
    %c0_i32 = arith.constant 0 : i32
    %c0_i32_0 = arith.constant 0 : i32
    %c0_i32_1 = arith.constant 0 : i32
    return %arg0, %c0_i32, %c0_i32_0 : i32, i32, i32
  }
  func.func @transform_5(%arg0: i32) -> (i32, i32, i32) {
    %c0_i32 = arith.constant 0 : i32
    %c0_i32_0 = arith.constant 0 : i32
    %c0_i32_1 = arith.constant 0 : i32
    return %arg0, %c0_i32, %c0_i32_0 : i32, i32, i32
  }
  func.func @transform_6(%arg0: i32) -> (i32, i32, i32) {
    %c0_i32 = arith.constant 0 : i32
    %c0_i32_0 = arith.constant 0 : i32
    %c0_i32_1 = arith.constant 0 : i32
    %c0_i32_2 = arith.constant 0 : i32
    return %c0_i32, %c0_i32_0, %c0_i32_1 : i32, i32, i32
  }
  func.func @transform_7(%arg0: i32) -> (i32, i32, i32) {
    %c0_i32 = arith.constant 0 : i32
    %c0_i32_0 = arith.constant 0 : i32
    %c0_i32_1 = arith.constant 0 : i32
    %c0_i32_2 = arith.constant 0 : i32
    return %c0_i32, %c0_i32_0, %c0_i32_1 : i32, i32, i32
  }
  func.func @transform_8(%arg0: i32) -> (i32, i32) {
    %c0_i32 = arith.constant 0 : i32
    %c0_i32_0 = arith.constant 0 : i32
    %c0_i32_1 = arith.constant 0 : i32
    return %c0_i32, %c0_i32_0 : i32, i32
  }
  func.func @transform_9(%arg0: i32) -> (i32, i32) {
    %c0_i32 = arith.constant 0 : i32
    %c0_i32_0 = arith.constant 0 : i32
    %c0_i32_1 = arith.constant 0 : i32
    return %c0_i32, %c0_i32_0 : i32, i32
  }
  func.func @transform_10(%arg0: i32) -> (i32, i32, i32) {
    %c0_i32 = arith.constant 0 : i32
    %c0_i32_0 = arith.constant 0 : i32
    %c0_i32_1 = arith.constant 0 : i32
    return %arg0, %c0_i32, %c0_i32_0 : i32, i32, i32
  }
  func.func @transform_11(%arg0: i32) -> (i32, i32, i32) {
    %c0_i32 = arith.constant 0 : i32
    %c0_i32_0 = arith.constant 0 : i32
    %c0_i32_1 = arith.constant 0 : i32
    return %arg0, %c0_i32, %c0_i32_0 : i32, i32, i32
  }
}

</mosaic_0001>

<bundles_post_ra>
// kernel: tpu_custom_call.1
= control target key start
LH: loop header
LB: loop body
LE: loop exit
PB: predicated region body
PF: predicated region fallthrough
CT: control target
= control target key end

     0   :  { %17 = vsyncpa [#allocation3], 0  ;;  %s5667_s0 = inlined_call_operand.hbm [shape: f32[2,8,8], index: 0, kind: input, shape index: {}]   ;;  %s5668_s1 = inlined_call_operand.hbm [shape: f32[2,8,8], index: 1, kind: input, shape index: {}]   ;;  %s5669_s2 = inlined_call_operand.hbm [shape: f32[2,8,128], index: 2, kind: input, shape index: {}]   ;;  %s5670_s3 = inlined_call_operand.hbm [shape: f32[2,8,8], index: 3, kind: input, shape index: {}]   ;;  %s5671_s4 = inlined_call_operand.hbm [shape: f32[2,1,8], index: 4, kind: input, shape index: {}]   ;;  %s5672_s5 = inlined_call_operand.hbm [shape: f32[2,1,8], index: 5, kind: input, shape index: {}]   ;;  %s5673_s6 = inlined_call_operand.hbm [shape: f32[7,128,128], index: 6, kind: input, shape index: {}]   ;;  %s5674_s7 = inlined_call_operand.hbm [shape: f32[3,128,384], index: 7, kind: input, shape index: {}]   ;;  %s5675_s8 = inlined_call_operand.vmem [shape: f32[8,128], index: 8, kind: input, shape index: {}]   ;;  %s5676_s9 = inlined_call_operand.vmem [shape: f32[2,384], index: 9, kind: input, shape index: {}]   ;;  %s5677_s10 = inlined_call_operand.hbm [shape: f32[2,8,128], index: 10, kind: output, shape index: {0}]   ;;  %s5678_s11 = inlined_call_operand.hbm [shape: f32[2,1,128], index: 11, kind: output, shape index: {1}]  }
   0x1   :  { %18 = vsyncpa [#allocation6], 0 }
   0x2   :  { %19 = vsyncpa [#allocation9], 0 }
   0x3   :  { %20 = vsyncpa [#allocation12], 0 }
   0x4   :  { %21 = vsyncpa [#allocation15], 0 }
   0x5   :  { %22 = vsyncpa [#allocation4], 0 }
   0x6   :  { %23 = vsyncpa [#allocation18], 0  ;;  %s4567_s17 = smov [#allocation5]   ;;  %s4568_s19 = smov [#allocation8]  }
   0x7   :  { %s41_s18 = sshll.u32 %s4567_s17, 4  ;;  %s65_s20 = sshll.u32 %s4568_s19, 4  ;;  %s42_s18 = int_to_ptr.vmem [resolvable:$true] %s41_s18  ;;  %s66_s20 = int_to_ptr.vmem [resolvable:$true] %s65_s20 }
   0x8   :  { %s4361_s21 = scalar_lea.vmem %s42_s18, 256  ;;  %p4366_p1 = scmp.lt.s32.totalorder %s42_s18, %s42_s18 }
   0x9   :  { %p4362_p0 = scmp.ne.s32.totalorder %s42_s18, %s4361_s21  ;;  %p4367_p2 = scmp.lt.s32.totalorder %s4361_s21, %s4361_s21 }
   0xb   :  { %p4368_p3 = por %p4367_p2, %p4366_p1 }
   0xd   :  { %p4369_p4 = pnand %p4368_p3, %p4362_p0 }
   0xf   :  { %4372 = shalt.err (!%p4369_p4)
}
  0x10   :  { %s4569_s22 = smov 128   ;;  %s4570_s23 = smov 8  }
  0x11   :  { %47 = dma.hbm_to_vmem [thread:$0]  %s5668_s1, 256, %s42_s18, [#allocation6], %s4569_s22, %s4569_s22, %s4570_s23  }
  0x12   :  { %s4381_s26 = scalar_lea.vmem %s66_s20, 256  ;;  %p4386_p6 = scmp.lt.s32.totalorder %s66_s20, %s66_s20 }
  0x13   :  { %p4382_p5 = scmp.ne.s32.totalorder %s66_s20, %s4381_s26  ;;  %p4387_p7 = scmp.lt.s32.totalorder %s4381_s26, %s4381_s26 }
  0x15   :  { %p4388_p8 = por %p4387_p7, %p4386_p6 }
  0x17   :  { %p4389_p9 = pnand %p4388_p8, %p4382_p5 }
  0x19   :  { %4392 = shalt.err (!%p4389_p9)
}
  0x1a   :  { %71 = dma.hbm_to_vmem [thread:$0]  %s5670_s3, 256, %s66_s20, [#allocation9], %s4569_s22, %s4569_s22, %s4570_s23  }
  0x1b   :  { %s4571_s29 = smov [#allocation11]   ;;  %s4572_s12 = smov [#allocation2]  }
  0x1c   :  { %s89_s30 = sshll.u32 %s4571_s29, 4  ;;  %s29_s13 = sshll.u32 %s4572_s12, 4  ;;  %s90_s30 = int_to_ptr.vmem [resolvable:$true] %s89_s30  ;;  %s30_s13 = int_to_ptr.vmem [resolvable:$true] %s29_s13 }
  0x1d   :  { %s4401_s1 = scalar_lea.vmem %s90_s30, 32  ;;  %p4406_p11 = scmp.lt.s32.totalorder %s90_s30, %s90_s30 }
  0x1e   :  { %p4402_p10 = scmp.ne.s32.totalorder %s90_s30, %s4401_s1  ;;  %p4407_p12 = scmp.lt.s32.totalorder %s4401_s1, %s4401_s1 }
  0x20   :  { %p4408_p13 = por %p4407_p12, %p4406_p11 }
  0x22   :  { %p4409_p0 = pnand %p4408_p13, %p4402_p10 }
  0x24   :  { %4412 = shalt.err (!%p4409_p0)
}
  0x25   :  { %s4573_s14 = smov 16   ;;  %s4574_s15 = smov 1  }
  0x26   :  { %95 = dma.hbm_to_vmem [thread:$0]  %s5672_s5, 32, %s90_s30, [#allocation12], %s4573_s14, %s4573_s14, %s4574_s15  }
  0x27   :  { %s4421_s17 = scalar_lea.vmem %s30_s13, 256  ;;  %p4426_p2 = scmp.lt.s32.totalorder %s30_s13, %s30_s13 }
  0x28   :  { %p4422_p1 = scmp.ne.s32.totalorder %s30_s13, %s4421_s17  ;;  %p4427_p3 = scmp.lt.s32.totalorder %s4421_s17, %s4421_s17 }
  0x2a   :  { %p4428_p4 = por %p4427_p3, %p4426_p2 }
  0x2c   :  { %p4429_p5 = pnand %p4428_p4, %p4422_p1 }
  0x2e   :  { %4432 = shalt.err (!%p4429_p5)
}
  0x2f   :  { %35 = dma.hbm_to_vmem [thread:$0]  %s5667_s0, 256, %s30_s13, [#allocation3], %s4569_s22, %s4569_s22, %s4570_s23  }
  0x30   :  { %s4575_s20 = smov [#allocation7]   ;;  %s4576_s24 = smov [#allocation10]  }
  0x31   :  { %s53_s21 = sshll.u32 %s4575_s20, 4  ;;  %s77_s25 = sshll.u32 %s4576_s24, 4  ;;  %s54_s21 = int_to_ptr.vmem [resolvable:$true] %s53_s21  ;;  %s78_s25 = int_to_ptr.vmem [resolvable:$true] %s77_s25 }
  0x32   :  { %s4441_s5 = scalar_lea.vmem %s54_s21, 256  ;;  %p4446_p7 = scmp.lt.s32.totalorder %s54_s21, %s54_s21 }
  0x33   :  { %p4442_p6 = scmp.ne.s32.totalorder %s54_s21, %s4441_s5  ;;  %p4447_p8 = scmp.lt.s32.totalorder %s4441_s5, %s4441_s5 }
  0x35   :  { %p4448_p9 = por %p4447_p8, %p4446_p7 }
  0x37   :  { %p4449_p10 = pnand %p4448_p9, %p4442_p6 }
  0x39   :  { %4452 = shalt.err (!%p4449_p10)
}
  0x3a   :  { %59 = dma.hbm_to_vmem [thread:$0]  %s5669_s2, 256, %s54_s21, [#allocation6], %s4569_s22, %s4569_s22, %s4570_s23  }
  0x3b   :  { %s4461_s0 = scalar_lea.vmem %s78_s25, 32  ;;  %p4466_p12 = scmp.lt.s32.totalorder %s78_s25, %s78_s25 }
  0x3c   :  { %p4462_p11 = scmp.ne.s32.totalorder %s78_s25, %s4461_s0  ;;  %p4467_p13 = scmp.lt.s32.totalorder %s4461_s0, %s4461_s0 }
  0x3e   :  { %p4468_p0 = por %p4467_p13, %p4466_p12 }
  0x40   :  { %p4469_p1 = pnand %p4468_p0, %p4462_p11 }
  0x42   :  { %4472 = shalt.err (!%p4469_p1)
}
  0x43   :  { %83 = dma.hbm_to_vmem [thread:$0]  %s5671_s4, 32, %s78_s25, [#allocation9], %s4573_s14, %s4573_s14, %s4574_s15  }
  0x44   :  { %s4577_s30 = smov [#allocation13]   ;;  %s4578_s13 = smov [#allocation14]  }
  0x45   :  { %s101_s12 = sshll.u32 %s4577_s30, 4  ;;  %s113_s1 = sshll.u32 %s4578_s13, 4  ;;  %s102_s12 = int_to_ptr.vmem [resolvable:$true] %s101_s12  ;;  %s114_s1 = int_to_ptr.vmem [resolvable:$true] %s113_s1 }
  0x46   :  { %s4481_s2 = scalar_lea.vmem %s102_s12, 14336  ;;  %p4486_p3 = scmp.lt.s32.totalorder %s102_s12, %s102_s12 }
  0x47   :  { %p4482_p2 = scmp.ne.s32.totalorder %s102_s12, %s4481_s2  ;;  %p4487_p4 = scmp.lt.s32.totalorder %s4481_s2, %s4481_s2 }
  0x49   :  { %p4488_p5 = por %p4487_p4, %p4486_p3 }
  0x4b   :  { %p4489_p6 = pnand %p4488_p5, %p4482_p2 }
  0x4d   :  { %4492 = shalt.err (!%p4489_p6)
}
  0x4e   :  { %107 = dma.hbm_to_vmem [thread:$0]  %s5673_s6, 14336, %s102_s12, [#allocation12], %s4569_s22, %s4569_s22, %s4570_s23  }
  0x4f   :  { %s4501_s4 = scalar_lea.vmem %s114_s1, 18432  ;;  %p4506_p8 = scmp.lt.s32.totalorder %s114_s1, %s114_s1 }
  0x50   :  { %p4502_p7 = scmp.ne.s32.totalorder %s114_s1, %s4501_s4  ;;  %p4507_p9 = scmp.lt.s32.totalorder %s4501_s4, %s4501_s4 }
  0x52   :  { %p4508_p10 = por %p4507_p9, %p4506_p8 }
  0x54   :  { %p4509_p11 = pnand %p4508_p10, %p4502_p7 }
  0x56   :  { %4512 = shalt.err (!%p4509_p11)
}
  0x57   :  { %s4579_s17 = smov 384   ;;  %s4580_s18 = smov 24  }
  0x58   :  { %119 = dma.hbm_to_vmem [thread:$0]  %s5674_s7, 18432, %s114_s1, [#allocation15], %s4579_s17, %s4579_s17, %s4580_s18  }
  0x59   :  { %4553 = dma.done.wait [#allocation3], 256  }
  0x5a   :  { %4554 = vsyncadd [#allocation3], 4294967040 }
  0x5b   :  { %4555 = dma.done.wait [#allocation6], 512  }
  0x5c   :  { %4556 = vsyncadd [#allocation6], 4294966784 }
  0x5d   :  { %4557 = dma.done.wait [#allocation9], 288  }
  0x5e   :  { %4558 = vsyncadd [#allocation9], 4294967008 }
  0x5f   :  { %4559 = dma.done.wait [#allocation12], 14368  }
  0x60   :  { %4560 = vsyncadd [#allocation12], 4294952928 }
  0x61   :  { %4561 = dma.done.wait [#allocation15], 18432  }
  0x62   :  { %4562 = vsyncadd [#allocation15], 4294948864  ;;  %v4691_v0 = vld [vmem:[#allocation13 + $0x78] sm:$0xff]  ;;  %v4693_v1 = vld [vmem:[#allocation13 + $0x70] sm:$0xff]  ;;  %v5679_v34 = vmov 0.0   ;;  %vm4582_vm0 = vmmov 0  }
  0x63   :  { %3639 = vmatprep.subr.mxu0 %v4691_v0  ;;  %v4696_v2 = vld [vmem:[#allocation13 + $0xf8] sm:$0xff]  ;;  %v4699_v3 = vld [vmem:[#allocation13 + $0x68] sm:$0xff]  ;;  %v4702_v4 = vld [vmem:[#allocation13 + $0xf0] sm:$0xff]  ;;  %vm587_vm1 = vcmask 64512   ;;  %vm2667_vm2 = vcmask 1041409   ;;  %s4584_s6 = smov [#allocation16]  }
  0x64   :  { %3640 = vmatpush3.msra.mxu0 %v4691_v0  ;;  %3674 = vmatprep.subr.mxu1 %v4696_v2  ;;  %v4706_v5 = vld [vmem:[#allocation13 + $0xe8] sm:$0xff]  ;;  %v4709_v6 = vld [vmem:[#allocation13 + $0x60] sm:$0xff]  ;;  %v4717_v8 = vld [vmem:[#allocation13 + $0x58] sm:$0xff]  ;;  %s3277_s7 = sshll.u32 %s4584_s6, 4  ;;  %s3278_s7 = int_to_ptr.vmem [resolvable:$true] %s3277_s7 }
  0x65   :  { %3641 = vmatprep.subr.mxu0 %v4693_v1  ;;  %3675 = vmatpush3.msra.mxu1 %v4696_v2  ;;  %v4714_v7 = vld [vmem:[#allocation13 + $0xe0] sm:$0xff]  ;;  %v4722_v9 = vld [vmem:[#allocation13 + $0xd8] sm:$0xff]  ;;  %v4725_v10 = vld [vmem:[#allocation13 + $0x50] sm:$0xff]  ;;  %s4513_s21 = scalar_lea.vmem %s3278_s7, 256  ;;  %p4518_p13 = scmp.lt.s32.totalorder %s3278_s7, %s3278_s7 }
  0x66   :  { %3642 = vmatpush3.msra.mxu0 %v4693_v1  ;;  %3676 = vmatprep.subr.mxu1 %v4702_v4  ;;  %v4730_v11 = vld [vmem:[#allocation13 + $0xd0] sm:$0xff]  ;;  %v4733_v12 = vld [vmem:[#allocation13 + $0x48] sm:$0xff]  ;;  %v4741_v14 = vld [vmem:[#allocation13 + $0x40] sm:$0xff]  ;;  %p4514_p12 = scmp.ne.s32.totalorder %s3278_s7, %s4513_s21  ;;  %p4519_p0 = scmp.lt.s32.totalorder %s4513_s21, %s4513_s21 }
  0x67   :  { %3643 = vmatprep.subr.mxu0 %v4699_v3  ;;  %3677 = vmatpush3.msra.mxu1 %v4702_v4  ;;  %v4738_v13 = vld [vmem:[#allocation13 + $0xc8] sm:$0xff]  ;;  %v4746_v15 = vld [vmem:[#allocation13 + $0xc0] sm:$0xff]  ;;  %v4749_v16 = vld [vmem:[#allocation13 + $0x38] sm:$0xff] }
  0x68   :  { %3644 = vmatpush3.msra.mxu0 %v4699_v3  ;;  %3678 = vmatprep.subr.mxu1 %v4706_v5  ;;  %v4754_v17 = vld [vmem:[#allocation13 + $0xb8] sm:$0xff]  ;;  %v4757_v18 = vld [vmem:[#allocation13 + $0x30] sm:$0xff]  ;;  %v4765_v20 = vld [vmem:[#allocation13 + $0x28] sm:$0xff]  ;;  %p4520_p1 = por %p4519_p0, %p4518_p13 }
  0x69   :  { %3645 = vmatprep.subr.mxu0 %v4709_v6  ;;  %3679 = vmatpush3.msra.mxu1 %v4706_v5  ;;  %v4762_v19 = vld [vmem:[#allocation13 + $0xb0] sm:$0xff]  ;;  %v4770_v21 = vld [vmem:[#allocation13 + $0xa8] sm:$0xff]  ;;  %v4773_v22 = vld [vmem:[#allocation13 + $0x20] sm:$0xff] }
  0x6a   :  { %3646 = vmatpush3.msra.mxu0 %v4709_v6  ;;  %3680 = vmatprep.subr.mxu1 %v4714_v7  ;;  %v4778_v23 = vld [vmem:[#allocation13 + $0xa0] sm:$0xff]  ;;  %v4781_v24 = vld [vmem:[#allocation13 + $0x18] sm:$0xff]  ;;  %v4789_v26 = vld [vmem:[#allocation13 + $0x10] sm:$0xff]  ;;  %p4521_p2 = pnand %p4520_p1, %p4514_p12 }
  0x6b   :  { %3647 = vmatprep.subr.mxu0 %v4717_v8  ;;  %3681 = vmatpush3.msra.mxu1 %v4714_v7  ;;  %v4786_v25 = vld [vmem:[#allocation13 + $0x98] sm:$0xff]  ;;  %v4797_v28 = vld [vmem:[#allocation13 + $0x8] sm:$0xff]  ;;  %v4800_v29 = vld [vmem:[#allocation13 + $0x90] sm:$0xff] }
  0x6c   :  { %3648 = vmatpush3.msra.mxu0 %v4717_v8  ;;  %3682 = vmatprep.subr.mxu1 %v4722_v9  ;;  %v4792_v27 = vld [vmem:[#allocation7] sm:$0xff]  ;;  %v4808_v31 = vld [vmem:[#allocation13 + $0x88] sm:$0xff]  ;;  %v353_v38 = vld [vmem:[#allocation14 + $0x2b0] sm:$0xff] }
  0x6d   :  { %3649 = vmatprep.subr.mxu0 %v4725_v10  ;;  %3683 = vmatpush3.msra.mxu1 %v4722_v9  ;;  %v4805_v30 = vld [vmem:[#allocation13] sm:$0xff]  ;;  %v362_v35 = vld [vmem:[#allocation14 + $0x2f8] sm:$0xff]  ;;  %v356_v37 = vld [vmem:[#allocation14 + $0x2c8] sm:$0xff] }
  0x6e   :  { %3650 = vmatpush3.msra.mxu0 %v4725_v10  ;;  %3684 = vmatprep.subr.mxu1 %v4730_v11  ;;  %v4813_v32 = vld [vmem:[#allocation7 + $0x8] sm:$0xff]  ;;  %v350_v39 = vld [vmem:[#allocation14 + $0x298] sm:$0xff]  ;;  %v341_v42 = vld [vmem:[#allocation14 + $0x250] sm:$0xff] }
  0x6f   :  { %3651 = vmatprep.subr.mxu0 %v4733_v12  ;;  %3685 = vmatpush3.msra.mxu1 %v4730_v11  ;;  %v4816_v33 = vld [vmem:[#allocation13 + $0x80] sm:$0xff]  ;;  %v344_v41 = vld [vmem:[#allocation14 + $0x268] sm:$0xff]  ;;  %v338_v43 = vld [vmem:[#allocation14 + $0x238] sm:$0xff] }
  0x70   :  { %3652 = vmatpush3.msra.mxu0 %v4733_v12  ;;  %3686 = vmatprep.subr.mxu1 %v4738_v13  ;;  %v359_v36 = vld [vmem:[#allocation14 + $0x2e0] sm:$0xff]  ;;  %v3310_v45 = vld [vmem:[%s5675_s8] ss:$0 sm:$0xff]  ;;  %v3311_v50 = vld [vmem:[%s5675_s8 + $0x1] ss:$0 sm:$0xff] }
  0x71   :  { %3653 = vmatprep.subr.mxu0 %v4741_v14  ;;  %3687 = vmatpush3.msra.mxu1 %v4738_v13  ;;  %v347_v40 = vld [vmem:[#allocation14 + $0x280] sm:$0xff]  ;;  %v425_v55 = vld [vmem:[#allocation5] sm:$0xff]  ;;  %v426_v58 = vld [vmem:[#allocation5 + $0x8] sm:$0xff] }
  0x72   :  { %3654 = vmatpush3.msra.mxu0 %v4741_v14  ;;  %3688 = vmatprep.subr.mxu1 %v4746_v15  ;;  %v423_v49 = vld [vmem:[#allocation2] sm:$0xff]  ;;  %v424_v54 = vld [vmem:[#allocation2 + $0x8] sm:$0xff]  ;;  %v361_v57 = vld [vmem:[#allocation14 + $0x2f0] sm:$0xff] }
  0x73   :  { %3655 = vmatprep.subr.mxu0 %v4749_v16  ;;  %3689 = vmatpush3.msra.mxu1 %v4746_v15  ;;  %v360_v59 = vld [vmem:[#allocation14 + $0x2e8] sm:$0xff]  ;;  %v358_v60 = vld [vmem:[#allocation14 + $0x2d8] sm:$0xff]  ;;  %v357_v61 = vld [vmem:[#allocation14 + $0x2d0] sm:$0xff] }
  0x74   :  { %3656 = vmatpush3.msra.mxu0 %v4749_v16  ;;  %3690 = vmatprep.subr.mxu1 %v4754_v17  ;;  %v355_v62 = vld [vmem:[#allocation14 + $0x2c0] sm:$0xff]  ;;  %v354_v63 = vld [vmem:[#allocation14 + $0x2b8] sm:$0xff] }
  0x75   :  { %3657 = vmatprep.subr.mxu0 %v4757_v18  ;;  %3691 = vmatpush3.msra.mxu1 %v4754_v17 }
  0x76   :  { %3658 = vmatpush3.msra.mxu0 %v4757_v18  ;;  %3692 = vmatprep.subr.mxu1 %v4762_v19 }
  0x77   :  { %3659 = vmatprep.subr.mxu0 %v4765_v20  ;;  %3693 = vmatpush3.msra.mxu1 %v4762_v19 }
  0x78   :  { %3660 = vmatpush3.msra.mxu0 %v4765_v20  ;;  %3694 = vmatprep.subr.mxu1 %v4770_v21 }
  0x79   :  { %3661 = vmatprep.subr.mxu0 %v4773_v22  ;;  %3695 = vmatpush3.msra.mxu1 %v4770_v21 }
  0x7a   :  { %3662 = vmatpush3.msra.mxu0 %v4773_v22  ;;  %3696 = vmatprep.subr.mxu1 %v4778_v23 }
  0x7b   :  { %3663 = vmatprep.subr.mxu0 %v4781_v24  ;;  %3697 = vmatpush3.msra.mxu1 %v4778_v23 }
  0x7c   :  { %3664 = vmatpush3.msra.mxu0 %v4781_v24  ;;  %3698 = vmatprep.subr.mxu1 %v4786_v25 }
  0x7d   :  { %3665 = vmatprep.subr.mxu0 %v4789_v26  ;;  %3671 = vmatprep.mubr.f32.mxu0 %v4792_v27 }
  0x7e   :  { %3666 = vmatpush3.msra.mxu0 %v4789_v26  ;;  %3699 = vmatpush3.msra.mxu1 %v4786_v25 }
  0x7f   :  { %3667 = vmatprep.subr.mxu0 %v4797_v28  ;;  %3700 = vmatprep.subr.mxu1 %v4800_v29 }
  0x80   :  { %3668 = vmatpush3.msra.mxu0 %v4797_v28  ;;  %3701 = vmatpush3.msra.mxu1 %v4800_v29 }
  0x81   :  { %3669 = vmatprep.subr.mxu0 %v4805_v30  ;;  %3702 = vmatprep.subr.mxu1 %v4808_v31 }
  0x82   :  { %3670 = vmatpush3.msra.mxu0 %v4805_v30  ;;  %3703 = vmatpush3.msra.mxu1 %v4808_v31 }
  0x83   :  { %3672 = vmatmul.mubr.f32.vlgmr.msra.gmra.mxu0 %v4813_v32  ;;  %3704 = vmatprep.subr.mxu1 %v4816_v33 }
  0x84   :  { %3705 = vmatpush3.msra.mxu1 %v4816_v33  ;;  %3706 = vmatprep.mubr.f32.mxu1 %v4792_v27 }
  0x85   :  { %3707 = vmatmul.mubr.f32.vlgmr.msra.gmra.mxu1 %v4813_v32  ;;  %3709 = vmatprep.subr.mxu0 %v5679_v34 }
  0x86   :  { %3711 = vmatprep.mubr.msk.f32.mxu0 %vm4582_vm0, %v5679_v34  ;;  %3729 = vmatprep.subr.mxu1 %v362_v35 }
  0x87   :  { %3730 = vmatpush3.msra.mxu1 %v362_v35  ;;  %v352_v35 = vld [vmem:[#allocation14 + $0x2a8] sm:$0xff] }
  0x88   :  { %3731 = vmatprep.subr.mxu1 %v359_v36 }
  0x89   :  { %3732 = vmatpush3.msra.mxu1 %v359_v36  ;;  %v351_v36 = vld [vmem:[#allocation14 + $0x2a0] sm:$0xff] }
  0x8a   :  { %3733 = vmatprep.subr.mxu1 %v356_v37 }
  0x8b   :  { %3734 = vmatpush3.msra.mxu1 %v356_v37  ;;  %v349_v37 = vld [vmem:[#allocation14 + $0x290] sm:$0xff] }
  0x8c   :  { %3735 = vmatprep.subr.mxu1 %v353_v38 }
  0x8d   :  { %3736 = vmatpush3.msra.mxu1 %v353_v38  ;;  %v348_v38 = vld [vmem:[#allocation14 + $0x288] sm:$0xff] }
  0x8e   :  { %3737 = vmatprep.subr.mxu1 %v350_v39 }
  0x8f   :  { %3738 = vmatpush3.msra.mxu1 %v350_v39  ;;  %v346_v39 = vld [vmem:[#allocation14 + $0x278] sm:$0xff] }
  0x90   :  { %3739 = vmatprep.subr.mxu1 %v347_v40 }
  0x91   :  { %3740 = vmatpush3.msra.mxu1 %v347_v40  ;;  %v345_v40 = vld [vmem:[#allocation14 + $0x270] sm:$0xff] }
  0x92   :  { %3741 = vmatprep.subr.mxu1 %v344_v41 }
  0x93   :  { %3742 = vmatpush3.msra.mxu1 %v344_v41  ;;  %v343_v41 = vld [vmem:[#allocation14 + $0x260] sm:$0xff] }
  0x94   :  { %3743 = vmatprep.subr.mxu1 %v341_v42 }
  0x95   :  { %3744 = vmatpush3.msra.mxu1 %v341_v42  ;;  %v342_v42 = vld [vmem:[#allocation14 + $0x258] sm:$0xff] }
  0x96   :  { %3745 = vmatprep.subr.mxu1 %v338_v43 }
  0x97   :  { %3746 = vmatpush3.msra.mxu1 %v338_v43  ;;  %v340_v43 = vld [vmem:[#allocation14 + $0x248] sm:$0xff] }
 0x143   :  { %v3673_v44 = vpop.f32.mrf.mxu0 }
 0x144   :  { %v505_v52 = vadd.f32 %v3673_v44, %v3310_v45  ;;  %v339_v44 = vld [vmem:[#allocation14 + $0x240] sm:$0xff] }
 0x145   :  { %v499_v46 = vpop.f32.mrf.mxu0  ;;  %v3708_v47 = vpop.f32.mrf.mxu1 }
 0x146   :  { %v500_v48 = vadd.f32 %v3310_v45, %v499_v46  ;;  %v584_v56 = vadd.f32 %v3708_v47, %v3311_v50  ;;  %v337_v45 = vld [vmem:[#allocation14 + $0x230] sm:$0xff]  ;;  %v336_v46 = vld [vmem:[#allocation14 + $0x228] sm:$0xff]  ;;  %v334_v47 = vld [vmem:[#allocation14 + $0x218] sm:$0xff] }
 0x147   :  { %v578_v51 = vpop.f32.mrf.mxu1 }
 0x148   :  { %3710 = vmatpush3.msra.mxu0 %v500_v48  ;;  %v579_v53 = vadd.f32 %v3311_v50, %v578_v51  ;;  %v333_v48 = vld [vmem:[#allocation14 + $0x210] sm:$0xff]  ;;  %v330_v50 = vld [vmem:[#allocation14 + $0x1f8] sm:$0xff]  ;;  %v328_v51 = vld [vmem:[#allocation14 + $0x1e8] sm:$0xff] }
 0x149   :  { %3712 = vmatmul.mubr.msk.f32.vlgmr.msra.gmra.mxu0 %vm587_vm1, %v423_v49  ;;  %3714 = vmatprep.subr.mxu0 %v5679_v34  ;;  %v331_v49 = vld [vmem:[#allocation14 + $0x200] sm:$0xff] }
 0x14a   :  { %3715 = vmatpush3.msra.mxu0 %v505_v52  ;;  %3716 = vmatprep.mubr.msk.f32.mxu0 %vm4582_vm0, %v5679_v34  ;;  %v335_v52 = vld [vmem:[#allocation14 + $0x220] sm:$0xff] }
 0x14b   :  { %3719 = vmatprep.subr.mxu0 %v5679_v34  ;;  %3747 = vmatprep.subr.mxu1 %v335_v52 }
 0x14c   :  { %3748 = vmatpush3.msra.mxu1 %v335_v52 }
 0x14d   :  { %3717 = vmatmul.mubr.msk.f32.vlgmr.msra.gmra.mxu0 %vm587_vm1, %v424_v54  ;;  %v325_v54 = vld [vmem:[#allocation14 + $0x1d0] sm:$0xff] }
 0x14e   :  { %3720 = vmatpush3.msra.mxu0 %v579_v53  ;;  %3721 = vmatprep.mubr.msk.f32.mxu0 %vm4582_vm0, %v5679_v34  ;;  %v327_v53 = vld [vmem:[#allocation14 + $0x1e0] sm:$0xff] }
 0x14f   :  { %3724 = vmatprep.subr.mxu0 %v5679_v34 }
 0x151   :  { %3722 = vmatmul.mubr.msk.f32.vlgmr.msra.gmra.mxu0 %vm587_vm1, %v425_v55  ;;  %v4850_v55 = vld [vmem:[#allocation14 + $0x208] sm:$0xff] }
 0x152   :  { %3725 = vmatpush3.msra.mxu0 %v584_v56  ;;  %3726 = vmatprep.mubr.msk.f32.mxu0 %vm4582_vm0, %v5679_v34  ;;  %v324_v56 = vld [vmem:[#allocation14 + $0x1c8] sm:$0xff] }
 0x153   :  { %892 = vmatprep.subr.mxu0 %v361_v57  ;;  %3749 = vmatprep.subr.mxu1 %v4850_v55  ;;  %v322_v57 = vld [vmem:[#allocation14 + $0x1b8] sm:$0xff] }
 0x154   :  { %3750 = vmatpush3.msra.mxu1 %v4850_v55 }
 0x155   :  { %3727 = vmatmul.mubr.msk.f32.vlgmr.msra.gmra.mxu0 %vm587_vm1, %v426_v58  ;;  %v4854_v58 = vld [vmem:[#allocation14 + $0x1f0] sm:$0xff] }
 0x156   :  { %893 = vmatpush1.msra.mxu0 %v360_v59  ;;  %956 = vmatprep.mubr.f32.mxu0 %v5679_v34  ;;  %v321_v59 = vld [vmem:[#allocation14 + $0x1b0] sm:$0xff] }
 0x157   :  { %894 = vmatprep.subr.mxu0 %v358_v60  ;;  %3751 = vmatprep.subr.mxu1 %v4854_v58  ;;  %v319_v60 = vld [vmem:[#allocation14 + $0x1a0] sm:$0xff] }
 0x158   :  { %895 = vmatpush1.msra.mxu0 %v357_v61  ;;  %3752 = vmatpush3.msra.mxu1 %v4854_v58  ;;  %v4858_v61 = vld [vmem:[#allocation14 + $0x1d8] sm:$0xff] }
 0x159   :  { %896 = vmatprep.subr.mxu0 %v355_v62  ;;  %v318_v62 = vld [vmem:[#allocation14 + $0x198] sm:$0xff]  ;;  %3753 = vmatprep.subr.mxu1 %v4858_v61 }
 0x15a   :  { %897 = vmatpush1.msra.mxu0 %v354_v63  ;;  %3754 = vmatpush3.msra.mxu1 %v4858_v61  ;;  %v316_v63 = vld [vmem:[#allocation14 + $0x188] sm:$0xff] }
 0x15b   :  { %898 = vmatprep.subr.mxu0 %v352_v35  ;;  %v4862_v35 = vld [vmem:[#allocation14 + $0x1c0] sm:$0xff] }
 0x15c   :  { %899 = vmatpush1.msra.mxu0 %v351_v36  ;;  %3755 = vmatprep.subr.mxu1 %v4862_v35  ;;  %v4865_v36 = vld [vmem:[#allocation14 + $0x180] sm:$0xff] }
 0x15d   :  { %900 = vmatprep.subr.mxu0 %v349_v37  ;;  %3756 = vmatpush3.msra.mxu1 %v4862_v35  ;;  %v4869_v37 = vld [vmem:[#allocation14 + $0x1a8] sm:$0xff] }
 0x15e   :  { %901 = vmatpush1.msra.mxu0 %v348_v38  ;;  %v4871_v38 = vld [vmem:[#allocation14 + $0x170] sm:$0xff]  ;;  %3757 = vmatprep.subr.mxu1 %v4869_v37 }
 0x15f   :  { %902 = vmatprep.subr.mxu0 %v346_v39  ;;  %3758 = vmatpush3.msra.mxu1 %v4869_v37  ;;  %v4876_v39 = vld [vmem:[#allocation14 + $0x190] sm:$0xff] }
 0x160   :  { %903 = vmatpush1.msra.mxu0 %v345_v40  ;;  %3759 = vmatprep.subr.mxu1 %v4876_v39  ;;  %v4880_v40 = vld [vmem:[#allocation14 + $0x178] sm:$0xff] }
 0x161   :  { %904 = vmatprep.subr.mxu0 %v343_v41  ;;  %3760 = vmatpush3.msra.mxu1 %v4876_v39 }
 0x162   :  { %905 = vmatpush1.msra.mxu0 %v342_v42  ;;  %3764 = vmatprep.subr.mxu1 %v4880_v40 }
 0x163   :  { %906 = vmatprep.subr.mxu0 %v340_v43 }
 0x164   :  { %907 = vmatpush1.msra.mxu0 %v339_v44 }
 0x165   :  { %908 = vmatprep.subr.mxu0 %v337_v45  ;;  %v4888_v45 = vld [vmem:[%s5675_s8 + $0x3] ss:$0 sm:$0xff] }
 0x166   :  { %909 = vmatpush1.msra.mxu0 %v336_v46 }
 0x167   :  { %910 = vmatprep.subr.mxu0 %v334_v47 }
 0x168   :  { %911 = vmatpush1.msra.mxu0 %v333_v48  ;;  %v4891_v48 = vld [vmem:[#allocation14 + $0x168] sm:$0xff] }
 0x169   :  { %912 = vmatprep.subr.mxu0 %v331_v49 }
 0x16a   :  { %913 = vmatpush1.msra.mxu0 %v330_v50  ;;  %v4893_v50 = vld [vmem:[#allocation14 + $0x158] sm:$0xff] }
 0x16b   :  { %914 = vmatprep.subr.mxu0 %v328_v51  ;;  %v4895_v51 = vld [vmem:[#allocation14 + $0x150] sm:$0xff] }
 0x16c   :  { %915 = vmatpush1.msra.mxu0 %v327_v53  ;;  %v4898_v53 = vld [vmem:[#allocation14 + $0x140] sm:$0xff] }
 0x16d   :  { %916 = vmatprep.subr.mxu0 %v325_v54  ;;  %v4904_v54 = vld [vmem:[%s5675_s8 + $0x2] ss:$0 sm:$0xff] }
 0x16e   :  { %917 = vmatpush1.msra.mxu0 %v324_v56 }
 0x16f   :  { %918 = vmatprep.subr.mxu0 %v322_v57  ;;  %v4910_v57 = vld [vmem:[#allocation14 + $0x138] sm:$0xff] }
 0x170   :  { %919 = vmatpush1.msra.mxu0 %v321_v59  ;;  %v4913_v59 = vld [vmem:[#allocation14 + $0x128] sm:$0xff] }
 0x171   :  { %920 = vmatprep.subr.mxu0 %v319_v60  ;;  %5778 = vst [vmem:[#allocation26_spill] sm:$0xff] %v4913_v59  ;;  %v4915_v60 = vld [vmem:[#allocation14 + $0x160] sm:$0xff] }
 0x172   :  { %921 = vmatpush1.msra.mxu0 %v318_v62 }
 0x173   :  { %922 = vmatprep.subr.mxu0 %v316_v63  ;;  %v4919_v63 = vld [vmem:[#allocation14 + $0x120] sm:$0xff] }
 0x174   :  { %923 = vmatpush1.msra.mxu0 %v4865_v36  ;;  %5779 = vst [vmem:[#allocation27_spill] sm:$0xff] %v4919_v63 }
 0x175   :  { %1044 = vmatprep.subr.mxu0 %v4871_v38 }
 0x209   :  { %v657_v41 = vpop.f32.mrf.mxu0 }
 0x20b   :  { %v3713_v42 = vpop.f32.mrf.mxu0 }
 0x20c   :  { %v4922_v42 = vadd.f32 %v4904_v54, %v657_v41  ;;  %v4936_v41 = vld [vmem:[#allocation14 + $0xf8] sm:$0xff] }
 0x20d   :  { %v4883_v43 = vpop.f32.mrf.mxu0  ;;  %5783 = vst [vmem:[#allocation31_spill] sm:$0xff] %v4936_v41 }
 0x20f   :  { %v3718_v44 = vpop.f32.mrf.mxu0 }
 0x210   :  { %v4926_v44 = vld [vmem:[#allocation14 + $0x110] sm:$0xff] }
 0x211   :  { %v809_v46 = vpop.f32.mrf.mxu0  ;;  %5780 = vst [vmem:[#allocation28_spill] sm:$0xff] %v4926_v44 }
 0x212   :  { %v890_v47 = vadd.f32 %v4888_v45, %v809_v46  ;;  %v4930_v46 = vld [vmem:[#allocation14 + $0x148] sm:$0xff] }
 0x213   :  { %v3723_v49 = vpop.f32.mrf.mxu0  ;;  %5781 = vst [vmem:[#allocation29_spill] sm:$0xff] %v4930_v46 }
 0x214   :  { %957 = vmatmul.mubr.f32.vlgmr.msra.gmra.mxu0 %v890_v47  ;;  %3761 = vmatprep.mubr.f32.mxu1 %v890_v47  ;;  %v4932_v47 = vld [vmem:[#allocation14 + $0x108] sm:$0xff]  ;;  %v4940_v49 = vld [vmem:[#allocation14 + $0x130] sm:$0xff] }
 0x215   :  { %1045 = vmatpush1.msra.mxu0 %v4891_v48  ;;  %v882_v52 = vpop.f32.mrf.mxu0  ;;  %962 = vmatprep.mubr.f32.mxu0 %v5679_v34  ;;  %5782 = vst [vmem:[#allocation30_spill] sm:$0xff] %v4932_v47  ;;  %5784 = vst [vmem:[#allocation32_spill] sm:$0xff] %v4940_v49  ;;  %v4950_v34 = vld [vmem:[#allocation14 + $0x118] sm:$0xff] }
 0x216   :  { %v4907_v56 = vadd.f32 %v4888_v45, %v882_v52  ;;  %1046 = vmatprep.subr.mxu0 %v4893_v50  ;;  %v4942_v52 = vld [vmem:[#allocation14 + $0xf0] sm:$0xff]  ;;  %5787 = vst [vmem:[#allocation35_spill] sm:$0xff] %v4950_v34 }
 0x217   :  { %1047 = vmatpush1.msra.mxu0 %v4895_v51  ;;  %v3728_v62 = vpop.f32.mrf.mxu0  ;;  %5785 = vst [vmem:[#allocation33_spill] sm:$0xff] %v4942_v52 }
 0x218   :  { %1048 = vmatprep.subr.mxu0 %v4898_v53  ;;  %3762 = vmatmul.mubr.f32.vlgmr.msra.gmra.mxu1 %v4907_v56  ;;  %v4946_v62 = vld [vmem:[#allocation14 + $0xe0] sm:$0xff] }
 0x219   :  { %1049 = vmatpush1.msra.mxu0 %v4910_v57  ;;  %3765 = vmatpush3.msra.mxu1 %v4880_v40  ;;  %5786 = vst [vmem:[#allocation34_spill] sm:$0xff] %v4946_v62 }
 0x21a   :  { %1050 = vmatprep.subr.mxu0 %v4913_v59  ;;  %3766 = vmatprep.subr.mxu1 %v4915_v60  ;;  %v4962_v59 = vld [vmem:[#allocation14 + $0xc0] sm:$0xff] }
 0x21b   :  { %3796 = vmatprep.mubr.f32.mxu1 %v4922_v42  ;;  %1051 = vmatpush1.msra.mxu0 %v4919_v63  ;;  %v4952_v63 = vld [vmem:[#allocation14 + $0xd8] sm:$0xff]  ;;  %5791 = vst [vmem:[#allocation39_spill] sm:$0xff] %v4962_v59 }
 0x21c   :  { %3767 = vmatpush3.msra.mxu1 %v4915_v60  ;;  %1052 = vmatprep.subr.mxu0 %v4926_v44  ;;  %5788 = vst [vmem:[#allocation36_spill] sm:$0xff] %v4952_v63  ;;  %v4956_v44 = vld [vmem:[#allocation14 + $0xc8] sm:$0xff] }
 0x21d   :  { %3768 = vmatprep.subr.mxu1 %v4930_v46  ;;  %1053 = vmatpush1.msra.mxu0 %v4932_v47  ;;  %5789 = vst [vmem:[#allocation37_spill] sm:$0xff] %v4956_v44  ;;  %v4960_v47 = vld [vmem:[#allocation14 + $0x100] sm:$0xff] }
 0x21e   :  { %3769 = vmatpush3.msra.mxu1 %v4930_v46  ;;  %1054 = vmatprep.subr.mxu0 %v4936_v41  ;;  %5790 = vst [vmem:[#allocation38_spill] sm:$0xff] %v4960_v47  ;;  %v4966_v41 = vld [vmem:[#allocation14 + $0xb0] sm:$0xff]  ;;  %v4972_v46 = vld [vmem:[#allocation14 + $0xa8] sm:$0xff] }
 0x21f   :  { %3770 = vmatprep.subr.mxu1 %v4940_v49  ;;  %1055 = vmatpush1.msra.mxu0 %v4942_v52  ;;  %5792 = vst [vmem:[#allocation40_spill] sm:$0xff] %v4966_v41  ;;  %v4970_v52 = vld [vmem:[#allocation14 + $0xe8] sm:$0xff]  ;;  %5794 = vst [vmem:[#allocation42_spill] sm:$0xff] %v4972_v46 }
 0x220   :  { %3771 = vmatpush3.msra.mxu1 %v4940_v49  ;;  %1056 = vmatprep.subr.mxu0 %v4946_v62  ;;  %5793 = vst [vmem:[#allocation41_spill] sm:$0xff] %v4970_v52  ;;  %v4976_v62 = vld [vmem:[#allocation14 + $0x98] sm:$0xff]  ;;  %v4982_v49 = vld [vmem:[#allocation14 + $0x90] sm:$0xff] }
 0x221   :  { %3772 = vmatprep.subr.mxu1 %v4950_v34  ;;  %1057 = vmatpush1.msra.mxu0 %v4952_v63  ;;  %5795 = vst [vmem:[#allocation43_spill] sm:$0xff] %v4976_v62  ;;  %v4980_v63 = vld [vmem:[#allocation14 + $0xd0] sm:$0xff]  ;;  %5796 = vst [vmem:[#allocation44_spill] sm:$0xff] %v4982_v49 }
 0x222   :  { %3773 = vmatpush3.msra.mxu1 %v4950_v34  ;;  %1058 = vmatprep.subr.mxu0 %v4956_v44  ;;  %v4986_v44 = vld [vmem:[#allocation14 + $0x80] sm:$0xff]  ;;  %v4992_v34 = vld [vmem:[#allocation14 + $0x78] sm:$0xff] }
 0x223   :  { %3774 = vmatprep.subr.mxu1 %v4960_v47  ;;  %1059 = vmatpush1.msra.mxu0 %v4962_v59  ;;  %5797 = vst [vmem:[#allocation45_spill] sm:$0xff] %v4986_v44  ;;  %v4990_v59 = vld [vmem:[#allocation14 + $0xb8] sm:$0xff]  ;;  %5799 = vst [vmem:[#allocation47_spill] sm:$0xff] %v4992_v34 }
 0x224   :  { %3775 = vmatpush3.msra.mxu1 %v4960_v47  ;;  %1060 = vmatprep.subr.mxu0 %v4966_v41  ;;  %5798 = vst [vmem:[#allocation46_spill] sm:$0xff] %v4990_v59  ;;  %v4996_v41 = vld [vmem:[#allocation14 + $0x68] sm:$0xff]  ;;  %v5002_v47 = vld [vmem:[#allocation14 + $0x60] sm:$0xff] }
 0x225   :  { %3776 = vmatprep.subr.mxu1 %v4970_v52  ;;  %1061 = vmatpush1.msra.mxu0 %v4972_v46  ;;  %5800 = vst [vmem:[#allocation48_spill] sm:$0xff] %v4996_v41  ;;  %v5000_v46 = vld [vmem:[#allocation14 + $0xa0] sm:$0xff]  ;;  %5802 = vst [vmem:[#allocation50_spill] sm:$0xff] %v5002_v47 }
 0x226   :  { %3777 = vmatpush3.msra.mxu1 %v4970_v52  ;;  %1062 = vmatprep.subr.mxu0 %v4976_v62  ;;  %5801 = vst [vmem:[#allocation49_spill] sm:$0xff] %v5000_v46  ;;  %v5006_v62 = vld [vmem:[#allocation14 + $0x50] sm:$0xff]  ;;  %v5012_v52 = vld [vmem:[#allocation14 + $0x48] sm:$0xff] }
 0x227   :  { %3778 = vmatprep.subr.mxu1 %v4980_v63  ;;  %1063 = vmatpush1.msra.mxu0 %v4982_v49  ;;  %5803 = vst [vmem:[#allocation51_spill] sm:$0xff] %v5006_v62  ;;  %v5010_v49 = vld [vmem:[#allocation14 + $0x88] sm:$0xff]  ;;  %5804 = vst [vmem:[#allocation52_spill] sm:$0xff] %v5012_v52 }
 0x228   :  { %3779 = vmatpush3.msra.mxu1 %v4980_v63  ;;  %1064 = vmatprep.subr.mxu0 %v4986_v44  ;;  %v5016_v44 = vld [vmem:[#allocation14 + $0x38] sm:$0xff] }
 0x229   :  { %3780 = vmatprep.subr.mxu1 %v4990_v59  ;;  %1065 = vmatpush1.msra.mxu0 %v4992_v34  ;;  %5805 = vst [vmem:[#allocation53_spill] sm:$0xff] %v5016_v44  ;;  %v5020_v34 = vld [vmem:[#allocation14 + $0x70] sm:$0xff] }
 0x22a   :  { %3781 = vmatpush3.msra.mxu1 %v4990_v59  ;;  %1066 = vmatprep.subr.mxu0 %v4996_v41  ;;  %5806 = vst [vmem:[#allocation54_spill] sm:$0xff] %v5020_v34  ;;  %v5024_v41 = vld [vmem:[#allocation14 + $0x30] sm:$0xff]  ;;  %v5028_v59 = vld [vmem:[#allocation14 + $0x20] sm:$0xff] }
 0x22b   :  { %3782 = vmatprep.subr.mxu1 %v5000_v46  ;;  %1067 = vmatpush1.msra.mxu0 %v5002_v47  ;;  %5807 = vst [vmem:[#allocation55_spill] sm:$0xff] %v5024_v41  ;;  %5808 = vst [vmem:[#allocation56_spill] sm:$0xff] %v5028_v59  ;;  %v5030_v47 = vld [vmem:[#allocation14 + $0x58] sm:$0xff] }
 0x22c   :  { %3783 = vmatpush3.msra.mxu1 %v5000_v46  ;;  %1068 = vmatprep.subr.mxu0 %v5006_v62  ;;  %5809 = vst [vmem:[#allocation57_spill] sm:$0xff] %v5030_v47  ;;  %v5034_v62 = vld [vmem:[#allocation14 + $0x18] sm:$0xff]  ;;  %v5040_v46 = vld [vmem:[#allocation14 + $0x40] sm:$0xff] }
 0x22d   :  { %3784 = vmatprep.subr.mxu1 %v5010_v49  ;;  %1069 = vmatpush1.msra.mxu0 %v5012_v52  ;;  %5810 = vst [vmem:[#allocation58_spill] sm:$0xff] %v5034_v62  ;;  %v5038_v52 = vld [vmem:[#allocation14 + $0x8] sm:$0xff]  ;;  %5812 = vst [vmem:[#allocation60_spill] sm:$0xff] %v5040_v46 }
 0x22e   :  { %3785 = vmatpush3.msra.mxu1 %v5010_v49  ;;  %1070 = vmatprep.subr.mxu0 %v5016_v44  ;;  %5811 = vst [vmem:[#allocation59_spill] sm:$0xff] %v5038_v52  ;;  %v5044_v44 = vld [vmem:[#allocation14] sm:$0xff] }
 0x22f   :  { %3786 = vmatprep.subr.mxu1 %v5020_v34  ;;  %963 = vmatmul.mubr.f32.gmra.mxu0 %v4907_v56  ;;  %5813 = vst [vmem:[#allocation61_spill] sm:$0xff] %v5044_v44  ;;  %v5050_v56 = vld [vmem:[#allocation14 + $0x28] sm:$0xff] }
 0x230   :  { %1071 = vmatpush1.msra.mxu0 %v5024_v41  ;;  %3787 = vmatpush3.msra.mxu1 %v5020_v34  ;;  %5814 = vst [vmem:[#allocation62_spill] sm:$0xff] %v5050_v56  ;;  %v5052_v41 = vld [vmem:[#allocation14 + $0x470] sm:$0xff]  ;;  %v5816_v34 = vmov 0.0  }
 0x231   :  { %1072 = vmatprep.subr.mxu0 %v5028_v59  ;;  %3788 = vmatprep.subr.mxu1 %v5030_v47  ;;  %5815 = vst [vmem:[#allocation63_spill] sm:$0xff] %v5052_v41  ;;  %v5056_v59 = vld [vmem:[#allocation14 + $0x468] sm:$0xff] }
 0x232   :  { %1073 = vmatpush1.msra.mxu0 %v5034_v62  ;;  %3789 = vmatpush3.msra.mxu1 %v5030_v47  ;;  %5817 = vst [vmem:[#allocation64_spill] sm:$0xff] %v5056_v59  ;;  %v5060_v62 = vld [vmem:[#allocation14 + $0x10] sm:$0xff]  ;;  %v5062_v47 = vld [vmem:[#allocation14 + $0x458] sm:$0xff] }
 0x233   :  { %1074 = vmatprep.subr.mxu0 %v5038_v52  ;;  %3790 = vmatprep.subr.mxu1 %v5040_v46  ;;  %5818 = vst [vmem:[#allocation65_spill] sm:$0xff] %v5060_v62  ;;  %5819 = vst [vmem:[#allocation66_spill] sm:$0xff] %v5062_v47  ;;  %v739_v52 = vadd.f32 %v4904_v54, %v4883_v43  ;;  %v5086_v43 = vld [vmem:[#allocation14 + $0x420] sm:$0xff] }
 0x234   :  { %1075 = vmatpush1.msra.mxu0 %v5044_v44  ;;  %1108 = vmatprep.mubr.f32.mxu0 %v5816_v34  ;;  %v5068_v44 = vld [vmem:[#allocation14 + $0x450] sm:$0xff]  ;;  %5825 = vst [vmem:[#allocation72_spill] sm:$0xff] %v5086_v43 }
 0x235   :  { %3791 = vmatpush3.msra.mxu1 %v5040_v46  ;;  %1109 = vmatmul.mubr.f32.vlgmr.msra.gmra.mxu0 %v4922_v42  ;;  %5820 = vst [vmem:[#allocation67_spill] sm:$0xff] %v5068_v44  ;;  %v5074_v42 = vld [vmem:[#allocation14 + $0x440] sm:$0xff]  ;;  %v5112_v46 = vld [vmem:[#allocation14 + $0x430] sm:$0xff] }
 0x236   :  { %3792 = vmatprep.subr.mxu1 %v5050_v56  ;;  %1234 = vmatprep.subr.mxu0 %v5052_v41  ;;  %5821 = vst [vmem:[#allocation68_spill] sm:$0xff] %v5074_v42  ;;  %v5078_v41 = vld [vmem:[#allocation14 + $0x438] sm:$0xff]  ;;  %5833 = vst [vmem:[#allocation80_spill] sm:$0xff] %v5112_v46 }
 0x237   :  { %3793 = vmatpush3.msra.mxu1 %v5050_v56  ;;  %1235 = vmatpush1.msra.mxu0 %v5056_v59  ;;  %5822 = vst [vmem:[#allocation69_spill] sm:$0xff] %v5078_v41  ;;  %v5081_v59 = vld [vmem:[#allocation14 + $0x428] sm:$0xff]  ;;  %v5083_v56 = vld [vmem:[#allocation14 + $0x478] sm:$0xff] }
 0x238   :  { %3794 = vmatprep.subr.mxu1 %v5060_v62  ;;  %1236 = vmatprep.subr.mxu0 %v5062_v47  ;;  %5823 = vst [vmem:[#allocation70_spill] sm:$0xff] %v5081_v59  ;;  %5824 = vst [vmem:[#allocation71_spill] sm:$0xff] %v5083_v56  ;;  %v5089_v47 = vld [vmem:[#allocation14 + $0x410] sm:$0xff] }
 0x239   :  { %1114 = vmatprep.mubr.f32.mxu0 %v5816_v34  ;;  %3795 = vmatpush3.msra.mxu1 %v5060_v62  ;;  %5826 = vst [vmem:[#allocation73_spill] sm:$0xff] %v5089_v47  ;;  %v5092_v62 = vld [vmem:[#allocation14 + $0x460] sm:$0xff] }
 0x23a   :  { %1237 = vmatpush1.msra.mxu0 %v5068_v44  ;;  %3797 = vmatmul.mubr.f32.vlgmr.msra.gmra.mxu1 %v739_v52  ;;  %5827 = vst [vmem:[#allocation74_spill] sm:$0xff] %v5092_v62  ;;  %v5095_v44 = vld [vmem:[#allocation14 + $0x408] sm:$0xff] }
 0x23b   :  { %1115 = vmatmul.mubr.f32.gmra.mxu0 %v739_v52  ;;  %1238 = vmatprep.subr.mxu0 %v5074_v42  ;;  %5828 = vst [vmem:[#allocation75_spill] sm:$0xff] %v5095_v44  ;;  %v5099_v52 = vld [vmem:[#allocation14 + $0x3f8] sm:$0xff]  ;;  %v5102_v42 = vld [vmem:[#allocation14 + $0x448] sm:$0xff] }
 0x23c   :  { %1239 = vmatpush1.msra.mxu0 %v5078_v41  ;;  %1298 = vmatprep.mubr.f32.mxu0 %v5816_v34  ;;  %5829 = vst [vmem:[#allocation76_spill] sm:$0xff] %v5099_v52  ;;  %5830 = vst [vmem:[#allocation77_spill] sm:$0xff] %v5102_v42  ;;  %v5105_v41 = vld [vmem:[#allocation14 + $0x3f0] sm:$0xff] }
 0x23d   :  { %1240 = vmatprep.subr.mxu0 %v5081_v59  ;;  %3799 = vmatprep.subr.mxu1 %v5083_v56  ;;  %5831 = vst [vmem:[#allocation78_spill] sm:$0xff] %v5105_v41  ;;  %v5109_v59 = vld [vmem:[#allocation14 + $0x3e0] sm:$0xff] }
 0x23e   :  { %1241 = vmatpush1.msra.mxu0 %v5086_v43  ;;  %3800 = vmatpush3.msra.mxu1 %v5083_v56  ;;  %5832 = vst [vmem:[#allocation79_spill] sm:$0xff] %v5109_v59  ;;  %v5115_v43 = vld [vmem:[#allocation14 + $0x3d8] sm:$0xff] }
 0x23f   :  { %1242 = vmatprep.subr.mxu0 %v5089_v47  ;;  %3801 = vmatprep.subr.mxu1 %v5092_v62  ;;  %5834 = vst [vmem:[#allocation81_spill] sm:$0xff] %v5115_v43  ;;  %v5119_v47 = vld [vmem:[#allocation14 + $0x3c8] sm:$0xff]  ;;  %v5122_v56 = vld [vmem:[#allocation14 + $0x418] sm:$0xff] }
 0x240   :  { %1243 = vmatpush1.msra.mxu0 %v5095_v44  ;;  %3802 = vmatpush3.msra.mxu1 %v5092_v62  ;;  %5835 = vst [vmem:[#allocation82_spill] sm:$0xff] %v5119_v47  ;;  %5836 = vst [vmem:[#allocation83_spill] sm:$0xff] %v5122_v56  ;;  %v5125_v44 = vld [vmem:[#allocation14 + $0x3c0] sm:$0xff] }
 0x241   :  { %1244 = vmatprep.subr.mxu0 %v5099_v52  ;;  %3803 = vmatprep.subr.mxu1 %v5102_v42  ;;  %5837 = vst [vmem:[#allocation84_spill] sm:$0xff] %v5125_v44  ;;  %v5129_v52 = vld [vmem:[#allocation14 + $0x3b0] sm:$0xff]  ;;  %v5132_v62 = vld [vmem:[#allocation14 + $0x400] sm:$0xff] }
 0x242   :  { %1245 = vmatpush1.msra.mxu0 %v5105_v41  ;;  %3804 = vmatpush3.msra.mxu1 %v5102_v42  ;;  %5838 = vst [vmem:[#allocation85_spill] sm:$0xff] %v5129_v52  ;;  %5839 = vst [vmem:[#allocation86_spill] sm:$0xff] %v5132_v62  ;;  %v5135_v41 = vld [vmem:[#allocation14 + $0x3a8] sm:$0xff] }
 0x243   :  { %1246 = vmatprep.subr.mxu0 %v5109_v59  ;;  %3805 = vmatprep.subr.mxu1 %v5112_v46  ;;  %5840 = vst [vmem:[#allocation87_spill] sm:$0xff] %v5135_v41  ;;  %v5139_v59 = vld [vmem:[#allocation14 + $0x398] sm:$0xff]  ;;  %v5142_v42 = vld [vmem:[#allocation14 + $0x3e8] sm:$0xff] }
 0x244   :  { %1247 = vmatpush1.msra.mxu0 %v5115_v43  ;;  %3806 = vmatpush3.msra.mxu1 %v5112_v46  ;;  %5841 = vst [vmem:[#allocation88_spill] sm:$0xff] %v5139_v59  ;;  %5842 = vst [vmem:[#allocation89_spill] sm:$0xff] %v5142_v42  ;;  %v5145_v43 = vld [vmem:[#allocation14 + $0x390] sm:$0xff] }
 0x245   :  { %1248 = vmatprep.subr.mxu0 %v5119_v47  ;;  %3807 = vmatprep.subr.mxu1 %v5122_v56  ;;  %5843 = vst [vmem:[#allocation90_spill] sm:$0xff] %v5145_v43  ;;  %v5149_v47 = vld [vmem:[#allocation14 + $0x380] sm:$0xff]  ;;  %v5152_v46 = vld [vmem:[#allocation14 + $0x3d0] sm:$0xff] }
 0x246   :  { %1249 = vmatpush1.msra.mxu0 %v5125_v44  ;;  %3808 = vmatpush3.msra.mxu1 %v5122_v56  ;;  %5844 = vst [vmem:[#allocation91_spill] sm:$0xff] %v5149_v47  ;;  %5845 = vst [vmem:[#allocation92_spill] sm:$0xff] %v5152_v46  ;;  %v5155_v44 = vld [vmem:[#allocation14 + $0x378] sm:$0xff] }
 0x247   :  { %1250 = vmatprep.subr.mxu0 %v5129_v52  ;;  %3809 = vmatprep.subr.mxu1 %v5132_v62  ;;  %5846 = vst [vmem:[#allocation93_spill] sm:$0xff] %v5155_v44  ;;  %v5159_v52 = vld [vmem:[#allocation14 + $0x368] sm:$0xff]  ;;  %v5162_v56 = vld [vmem:[#allocation14 + $0x3b8] sm:$0xff] }
 0x248   :  { %1251 = vmatpush1.msra.mxu0 %v5135_v41  ;;  %3810 = vmatpush3.msra.mxu1 %v5132_v62  ;;  %5847 = vst [vmem:[#allocation94_spill] sm:$0xff] %v5159_v52  ;;  %5848 = vst [vmem:[#allocation95_spill] sm:$0xff] %v5162_v56  ;;  %v5165_v41 = vld [vmem:[#allocation14 + $0x360] sm:$0xff] }
 0x249   :  { %1252 = vmatprep.subr.mxu0 %v5139_v59  ;;  %3811 = vmatprep.subr.mxu1 %v5142_v42  ;;  %5849 = vst [vmem:[#allocation96_spill] sm:$0xff] %v5165_v41  ;;  %v5169_v59 = vld [vmem:[#allocation14 + $0x350] sm:$0xff]  ;;  %v5172_v62 = vld [vmem:[#allocation14 + $0x3a0] sm:$0xff] }
 0x24a   :  { %1253 = vmatpush1.msra.mxu0 %v5145_v43  ;;  %3812 = vmatpush3.msra.mxu1 %v5142_v42  ;;  %5850 = vst [vmem:[#allocation97_spill] sm:$0xff] %v5169_v59  ;;  %v5175_v43 = vld [vmem:[#allocation14 + $0x348] sm:$0xff] }
 0x24b   :  { %1254 = vmatprep.subr.mxu0 %v5149_v47  ;;  %3813 = vmatprep.subr.mxu1 %v5152_v46  ;;  %5851 = vst [vmem:[#allocation98_spill] sm:$0xff] %v5175_v43  ;;  %v5179_v47 = vld [vmem:[#allocation14 + $0x338] sm:$0xff]  ;;  %v5182_v42 = vld [vmem:[#allocation14 + $0x388] sm:$0xff] }
 0x24c   :  { %1255 = vmatpush1.msra.mxu0 %v5155_v44  ;;  %3814 = vmatpush3.msra.mxu1 %v5152_v46  ;;  %5852 = vst [vmem:[#allocation99_spill] sm:$0xff] %v5179_v47  ;;  %v5185_v44 = vld [vmem:[#allocation14 + $0x330] sm:$0xff] }
 0x24d   :  { %1256 = vmatprep.subr.mxu0 %v5159_v52  ;;  %3815 = vmatprep.subr.mxu1 %v5162_v56  ;;  %5853 = vst [vmem:[#allocation100_spill] sm:$0xff] %v5185_v44  ;;  %v5189_v52 = vld [vmem:[#allocation14 + $0x320] sm:$0xff]  ;;  %v5192_v46 = vld [vmem:[#allocation14 + $0x370] sm:$0xff] }
 0x24e   :  { %1257 = vmatpush1.msra.mxu0 %v5165_v41  ;;  %3816 = vmatpush3.msra.mxu1 %v5162_v56  ;;  %v5195_v41 = vld [vmem:[#allocation14 + $0x318] sm:$0xff] }
 0x24f   :  { %1258 = vmatprep.subr.mxu0 %v5169_v59  ;;  %3817 = vmatprep.subr.mxu1 %v5172_v62  ;;  %5854 = vst [vmem:[#allocation101_spill] sm:$0xff] %v5195_v41  ;;  %v5199_v59 = vld [vmem:[#allocation14 + $0x308] sm:$0xff]  ;;  %v5202_v56 = vld [vmem:[#allocation14 + $0x358] sm:$0xff] }
 0x250   :  { %1259 = vmatpush1.msra.mxu0 %v5175_v43  ;;  %3818 = vmatpush3.msra.mxu1 %v5172_v62  ;;  %v5205_v43 = vld [vmem:[#allocation14 + $0x300] sm:$0xff] }
 0x251   :  { %1260 = vmatprep.subr.mxu0 %v5179_v47  ;;  %3819 = vmatprep.subr.mxu1 %v5182_v42  ;;  %v5210_v47 = vld [vmem:[#allocation14 + $0x340] sm:$0xff] }
 0x252   :  { %1261 = vmatpush1.msra.mxu0 %v5185_v44  ;;  %3820 = vmatpush3.msra.mxu1 %v5182_v42  ;;  %v5216_v44 = vld [vmem:[#allocation14 + $0x328] sm:$0xff] }
 0x253   :  { %1262 = vmatprep.subr.mxu0 %v5189_v52  ;;  %3821 = vmatprep.subr.mxu1 %v5192_v46 }
 0x254   :  { %1263 = vmatpush1.msra.mxu0 %v5195_v41  ;;  %3822 = vmatpush3.msra.mxu1 %v5192_v46  ;;  %v5222_v41 = vld [vmem:[#allocation14 + $0x310] sm:$0xff] }
 0x255   :  { %1264 = vmatprep.subr.mxu0 %v5199_v59  ;;  %3823 = vmatprep.subr.mxu1 %v5202_v56 }
 0x256   :  { %1265 = vmatpush1.msra.mxu0 %v5205_v43  ;;  %3824 = vmatpush3.msra.mxu1 %v5202_v56 }
 0x257   :  { %1299 = vmatmul.mubr.f32.vlgmr.msra.gmra.mxu0 %v4792_v27  ;;  %3825 = vmatprep.subr.mxu1 %v5210_v47 }
 0x258   :  { %1304 = vmatprep.mubr.f32.mxu0 %v5816_v34  ;;  %3826 = vmatpush3.msra.mxu1 %v5210_v47 }
 0x259   :  { %3827 = vmatprep.subr.mxu1 %v5216_v44  ;;  %3831 = vmatprep.mubr.f32.mxu1 %v4792_v27 }
 0x25a   :  { %3828 = vmatpush3.msra.mxu1 %v5216_v44  ;;  %3834 = vmatprep.subr.mxu0 %v4691_v0 }
 0x25b   :  { %1305 = vmatmul.mubr.f32.gmra.mxu0 %v4813_v32  ;;  %3829 = vmatprep.subr.mxu1 %v5222_v41 }
 0x25c   :  { %3830 = vmatpush3.msra.mxu1 %v5222_v41  ;;  %3835 = vmatpush3.msra.mxu0 %v4691_v0 }
 0x25d   :  { %3832 = vmatmul.mubr.f32.vlgmr.msra.gmra.mxu1 %v4813_v32  ;;  %3869 = vmatprep.subr.mxu1 %v4696_v2 }
 0x25e   :  { %3870 = vmatpush3.msra.mxu1 %v4696_v2  ;;  %3836 = vmatprep.subr.mxu0 %v4693_v1 }
 0x25f   :  { %3871 = vmatprep.subr.mxu1 %v4702_v4  ;;  %3837 = vmatpush3.msra.mxu0 %v4693_v1 }
 0x260   :  { %3872 = vmatpush3.msra.mxu1 %v4702_v4  ;;  %3838 = vmatprep.subr.mxu0 %v4699_v3  ;;  %v1197_v4 = vlaneseq }
 0x261   :  { %3873 = vmatprep.subr.mxu1 %v4706_v5  ;;  %3839 = vmatpush3.msra.mxu0 %v4699_v3 }
 0x262   :  { %3874 = vmatpush3.msra.mxu1 %v4706_v5  ;;  %3840 = vmatprep.subr.mxu0 %v4709_v6 }
 0x263   :  { %3875 = vmatprep.subr.mxu1 %v4714_v7  ;;  %3841 = vmatpush3.msra.mxu0 %v4709_v6  ;;  %v5297_v6 = vshrl.u32 %v1197_v4, 7 }
 0x264   :  { %3876 = vmatpush3.msra.mxu1 %v4714_v7  ;;  %3842 = vmatprep.subr.mxu0 %v4717_v8 }
 0x265   :  { %3877 = vmatprep.subr.mxu1 %v4722_v9  ;;  %3843 = vmatpush3.msra.mxu0 %v4717_v8  ;;  %v5300_v8 = vsub.s32 0, %v5297_v6 }
 0x266   :  { %3878 = vmatpush3.msra.mxu1 %v4722_v9  ;;  %3844 = vmatprep.subr.mxu0 %v4725_v10  ;;  %v420_v9 = vld [vmem:[%s5676_s9] ss:$2 sm:$0x7] }
 0x267   :  { %3879 = vmatprep.subr.mxu1 %v4730_v11  ;;  %3845 = vmatpush3.msra.mxu0 %v4725_v10 }
 0x268   :  { %3880 = vmatpush3.msra.mxu1 %v4730_v11  ;;  %3846 = vmatprep.subr.mxu0 %v4733_v12  ;;  %v3309_v11 = vld [vmem:[%s5676_s9 + $0x1] ss:$2 sm:$0x7] }
 0x269   :  { %3881 = vmatprep.subr.mxu1 %v4738_v13  ;;  %3847 = vmatpush3.msra.mxu0 %v4733_v12 }
 0x26a   :  { %3882 = vmatpush3.msra.mxu1 %v4738_v13  ;;  %3848 = vmatprep.subr.mxu0 %v4741_v14  ;;  %v5309_v13 = vrot.slane %v420_v9, %v5300_v8 }
 0x26b   :  { %3883 = vmatprep.subr.mxu1 %v4746_v15  ;;  %3849 = vmatpush3.msra.mxu0 %v4741_v14  ;;  %v5312_v14 = vrot.slane %v3309_v11, %v5300_v8 }
 0x26c   :  { %3884 = vmatpush3.msra.mxu1 %v4746_v15  ;;  %3850 = vmatprep.subr.mxu0 %v4749_v16 }
 0x26d   :  { %3885 = vmatprep.subr.mxu1 %v4754_v17  ;;  %3851 = vmatpush3.msra.mxu0 %v4749_v16 }
 0x26e   :  { %3886 = vmatpush3.msra.mxu1 %v4754_v17  ;;  %3852 = vmatprep.subr.mxu0 %v4757_v18 }
 0x26f   :  { %3887 = vmatprep.subr.mxu1 %v4762_v19  ;;  %3853 = vmatpush3.msra.mxu0 %v4757_v18 }
 0x270   :  { %3888 = vmatpush3.msra.mxu1 %v4762_v19  ;;  %3854 = vmatprep.subr.mxu0 %v4765_v20 }
 0x271   :  { %3889 = vmatprep.subr.mxu1 %v4770_v21  ;;  %3855 = vmatpush3.msra.mxu0 %v4765_v20 }
 0x272   :  { %3890 = vmatpush3.msra.mxu1 %v4770_v21  ;;  %3856 = vmatprep.subr.mxu0 %v4773_v22 }
 0x273   :  { %3891 = vmatprep.subr.mxu1 %v4778_v23  ;;  %3857 = vmatpush3.msra.mxu0 %v4773_v22  ;;  %v1203_v22 = vsub.s32 1, %v5297_v6 }
 0x274   :  { %3892 = vmatpush3.msra.mxu1 %v4778_v23  ;;  %3858 = vmatprep.subr.mxu0 %v4781_v24 }
 0x275   :  { %3893 = vmatprep.subr.mxu1 %v4786_v25  ;;  %3859 = vmatpush3.msra.mxu0 %v4781_v24  ;;  %v5319_v27 = vrot.slane %v3309_v11, %v1203_v22 }
 0x276   :  { %3894 = vmatpush3.msra.mxu1 %v4786_v25  ;;  %3860 = vmatprep.subr.mxu0 %v4789_v26 }
 0x277   :  { %3895 = vmatprep.subr.mxu1 %v4800_v29  ;;  %3861 = vmatpush3.msra.mxu0 %v4789_v26 }
 0x278   :  { %3896 = vmatpush3.msra.mxu1 %v4800_v29  ;;  %3862 = vmatprep.subr.mxu0 %v4797_v28 }
 0x279   :  { %3897 = vmatprep.subr.mxu1 %v4808_v31  ;;  %3863 = vmatpush3.msra.mxu0 %v4797_v28 }
 0x27a   :  { %3898 = vmatpush3.msra.mxu1 %v4808_v31  ;;  %3864 = vmatprep.subr.mxu0 %v4805_v30 }
 0x27b   :  { %3899 = vmatprep.subr.mxu1 %v4816_v33  ;;  %3865 = vmatpush3.msra.mxu0 %v4805_v30  ;;  %v5321_v30 = vrot.slane %v420_v9, %v1203_v22 }
 0x27c   :  { %3900 = vmatpush3.msra.mxu1 %v4816_v33  ;;  %3904 = vmatprep.subr.mxu0 %v5816_v34 }
 0x27d   :  { %3909 = vmatprep.subr.mxu1 %v5816_v34 }
 0x2d4   :  { %v958_v0 = vpop.f32.mrf.mxu0 }
 0x2d6   :  { %v960_v1 = vpop.f32.mrf.mxu0 }
 0x2d8   :  { %v3763_v4 = vpop.f32.mrf.mxu1 }
 0x2ef   :  { %v964_v2 = vpop.f32.mrf.mxu0 }
 0x2f1   :  { %v966_v3 = vpop.f32.mrf.mxu0 }
 0x2f5   :  { %v1110_v5 = vpop.f32.mrf.mxu0 }
 0x2f6   :  { %v1111_v12 = vadd.f32 %v1110_v5, %v958_v0 }
 0x2f7   :  { %v1112_v7 = vpop.f32.mrf.mxu0 }
 0x2f8   :  { %v1212_v17 = vadd.f32 %v5309_v13, %v1111_v12  ;;  %v1113_v29 = vadd.f32 %v1112_v7, %v960_v1 }
 0x2fa   :  { %v1213_v0 = vadd.f32 %v5321_v30, %v1113_v29 }
 0x2fb   :  { %v1116_v10 = vpop.f32.mrf.mxu0 }
 0x2fc   :  { %v1117_v18 = vadd.f32 %v1116_v10, %v964_v2 }
 0x2fd   :  { %v1118_v15 = vpop.f32.mrf.mxu0 }
 0x2fe   :  { %v1215_v24 = vadd.f32 %v5309_v13, %v1117_v18  ;;  %v1119_v2 = vadd.f32 %v1118_v15, %v966_v3  ;;  %v1207_v15 = vsub.s32 2, %v5297_v6 }
 0x300   :  { %v1216_v12 = vadd.f32 %v5321_v30, %v1119_v2 }
 0x317   :  { %v1300_v16 = vpop.f32.mrf.mxu0 }
 0x318   :  { %v1301_v19 = vadd.f32 %v1300_v16, %v5312_v14  ;;  %v1035_v16 = vpop.f32.mrf.mxu1 }
 0x319   :  { %v1302_v20 = vpop.f32.mrf.mxu0 }
 0x31a   :  { %v1386_v21 = vadd.f32 %v1301_v19, %v1212_v17  ;;  %v1303_v32 = vadd.f32 %v1302_v20, %v5319_v27  ;;  %v3798_v7 = vpop.f32.mrf.mxu1 }
 0x31b   :  { %v1306_v23 = vpop.f32.mrf.mxu0 }
 0x31c   :  { %v3318_v25 = vmul.f32 -1.442695, %v1386_v21  ;;  %v1307_v26 = vadd.f32 %v1306_v23, %v5312_v14  ;;  %v1400_v5 = vadd.f32 %v1303_v32, %v1213_v0  ;;  %v1187_v22 = vpop.f32.mrf.mxu1 }
 0x31d   :  { %v1308_v33 = vpop.f32.mrf.mxu0 }
 0x31e   :  { %4253 = vpow2.f32 %v3318_v25  ;;  %v1387_v28 = vadd.f32 %v1307_v26, %v1215_v24  ;;  %v1309_v10 = vadd.f32 %v1308_v33, %v5319_v27  ;;  %v3320_v17 = vmul.f32 -1.442695, %v1400_v5  ;;  %v3833_v3 = vpop.f32.mrf.mxu1 }
 0x31f   :  { %v5328_v24 = vrot.slane %v3309_v11, %v1207_v15  ;;  %v1188_v26 = vadd.f32 %v1187_v22, %v1035_v16  ;;  %v1193_v33 = vadd.f32 %v3798_v7, %v3763_v4  ;;  %v4301_v4 = vld [vmem:[#allocation7] sm:$0xff] }
 0x320   :  { %v3319_v31 = vmul.f32 -1.442695, %v1387_v28  ;;  %v1401_v18 = vadd.f32 %v1309_v10, %v1216_v12  ;;  %v1377_v25 = vpop.f32.mrf.mxu1 }
 0x321   :  { %v1378_v28 = vadd.f32 %v1377_v25, %v5328_v24  ;;  %v1383_v12 = vadd.f32 %v3833_v3, %v5328_v24  ;;  %v4302_v3 = vld [vmem:[#allocation7 + $0x8] sm:$0xff] }
 0x322   :  { %4255 = vpow2.f32 %v3319_v31  ;;  %v3321_v21 = vmul.f32 -1.442695, %v1401_v18  ;;  %v5331_v31 = vrot.slane %v420_v9, %v1207_v15 }
 0x323   :  { %4257 = vpow2.f32 %v3320_v17 }
 0x324   :  { %v1214_v0 = vadd.f32 %v5331_v31, %v1188_v26  ;;  %v1217_v11 = vadd.f32 %v5331_v31, %v1193_v33  ;;  %v4303_v33 = vld [vmem:[%s5675_s8] ss:$0 sm:$0xff] }
 0x32b   :  { %v4254_v1 = vpop.eup %4253 }
 0x32c   :  { %v1394_v19 = vadd.f32 1.0, %v4254_v1 }
 0x32e   :  { %4259 = vrcp.f32 %v1394_v19 }
 0x32f   :  { %v4256_v20 = vpop.eup %4255  ;;  %4261 = vpow2.f32 %v3321_v21 }
 0x330   :  { %v1395_v23 = vadd.f32 1.0, %v4256_v20  ;;  %v4258_v29 = vpop.eup %4257 }
 0x331   :  { %v1408_v10 = vadd.f32 1.0, %v4258_v29 }
 0x332   :  { %4263 = vrcp.f32 %v1395_v23 }
 0x33b   :  { %v4260_v32 = vpop.eup %4259 }
 0x33c   :  { %v1414_v2 = vmul.f32 %v4260_v32, %v1378_v28  ;;  %v4262_v5 = vpop.eup %4261 }
 0x33d   :  { %v1409_v16 = vadd.f32 1.0, %v4262_v5 }
 0x33e   :  { %v1416_v17 = vadd.f32 %v1414_v2, %v1214_v0 }
 0x33f   :  { %v4264_v18 = vpop.eup %4263 }
 0x340   :  { %v1415_v1 = vmul.f32 %v4264_v18, %v1383_v12  ;;  %4265 = vtanh.f32 %v1416_v17  ;;  %v4305_v18 = vld [vmem:[#allocation2 + $0x8] sm:$0xff] }
 0x341   :  { %4267 = vrcp.f32 %v1408_v10  ;;  %v4304_v10 = vld [vmem:[%s5675_s8 + $0x1] ss:$0 sm:$0xff] }
 0x342   :  { %v1417_v19 = vadd.f32 %v1415_v1, %v1217_v11  ;;  %v4306_v1 = vld [vmem:[#allocation2] sm:$0xff] }
 0x344   :  { %4269 = vtanh.f32 %v1417_v19  ;;  %v4308_v19 = vld [vmem:[#allocation5 + $0x8] sm:$0xff] }
 0x345   :  { %4271 = vrcp.f32 %v1409_v16  ;;  %v4307_v16 = vld [vmem:[#allocation14 + $0x2f0] sm:$0xff] }
 0x34d   :  { %v4266_v9 = vpop.eup %4265 }
 0x34e   :  { %v1420_v7 = vsub.f32 %v4301_v4, %v4266_v9  ;;  %v4268_v21 = vpop.eup %4267  ;;  %v4310_v4 = vld [vmem:[#allocation5] sm:$0xff] }
 0x350   :  { %v1422_v20 = vmul.f32 %v4268_v21, %v1420_v7  ;;  %v4311_v7 = vld [vmem:[#allocation14 + $0x2e8] sm:$0xff]  ;;  %v4312_v21 = vld [vmem:[#allocation14 + $0x2e0] sm:$0xff] }
 0x351   :  { %v4270_v22 = vpop.eup %4269 }
 0x352   :  { %v5336_v23 = vadd.f32 %v4266_v9, %v1422_v20  ;;  %v1421_v15 = vsub.f32 %v4302_v3, %v4270_v22  ;;  %v4272_v25 = vpop.eup %4271  ;;  %v4309_v9 = vld [vmem:[#allocation14 + $0x2f8] sm:$0xff]  ;;  %v4315_v3 = vld [vmem:[#allocation14 + $0x2c8] sm:$0xff] }
 0x353   :  { %v4313_v20 = vld [vmem:[#allocation14 + $0x2d8] sm:$0xff] }
 0x354   :  { %3866 = vmatprep.mubr.f32.mxu0 %v5336_v23  ;;  %3901 = vmatprep.mubr.f32.mxu1 %v5336_v23  ;;  %v1423_v26 = vmul.f32 %v4272_v25, %v1421_v15  ;;  %v4316_v15 = vld [vmem:[#allocation14 + $0x2c0] sm:$0xff]  ;;  %v4317_v25 = vld [vmem:[#allocation14 + $0x2b8] sm:$0xff] }
 0x356   :  { %v5340_v28 = vadd.f32 %v4270_v22, %v1423_v26  ;;  %v4314_v22 = vld [vmem:[#allocation14 + $0x2d0] sm:$0xff] }
 0x357   :  { %v4318_v26 = vld [vmem:[#allocation14 + $0x2b0] sm:$0xff] }
 0x358   :  { %3867 = vmatmul.mubr.f32.vlgmr.msra.gmra.mxu0 %v5340_v28  ;;  %3902 = vmatmul.mubr.f32.vlgmr.msra.gmra.mxu1 %v5340_v28 }
 0x359   :  { %3911 = vmatprep.mubr.msk.f32.mxu1 %vm4582_vm0, %v5816_v34  ;;  %3906 = vmatprep.mubr.msk.f32.mxu0 %vm4582_vm0, %v5816_v34 }
 0x418   :  { %v3868_v29 = vpop.f32.mrf.mxu0  ;;  %v3903_v32 = vpop.f32.mrf.mxu1 }
 0x419   :  { %v1498_v0 = vadd.f32 %v4303_v33, %v3868_v29  ;;  %v1573_v12 = vadd.f32 %v4304_v10, %v3903_v32  ;;  %v4319_v29 = vld [vmem:[#allocation14 + $0x2a8] sm:$0xff]  ;;  %v4320_v32 = vld [vmem:[#allocation14 + $0x2a0] sm:$0xff] }
 0x41a   :  { %v1492_v2 = vpop.f32.mrf.mxu0  ;;  %v1567_v5 = vpop.f32.mrf.mxu1 }
 0x41b   :  { %v1493_v17 = vadd.f32 %v4303_v33, %v1492_v2  ;;  %3910 = vmatpush3.msra.mxu1 %v1498_v0  ;;  %v1568_v11 = vadd.f32 %v4304_v10, %v1567_v5  ;;  %v4321_v33 = vld [vmem:[#allocation14 + $0x298] sm:$0xff]  ;;  %v4322_v0 = vld [vmem:[#allocation14 + $0x290] sm:$0xff]  ;;  %v4323_v2 = vld [vmem:[#allocation14 + $0x288] sm:$0xff] }
 0x41c   :  { %3919 = vmatprep.subr.mxu1 %v5816_v34  ;;  %3912 = vmatmul.mubr.msk.f32.vlgmr.msra.gmra.mxu1 %vm587_vm1, %v4305_v18  ;;  %v4324_v5 = vld [vmem:[#allocation14 + $0x280] sm:$0xff]  ;;  %v4325_v10 = vld [vmem:[#allocation14 + $0x278] sm:$0xff] }
 0x41d   :  { %3905 = vmatpush3.msra.mxu0 %v1493_v17  ;;  %3920 = vmatpush3.msra.mxu1 %v1573_v12  ;;  %v4326_v12 = vld [vmem:[#allocation14 + $0x270] sm:$0xff]  ;;  %v4327_v17 = vld [vmem:[#allocation14 + $0x268] sm:$0xff]  ;;  %v4328_v18 = vld [vmem:[#allocation14 + $0x260] sm:$0xff] }
 0x41e   :  { %3907 = vmatmul.mubr.msk.f32.vlgmr.msra.gmra.mxu0 %vm587_vm1, %v4306_v1  ;;  %3914 = vmatprep.subr.mxu0 %v5816_v34  ;;  %v4330_v1 = vld [vmem:[#allocation14 + $0x250] sm:$0xff] }
 0x41f   :  { %3915 = vmatpush3.msra.mxu0 %v1568_v11  ;;  %3916 = vmatprep.mubr.msk.f32.mxu0 %vm4582_vm0, %v5816_v34  ;;  %v4329_v11 = vld [vmem:[#allocation14 + $0x258] sm:$0xff] }
 0x420   :  { %3921 = vmatprep.mubr.msk.f32.mxu1 %vm4582_vm0, %v5816_v34  ;;  %1860 = vmatprep.subr.mxu0 %v4307_v16  ;;  %v4331_v16 = vld [vmem:[#allocation14 + $0x248] sm:$0xff] }
 0x421   :  { %3922 = vmatmul.mubr.msk.f32.vlgmr.msra.gmra.mxu1 %vm587_vm1, %v4308_v19  ;;  %3924 = vmatprep.subr.mxu1 %v4309_v9  ;;  %v4332_v19 = vld [vmem:[#allocation14 + $0x240] sm:$0xff] }
 0x422   :  { %3917 = vmatmul.mubr.msk.f32.vlgmr.msra.gmra.mxu0 %vm587_vm1, %v4310_v4  ;;  %3925 = vmatpush3.msra.mxu1 %v4309_v9  ;;  %v4333_v9 = vld [vmem:[#allocation14 + $0x238] sm:$0xff]  ;;  %v4334_v4 = vld [vmem:[#allocation14 + $0x230] sm:$0xff] }
 0x423   :  { %1861 = vmatpush1.msra.mxu0 %v4311_v7  ;;  %3926 = vmatprep.subr.mxu1 %v4312_v21  ;;  %v4335_v7 = vld [vmem:[#allocation14 + $0x228] sm:$0xff] }
 0x424   :  { %1862 = vmatprep.subr.mxu0 %v4313_v20  ;;  %3927 = vmatpush3.msra.mxu1 %v4312_v21  ;;  %v4336_v21 = vld [vmem:[#allocation14 + $0x220] sm:$0xff]  ;;  %v4337_v20 = vld [vmem:[#allocation14 + $0x218] sm:$0xff] }
 0x425   :  { %1863 = vmatpush1.msra.mxu0 %v4314_v22  ;;  %3928 = vmatprep.subr.mxu1 %v4315_v3  ;;  %v4338_v22 = vld [vmem:[#allocation14 + $0x210] sm:$0xff] }
 0x426   :  { %1864 = vmatprep.subr.mxu0 %v4316_v15  ;;  %3929 = vmatpush3.msra.mxu1 %v4315_v3  ;;  %v4339_v3 = vld [vmem:[#allocation14 + $0x200] sm:$0xff]  ;;  %v4340_v15 = vld [vmem:[#allocation14 + $0x208] sm:$0xff] }
 0x427   :  { %1865 = vmatpush1.msra.mxu0 %v4317_v25  ;;  %3930 = vmatprep.subr.mxu1 %v4318_v26  ;;  %v4341_v25 = vld [vmem:[#allocation14 + $0x1f8] sm:$0xff] }
 0x428   :  { %1866 = vmatprep.subr.mxu0 %v4319_v29  ;;  %3931 = vmatpush3.msra.mxu1 %v4318_v26  ;;  %v4342_v26 = vld [vmem:[#allocation14 + $0x1e8] sm:$0xff]  ;;  %v4343_v29 = vld [vmem:[#allocation14 + $0x1e0] sm:$0xff] }
 0x429   :  { %1867 = vmatpush1.msra.mxu0 %v4320_v32  ;;  %3932 = vmatprep.subr.mxu1 %v4321_v33  ;;  %v4344_v32 = vld [vmem:[#allocation14 + $0x1d0] sm:$0xff] }
 0x42a   :  { %1868 = vmatprep.subr.mxu0 %v4322_v0  ;;  %3933 = vmatpush3.msra.mxu1 %v4321_v33  ;;  %v4346_v33 = vld [vmem:[#allocation14 + $0x1b8] sm:$0xff]  ;;  %v4347_v0 = vld [vmem:[#allocation14 + $0x1b0] sm:$0xff] }
 0x42b   :  { %1869 = vmatpush1.msra.mxu0 %v4323_v2  ;;  %3934 = vmatprep.subr.mxu1 %v4324_v5  ;;  %v4349_v2 = vld [vmem:[#allocation14 + $0x198] sm:$0xff] }
 0x42c   :  { %1870 = vmatprep.subr.mxu0 %v4325_v10  ;;  %3935 = vmatpush3.msra.mxu1 %v4324_v5 }
 0x42d   :  { %1871 = vmatpush1.msra.mxu0 %v4326_v12  ;;  %3936 = vmatprep.subr.mxu1 %v4327_v17 }
 0x42e   :  { %1872 = vmatprep.subr.mxu0 %v4328_v18  ;;  %3937 = vmatpush3.msra.mxu1 %v4327_v17 }
 0x42f   :  { %1873 = vmatpush1.msra.mxu0 %v4329_v11  ;;  %3938 = vmatprep.subr.mxu1 %v4330_v1 }
 0x430   :  { %1874 = vmatprep.subr.mxu0 %v4331_v16  ;;  %3939 = vmatpush3.msra.mxu1 %v4330_v1 }
 0x431   :  { %1875 = vmatpush1.msra.mxu0 %v4332_v19  ;;  %3940 = vmatprep.subr.mxu1 %v4333_v9  ;;  %v5865_v19 = vld [vmem:[#allocation34_spill] sm:$0xff] }
 0x432   :  { %1876 = vmatprep.subr.mxu0 %v4334_v4  ;;  %3941 = vmatpush3.msra.mxu1 %v4333_v9  ;;  %v5866_v9 = vld [vmem:[#allocation36_spill] sm:$0xff]  ;;  %v5867_v4 = vld [vmem:[#allocation41_spill] sm:$0xff] }
 0x433   :  { %1877 = vmatpush1.msra.mxu0 %v4335_v7  ;;  %3942 = vmatprep.subr.mxu1 %v4336_v21  ;;  %v5868_v7 = vld [vmem:[#allocation37_spill] sm:$0xff] }
 0x434   :  { %1878 = vmatprep.subr.mxu0 %v4337_v20  ;;  %3943 = vmatpush3.msra.mxu1 %v4336_v21  ;;  %v5869_v21 = vld [vmem:[#allocation39_spill] sm:$0xff]  ;;  %v5870_v20 = vld [vmem:[#allocation40_spill] sm:$0xff] }
 0x435   :  { %1879 = vmatpush1.msra.mxu0 %v4338_v22  ;;  %3944 = vmatprep.subr.mxu1 %v4850_v55  ;;  %v4345_v55 = vld [vmem:[#allocation14 + $0x1c8] sm:$0xff]  ;;  %v5871_v22 = vld [vmem:[#allocation42_spill] sm:$0xff] }
 0x436   :  { %1880 = vmatprep.subr.mxu0 %v4339_v3  ;;  %3945 = vmatpush3.msra.mxu1 %v4340_v15  ;;  %v5872_v3 = vld [vmem:[#allocation46_spill] sm:$0xff]  ;;  %v5873_v15 = vld [vmem:[#allocation43_spill] sm:$0xff] }
 0x437   :  { %1881 = vmatpush1.msra.mxu0 %v4341_v25  ;;  %3946 = vmatprep.subr.mxu1 %v4854_v58  ;;  %v5874_v25 = vld [vmem:[#allocation44_spill] sm:$0xff] }
 0x438   :  { %1882 = vmatprep.subr.mxu0 %v4342_v26  ;;  %3947 = vmatpush3.msra.mxu1 %v4854_v58  ;;  %v4348_v58 = vld [vmem:[#allocation14 + $0x1a0] sm:$0xff]  ;;  %v5875_v26 = vld [vmem:[#allocation49_spill] sm:$0xff] }
 0x439   :  { %1883 = vmatpush1.msra.mxu0 %v4343_v29  ;;  %3948 = vmatprep.subr.mxu1 %v4858_v61  ;;  %v5876_v29 = vld [vmem:[#allocation45_spill] sm:$0xff] }
 0x43a   :  { %1884 = vmatprep.subr.mxu0 %v4344_v32  ;;  %3949 = vmatpush3.msra.mxu1 %v4858_v61  ;;  %v4350_v61 = vld [vmem:[#allocation14 + $0x188] sm:$0xff]  ;;  %v5877_v32 = vld [vmem:[#allocation47_spill] sm:$0xff] }
 0x43b   :  { %1885 = vmatpush1.msra.mxu0 %v4345_v55  ;;  %3950 = vmatprep.subr.mxu1 %v4862_v35  ;;  %v5879_v55 = vld [vmem:[#allocation50_spill] sm:$0xff] }
 0x43c   :  { %1886 = vmatprep.subr.mxu0 %v4346_v33  ;;  %3951 = vmatpush3.msra.mxu1 %v4862_v35  ;;  %v5880_v33 = vld [vmem:[#allocation54_spill] sm:$0xff] }
 0x43d   :  { %1887 = vmatpush1.msra.mxu0 %v4347_v0  ;;  %3952 = vmatprep.subr.mxu1 %v4869_v37  ;;  %v5881_v0 = vld [vmem:[#allocation51_spill] sm:$0xff] }
 0x43e   :  { %1888 = vmatprep.subr.mxu0 %v4348_v58  ;;  %3953 = vmatpush3.msra.mxu1 %v4869_v37  ;;  %v5882_v58 = vld [vmem:[#allocation52_spill] sm:$0xff] }
 0x43f   :  { %1889 = vmatpush1.msra.mxu0 %v4349_v2  ;;  %3954 = vmatprep.subr.mxu1 %v4876_v39  ;;  %v5883_v2 = vld [vmem:[#allocation57_spill] sm:$0xff] }
 0x440   :  { %1890 = vmatprep.subr.mxu0 %v4350_v61  ;;  %1924 = vmatprep.mubr.f32.mxu0 %v5816_v34  ;;  %v5884_v61 = vld [vmem:[#allocation53_spill] sm:$0xff] }
 0x441   :  { %1891 = vmatpush1.msra.mxu0 %v4865_v36  ;;  %3955 = vmatpush3.msra.mxu1 %v4876_v39  ;;  %v5855_v39 = vld [vmem:[#allocation29_spill] sm:$0xff] }
 0x442   :  { %2012 = vmatprep.subr.mxu0 %v4871_v38  ;;  %3959 = vmatprep.subr.mxu1 %v4880_v40  ;;  %v4351_v38 = vld [vmem:[#allocation14 + $0x178] sm:$0xff] }
 0x443   :  { %v5856_v40 = vld [vmem:[#allocation26_spill] sm:$0xff] }
 0x4dc   :  { %v5379_v35 = vpop.f32.mrf.mxu1 }
 0x4de   :  { %v1642_v5 = vpop.f32.mrf.mxu0  ;;  %v3913_v37 = vpop.f32.mrf.mxu1 }
 0x4df   :  { %v5385_v36 = vadd.f32 %v4904_v54, %v1642_v5  ;;  %v5862_v54 = vld [vmem:[#allocation31_spill] sm:$0xff]  ;;  %v5887_v37 = vld [vmem:[#allocation56_spill] sm:$0xff] }
 0x4e0   :  { %v3908_v10 = vpop.f32.mrf.mxu0  ;;  %v5886_v5 = vld [vmem:[#allocation55_spill] sm:$0xff] }
 0x4e1   :  { %v1854_v12 = vpop.f32.mrf.mxu1  ;;  %v5888_v10 = vld [vmem:[#allocation62_spill] sm:$0xff] }
 0x4e2   :  { %v1784_v17 = vpop.f32.mrf.mxu0  ;;  %v1859_v18 = vadd.f32 %v4888_v45, %v1854_v12  ;;  %v5889_v12 = vld [vmem:[#allocation58_spill] sm:$0xff] }
 0x4e3   :  { %v1858_v11 = vadd.f32 %v4888_v45, %v1784_v17  ;;  %v3923_v1 = vpop.f32.mrf.mxu1  ;;  %v5857_v45 = vld [vmem:[#allocation27_spill] sm:$0xff] }
 0x4e4   :  { %v3918_v16 = vpop.f32.mrf.mxu0  ;;  %v5890_v17 = vld [vmem:[#allocation59_spill] sm:$0xff]  ;;  %v5891_v1 = vld [vmem:[#allocation61_spill] sm:$0xff] }
 0x4e5   :  { %1925 = vmatmul.mubr.f32.vlgmr.msra.gmra.mxu0 %v1858_v11  ;;  %3956 = vmatprep.mubr.f32.mxu1 %v1858_v11  ;;  %v5892_v16 = vld [vmem:[#allocation65_spill] sm:$0xff] }
 0x4e6   :  { %2013 = vmatpush1.msra.mxu0 %v4891_v48  ;;  %3957 = vmatmul.mubr.f32.vlgmr.msra.gmra.mxu1 %v1859_v18  ;;  %v5858_v48 = vld [vmem:[#allocation32_spill] sm:$0xff] }
 0x4e7   :  { %2014 = vmatprep.subr.mxu0 %v4893_v50  ;;  %3960 = vmatpush3.msra.mxu1 %v4351_v38  ;;  %v5859_v50 = vld [vmem:[#allocation28_spill] sm:$0xff]  ;;  %v5893_v38 = vld [vmem:[#allocation63_spill] sm:$0xff] }
 0x4e8   :  { %2015 = vmatpush1.msra.mxu0 %v4895_v51  ;;  %3961 = vmatprep.subr.mxu1 %v4915_v60  ;;  %v5860_v51 = vld [vmem:[#allocation30_spill] sm:$0xff] }
 0x4e9   :  { %3991 = vmatprep.mubr.f32.mxu1 %v5385_v36  ;;  %2016 = vmatprep.subr.mxu0 %v4898_v53  ;;  %v5861_v53 = vld [vmem:[#allocation35_spill] sm:$0xff] }
 0x4ea   :  { %3962 = vmatpush3.msra.mxu1 %v4915_v60  ;;  %2017 = vmatpush1.msra.mxu0 %v4910_v57  ;;  %v5863_v57 = vld [vmem:[#allocation33_spill] sm:$0xff]  ;;  %v5864_v60 = vld [vmem:[#allocation38_spill] sm:$0xff] }
 0x4eb   :  { %3963 = vmatprep.subr.mxu1 %v5855_v39  ;;  %2018 = vmatprep.subr.mxu0 %v5856_v40  ;;  %v5895_v40 = vld [vmem:[#allocation71_spill] sm:$0xff] }
 0x4ec   :  { %3964 = vmatpush3.msra.mxu1 %v5855_v39  ;;  %2019 = vmatpush1.msra.mxu0 %v5857_v45  ;;  %v5894_v39 = vld [vmem:[#allocation64_spill] sm:$0xff]  ;;  %v5896_v45 = vld [vmem:[#allocation66_spill] sm:$0xff] }
 0x4ed   :  { %3965 = vmatprep.subr.mxu1 %v5858_v48  ;;  %2020 = vmatprep.subr.mxu0 %v5859_v50  ;;  %v5900_v50 = vld [vmem:[#allocation69_spill] sm:$0xff] }
 0x4ee   :  { %3966 = vmatpush3.msra.mxu1 %v5858_v48  ;;  %2021 = vmatpush1.msra.mxu0 %v5860_v51  ;;  %v5899_v48 = vld [vmem:[#allocation68_spill] sm:$0xff]  ;;  %v5901_v51 = vld [vmem:[#allocation77_spill] sm:$0xff] }
 0x4ef   :  { %3967 = vmatprep.subr.mxu1 %v5861_v53  ;;  %2022 = vmatprep.subr.mxu0 %v5862_v54  ;;  %v5903_v54 = vld [vmem:[#allocation72_spill] sm:$0xff] }
 0x4f0   :  { %3968 = vmatpush3.msra.mxu1 %v5861_v53  ;;  %2023 = vmatpush1.msra.mxu0 %v5863_v57  ;;  %v5902_v53 = vld [vmem:[#allocation70_spill] sm:$0xff]  ;;  %v5904_v57 = vld [vmem:[#allocation80_spill] sm:$0xff] }
 0x4f1   :  { %3969 = vmatprep.subr.mxu1 %v5864_v60  ;;  %2024 = vmatprep.subr.mxu0 %v5865_v19  ;;  %v5906_v19 = vld [vmem:[#allocation75_spill] sm:$0xff] }
 0x4f2   :  { %3970 = vmatpush3.msra.mxu1 %v5864_v60  ;;  %2025 = vmatpush1.msra.mxu0 %v5866_v9  ;;  %v5905_v60 = vld [vmem:[#allocation73_spill] sm:$0xff]  ;;  %v5907_v9 = vld [vmem:[#allocation83_spill] sm:$0xff] }
 0x4f3   :  { %3971 = vmatprep.subr.mxu1 %v5867_v4  ;;  %2026 = vmatprep.subr.mxu0 %v5868_v7  ;;  %v5909_v7 = vld [vmem:[#allocation78_spill] sm:$0xff] }
 0x4f4   :  { %3972 = vmatpush3.msra.mxu1 %v5867_v4  ;;  %2027 = vmatpush1.msra.mxu0 %v5869_v21  ;;  %v5908_v4 = vld [vmem:[#allocation76_spill] sm:$0xff]  ;;  %v5910_v21 = vld [vmem:[#allocation86_spill] sm:$0xff] }
 0x4f5   :  { %3973 = vmatprep.subr.mxu1 %v4980_v63  ;;  %2028 = vmatprep.subr.mxu0 %v5870_v20  ;;  %v5911_v20 = vld [vmem:[#allocation79_spill] sm:$0xff] }
 0x4f6   :  { %3974 = vmatpush3.msra.mxu1 %v4980_v63  ;;  %2029 = vmatpush1.msra.mxu0 %v5871_v22  ;;  %v5878_v63 = vld [vmem:[#allocation48_spill] sm:$0xff]  ;;  %v5912_v22 = vld [vmem:[#allocation81_spill] sm:$0xff] }
 0x4f7   :  { %3975 = vmatprep.subr.mxu1 %v5872_v3  ;;  %2030 = vmatprep.subr.mxu0 %v5873_v15  ;;  %v5914_v15 = vld [vmem:[#allocation82_spill] sm:$0xff] }
 0x4f8   :  { %3976 = vmatpush3.msra.mxu1 %v5872_v3  ;;  %2031 = vmatpush1.msra.mxu0 %v5874_v25  ;;  %v5913_v3 = vld [vmem:[#allocation89_spill] sm:$0xff]  ;;  %v5915_v25 = vld [vmem:[#allocation84_spill] sm:$0xff] }
 0x4f9   :  { %3977 = vmatprep.subr.mxu1 %v5875_v26  ;;  %2032 = vmatprep.subr.mxu0 %v5876_v29  ;;  %v5917_v29 = vld [vmem:[#allocation85_spill] sm:$0xff] }
 0x4fa   :  { %3978 = vmatpush3.msra.mxu1 %v5875_v26  ;;  %2033 = vmatpush1.msra.mxu0 %v5877_v32  ;;  %v5916_v26 = vld [vmem:[#allocation92_spill] sm:$0xff]  ;;  %v5918_v32 = vld [vmem:[#allocation87_spill] sm:$0xff] }
 0x4fb   :  { %3979 = vmatprep.subr.mxu1 %v5010_v49  ;;  %2034 = vmatprep.subr.mxu0 %v5878_v63  ;;  %v5919_v63 = vld [vmem:[#allocation95_spill] sm:$0xff] }
 0x4fc   :  { %3980 = vmatpush3.msra.mxu1 %v5010_v49  ;;  %2035 = vmatpush1.msra.mxu0 %v5879_v55  ;;  %v5885_v49 = vld [vmem:[#allocation60_spill] sm:$0xff] }
 0x4fd   :  { %3981 = vmatprep.subr.mxu1 %v5880_v33  ;;  %2036 = vmatprep.subr.mxu0 %v5881_v0  ;;  %v5920_v55 = vld [vmem:[#allocation88_spill] sm:$0xff]  ;;  %v5922_v0 = vld [vmem:[#allocation91_spill] sm:$0xff] }
 0x4fe   :  { %3982 = vmatpush3.msra.mxu1 %v5880_v33  ;;  %2037 = vmatpush1.msra.mxu0 %v5882_v58  ;;  %v5921_v33 = vld [vmem:[#allocation90_spill] sm:$0xff]  ;;  %v5923_v58 = vld [vmem:[#allocation93_spill] sm:$0xff] }
 0x4ff   :  { %3983 = vmatprep.subr.mxu1 %v5883_v2  ;;  %1930 = vmatprep.mubr.f32.mxu0 %v5816_v34 }
 0x500   :  { %2038 = vmatprep.subr.mxu0 %v5884_v61  ;;  %3984 = vmatpush3.msra.mxu1 %v5883_v2  ;;  %v5924_v2 = vld [vmem:[#allocation94_spill] sm:$0xff]  ;;  %v5925_v61 = vld [vmem:[#allocation96_spill] sm:$0xff] }
 0x501   :  { %1931 = vmatmul.mubr.f32.gmra.mxu0 %v1859_v18  ;;  %3985 = vmatprep.subr.mxu1 %v5885_v49  ;;  %v4352_v18 = vld [vmem:[%s5675_s8 + $0x2] ss:$0 sm:$0xff] }
 0x502   :  { %2039 = vmatpush1.msra.mxu0 %v5886_v5  ;;  %3986 = vmatpush3.msra.mxu1 %v5885_v49  ;;  %v1717_v11 = vadd.f32 %v4352_v18, %v5379_v35  ;;  %v5897_v35 = vld [vmem:[#allocation67_spill] sm:$0xff]  ;;  %v5926_v49 = vld [vmem:[#allocation97_spill] sm:$0xff]  ;;  %v5927_v5 = vld [vmem:[#allocation98_spill] sm:$0xff] }
 0x503   :  { %2040 = vmatprep.subr.mxu0 %v5887_v37  ;;  %3987 = vmatprep.subr.mxu1 %v5888_v10  ;;  %v5929_v37 = vld [vmem:[#allocation100_spill] sm:$0xff] }
 0x504   :  { %2041 = vmatpush1.msra.mxu0 %v5889_v12  ;;  %3988 = vmatpush3.msra.mxu1 %v5888_v10 }
 0x505   :  { %2042 = vmatprep.subr.mxu0 %v5890_v17  ;;  %2076 = vmatprep.mubr.f32.mxu0 %v5816_v34 }
 0x506   :  { %2043 = vmatpush1.msra.mxu0 %v5891_v1  ;;  %3989 = vmatprep.subr.mxu1 %v5892_v16 }
 0x507   :  { %2077 = vmatmul.mubr.f32.vlgmr.msra.gmra.mxu0 %v5385_v36  ;;  %3990 = vmatpush3.msra.mxu1 %v5892_v16  ;;  %v5898_v36 = vld [vmem:[#allocation74_spill] sm:$0xff] }
 0x508   :  { %2170 = vmatprep.subr.mxu0 %v5893_v38  ;;  %3992 = vmatmul.mubr.f32.vlgmr.msra.gmra.mxu1 %v1717_v11 }
 0x509   :  { %2171 = vmatpush1.msra.mxu0 %v5894_v39  ;;  %3994 = vmatprep.subr.mxu1 %v5895_v40 }
 0x50a   :  { %2172 = vmatprep.subr.mxu0 %v5896_v45  ;;  %3995 = vmatpush3.msra.mxu1 %v5895_v40 }
 0x50b   :  { %4026 = vmatprep.mubr.f32.mxu1 %v5336_v23  ;;  %2082 = vmatprep.mubr.f32.mxu0 %v5816_v34 }
 0x50c   :  { %2173 = vmatpush1.msra.mxu0 %v5897_v35  ;;  %3996 = vmatprep.subr.mxu1 %v5898_v36 }
 0x50d   :  { %2083 = vmatmul.mubr.f32.gmra.mxu0 %v1717_v11  ;;  %2174 = vmatprep.subr.mxu0 %v5899_v48 }
 0x50e   :  { %3997 = vmatpush3.msra.mxu1 %v5898_v36  ;;  %2175 = vmatpush1.msra.mxu0 %v5900_v50 }
 0x50f   :  { %3998 = vmatprep.subr.mxu1 %v5901_v51  ;;  %2176 = vmatprep.subr.mxu0 %v5902_v53 }
 0x510   :  { %3999 = vmatpush3.msra.mxu1 %v5901_v51  ;;  %2177 = vmatpush1.msra.mxu0 %v5903_v54 }
 0x511   :  { %4000 = vmatprep.subr.mxu1 %v5904_v57  ;;  %2178 = vmatprep.subr.mxu0 %v5905_v60 }
 0x512   :  { %4001 = vmatpush3.msra.mxu1 %v5904_v57  ;;  %2179 = vmatpush1.msra.mxu0 %v5906_v19 }
 0x513   :  { %4002 = vmatprep.subr.mxu1 %v5907_v9  ;;  %2180 = vmatprep.subr.mxu0 %v5908_v4 }
 0x514   :  { %4003 = vmatpush3.msra.mxu1 %v5907_v9  ;;  %2181 = vmatpush1.msra.mxu0 %v5909_v7 }
 0x515   :  { %4004 = vmatprep.subr.mxu1 %v5910_v21  ;;  %2182 = vmatprep.subr.mxu0 %v5911_v20 }
 0x516   :  { %4005 = vmatpush3.msra.mxu1 %v5910_v21  ;;  %2183 = vmatpush1.msra.mxu0 %v5912_v22 }
 0x517   :  { %4006 = vmatprep.subr.mxu1 %v5913_v3  ;;  %2184 = vmatprep.subr.mxu0 %v5914_v15 }
 0x518   :  { %4007 = vmatpush3.msra.mxu1 %v5913_v3  ;;  %2185 = vmatpush1.msra.mxu0 %v5915_v25 }
 0x519   :  { %4008 = vmatprep.subr.mxu1 %v5916_v26  ;;  %2186 = vmatprep.subr.mxu0 %v5917_v29 }
 0x51a   :  { %4009 = vmatpush3.msra.mxu1 %v5916_v26  ;;  %2187 = vmatpush1.msra.mxu0 %v5918_v32 }
 0x51b   :  { %4010 = vmatprep.subr.mxu1 %v5919_v63  ;;  %2188 = vmatprep.subr.mxu0 %v5920_v55 }
 0x51c   :  { %4011 = vmatpush3.msra.mxu1 %v5919_v63  ;;  %2189 = vmatpush1.msra.mxu0 %v5921_v33 }
 0x51d   :  { %4012 = vmatprep.subr.mxu1 %v5172_v62  ;;  %2190 = vmatprep.subr.mxu0 %v5922_v0 }
 0x51e   :  { %4013 = vmatpush3.msra.mxu1 %v5172_v62  ;;  %2191 = vmatpush1.msra.mxu0 %v5923_v58  ;;  %v5928_v62 = vld [vmem:[#allocation99_spill] sm:$0xff] }
 0x51f   :  { %4014 = vmatprep.subr.mxu1 %v5182_v42  ;;  %2192 = vmatprep.subr.mxu0 %v5924_v2 }
 0x520   :  { %4015 = vmatpush3.msra.mxu1 %v5182_v42  ;;  %2193 = vmatpush1.msra.mxu0 %v5925_v61  ;;  %v5930_v42 = vld [vmem:[#allocation101_spill] sm:$0xff] }
 0x521   :  { %4016 = vmatprep.subr.mxu1 %v5192_v46  ;;  %2194 = vmatprep.subr.mxu0 %v5926_v49 }
 0x522   :  { %4017 = vmatpush3.msra.mxu1 %v5192_v46  ;;  %2195 = vmatpush1.msra.mxu0 %v5927_v5 }
 0x523   :  { %4018 = vmatprep.subr.mxu1 %v5202_v56  ;;  %2196 = vmatprep.subr.mxu0 %v5928_v62 }
 0x524   :  { %4019 = vmatpush3.msra.mxu1 %v5202_v56  ;;  %2197 = vmatpush1.msra.mxu0 %v5929_v37 }
 0x525   :  { %4020 = vmatprep.subr.mxu1 %v5210_v47  ;;  %2198 = vmatprep.subr.mxu0 %v5189_v52 }
 0x526   :  { %4021 = vmatpush3.msra.mxu1 %v5210_v47  ;;  %2199 = vmatpush1.msra.mxu0 %v5930_v42 }
 0x527   :  { %4022 = vmatprep.subr.mxu1 %v5216_v44  ;;  %2200 = vmatprep.subr.mxu0 %v5199_v59 }
 0x528   :  { %4023 = vmatpush3.msra.mxu1 %v5216_v44  ;;  %2201 = vmatpush1.msra.mxu0 %v5205_v43 }
 0x529   :  { %2234 = vmatprep.mubr.f32.mxu0 %v5816_v34  ;;  %4024 = vmatprep.subr.mxu1 %v5222_v41 }
 0x52a   :  { %2235 = vmatmul.mubr.f32.vlgmr.msra.gmra.mxu0 %v5336_v23  ;;  %4025 = vmatpush3.msra.mxu1 %v5222_v41 }
 0x52b   :  { %4027 = vmatmul.mubr.f32.vlgmr.msra.gmra.mxu1 %v5340_v28  ;;  %2240 = vmatprep.mubr.f32.mxu0 %v5816_v34 }
 0x52c   :  { %4029 = vmatprep.subr.mxu1 %v5816_v34  ;;  %4031 = vmatprep.mubr.msk.f32.mxu1 %vm4582_vm0, %v5816_v34 }
 0x52d   :  { %4034 = vmatprep.subr.mxu0 %v5816_v34 }
 0x52e   :  { %2241 = vmatmul.mubr.f32.gmra.mxu0 %v5340_v28 }
 0x52f   :  { %4036 = vmatprep.mubr.msk.f32.mxu0 %vm4582_vm0, %v5816_v34 }
 0x5a5   :  { %v1926_v59 = vpop.f32.mrf.mxu0 }
 0x5a6   :  { %v3958_v19 = vpop.f32.mrf.mxu1 }
 0x5a7   :  { %v1928_v44 = vpop.f32.mrf.mxu0 }
 0x5a8   :  { %v2003_v7 = vpop.f32.mrf.mxu1 }
 0x5c1   :  { %v1932_v46 = vpop.f32.mrf.mxu0 }
 0x5c3   :  { %v1934_v47 = vpop.f32.mrf.mxu0 }
 0x5c7   :  { %v2078_v41 = vpop.f32.mrf.mxu0 }
 0x5c8   :  { %v2079_v52 = vadd.f32 %v2078_v41, %v1926_v59  ;;  %v3993_v20 = vpop.f32.mrf.mxu1 }
 0x5c9   :  { %v2080_v56 = vpop.f32.mrf.mxu0  ;;  %v2161_v55 = vadd.f32 %v3993_v20, %v3958_v19  ;;  %v206_v19 = vld [vmem:[#allocation13 + $0x1b8] sm:$0xff] }
 0x5ca   :  { %v2164_v17 = vadd.f32 %v2079_v52, %v5309_v13  ;;  %v2081_v36 = vadd.f32 %v2080_v56, %v1928_v44  ;;  %v2155_v25 = vpop.f32.mrf.mxu1  ;;  %v202_v20 = vld [vmem:[#allocation13 + $0x198] sm:$0xff] }
 0x5cb   :  { %v2169_v62 = vadd.f32 %v2161_v55, %v5331_v31 }
 0x5cc   :  { %v2165_v53 = vadd.f32 %v2081_v36, %v5321_v30  ;;  %v210_v36 = vld [vmem:[#allocation13 + $0x1d8] sm:$0xff] }
 0x5cd   :  { %v2084_v43 = vpop.f32.mrf.mxu0 }
 0x5ce   :  { %v2085_v18 = vadd.f32 %v2084_v43, %v1932_v46 }
 0x5cf   :  { %v2086_v10 = vpop.f32.mrf.mxu0 }
 0x5d0   :  { %v2167_v39 = vadd.f32 %v2085_v18, %v5309_v13  ;;  %v2087_v54 = vadd.f32 %v2086_v10, %v1934_v47  ;;  %v214_v18 = vld [vmem:[#allocation13 + $0x1f8] sm:$0xff] }
 0x5d2   :  { %v2168_v13 = vadd.f32 %v2087_v54, %v5321_v30  ;;  %v190_v54 = vld [vmem:[#allocation13 + $0x140] sm:$0xff] }
 0x5ea   :  { %v2236_v12 = vpop.f32.mrf.mxu0 }
 0x5eb   :  { %v2237_v11 = vadd.f32 %v2236_v12, %v5312_v14  ;;  %v4028_v26 = vpop.f32.mrf.mxu1 }
 0x5ec   :  { %v2238_v1 = vpop.f32.mrf.mxu0  ;;  %v2319_v2 = vadd.f32 %v4028_v26, %v5328_v24  ;;  %v184_v26 = vld [vmem:[#allocation13 + $0x110] sm:$0xff] }
 0x5ed   :  { %v2322_v16 = vadd.f32 %v2237_v11, %v2164_v17  ;;  %v2239_v50 = vadd.f32 %v2238_v1, %v5319_v27  ;;  %v2313_v29 = vpop.f32.mrf.mxu1  ;;  %v2363_v17 = vld [vmem:[#allocation8 + $0x8] sm:$0xff]  ;;  %v2513_v11 = vld [vmem:[#allocation10 + $0x1] sm:$0x1] }
 0x5ee   :  { %v2242_v38 = vpop.f32.mrf.mxu0  ;;  %v2314_v30 = vadd.f32 %v2313_v29, %v5328_v24  ;;  %v2362_v24 = vld [vmem:[#allocation8] sm:$0xff] }
 0x5ef   :  { %v3326_v40 = vmul.f32 -1.442695, %v2322_v16  ;;  %v2243_v45 = vadd.f32 %v2242_v38, %v5312_v14  ;;  %v2336_v57 = vadd.f32 %v2239_v50, %v2165_v53  ;;  %v196_v1 = vld [vmem:[#allocation13 + $0x170] sm:$0xff]  ;;  %v195_v38 = vld [vmem:[#allocation13 + $0x168] sm:$0xff] }
 0x5f0   :  { %v2244_v51 = vpop.f32.mrf.mxu0  ;;  %v213_v16 = vld [vmem:[#allocation13 + $0x1f0] sm:$0xff]  ;;  %v208_v53 = vld [vmem:[#allocation13 + $0x1c8] sm:$0xff] }
 0x5f1   :  { %4273 = vpow2.f32 %v3326_v40  ;;  %v2323_v35 = vadd.f32 %v2243_v45, %v2167_v39  ;;  %v2245_v60 = vadd.f32 %v2244_v51, %v5319_v27  ;;  %v3328_v9 = vmul.f32 -1.442695, %v2336_v57  ;;  %v212_v39 = vld [vmem:[#allocation13 + $0x1e8] sm:$0xff]  ;;  %v194_v40 = vld [vmem:[#allocation13 + $0x160] sm:$0xff]  ;;  %v209_v50 = vld [vmem:[#allocation13 + $0x1d0] sm:$0xff] }
 0x5f2   :  { %v2156_v27 = vadd.f32 %v2155_v25, %v2003_v7  ;;  %v211_v45 = vld [vmem:[#allocation13 + $0x1e0] sm:$0xff]  ;;  %v191_v51 = vld [vmem:[#allocation13 + $0x148] sm:$0xff]  ;;  %v185_v25 = vld [vmem:[#allocation13 + $0x118] sm:$0xff] }
 0x5f3   :  { %v3327_v48 = vmul.f32 -1.442695, %v2323_v35  ;;  %v2337_v4 = vadd.f32 %v2245_v60, %v2168_v13  ;;  %v193_v35 = vld [vmem:[#allocation13 + $0x158] sm:$0xff]  ;;  %v207_v57 = vld [vmem:[#allocation13 + $0x1c0] sm:$0xff]  ;;  %v188_v13 = vld [vmem:[#allocation13 + $0x130] sm:$0xff] }
 0x5f4   :  { %v2166_v33 = vadd.f32 %v2156_v27, %v5331_v31  ;;  %v189_v60 = vld [vmem:[#allocation13 + $0x138] sm:$0xff]  ;;  %v186_v7 = vld [vmem:[#allocation13 + $0x120] sm:$0xff]  ;;  %v183_v29 = vld [vmem:[#allocation13 + $0x108] sm:$0xff] }
 0x5f5   :  { %4275 = vpow2.f32 %v3327_v48  ;;  %v3329_v22 = vmul.f32 -1.442695, %v2337_v4  ;;  %v192_v48 = vld [vmem:[#allocation13 + $0x150] sm:$0xff]  ;;  %v187_v4 = vld [vmem:[#allocation13 + $0x128] sm:$0xff]  ;;  %v182_v27 = vld [vmem:[#allocation13 + $0x100] sm:$0xff] }
 0x5f6   :  { %4277 = vpow2.f32 %v3328_v9  ;;  %v205_v9 = vld [vmem:[#allocation13 + $0x1b0] sm:$0xff] }
 0x5fe   :  { %v4274_v14 = vpop.eup %4273 }
 0x5ff   :  { %v2330_v21 = vadd.f32 1.0, %v4274_v14  ;;  %v204_v14 = vld [vmem:[#allocation13 + $0x1a8] sm:$0xff] }
 0x601   :  { %4279 = vrcp.f32 %v2330_v21  ;;  %v203_v21 = vld [vmem:[#allocation13 + $0x1a0] sm:$0xff] }
 0x602   :  { %v4276_v3 = vpop.eup %4275  ;;  %4281 = vpow2.f32 %v3329_v22  ;;  %v201_v22 = vld [vmem:[#allocation13 + $0x190] sm:$0xff] }
 0x603   :  { %v2331_v15 = vadd.f32 1.0, %v4276_v3  ;;  %v4278_v32 = vpop.eup %4277  ;;  %v200_v3 = vld [vmem:[#allocation13 + $0x188] sm:$0xff] }
 0x604   :  { %v2344_v61 = vadd.f32 1.0, %v4278_v32 }
 0x605   :  { %4283 = vrcp.f32 %v2331_v15  ;;  %v199_v15 = vld [vmem:[#allocation13 + $0x180] sm:$0xff] }
 0x60e   :  { %v4280_v63 = vpop.eup %4279 }
 0x60f   :  { %v2350_v0 = vmul.f32 %v4280_v63, %v2314_v30  ;;  %v4282_v58 = vpop.eup %4281 }
 0x610   :  { %v2345_v42 = vadd.f32 1.0, %v4282_v58 }
 0x611   :  { %v2352_v49 = vadd.f32 %v2350_v0, %v2166_v33 }
 0x612   :  { %v4284_v5 = vpop.eup %4283 }
 0x613   :  { %4285 = vtanh.f32 %v2352_v49  ;;  %v2351_v37 = vmul.f32 %v4284_v5, %v2319_v2  ;;  %v231_v5 = vld [vmem:[#allocation13 + $0x278] sm:$0xff] }
 0x614   :  { %4287 = vrcp.f32 %v2344_v61 }
 0x615   :  { %v2353_v59 = vadd.f32 %v2351_v37, %v2169_v62  ;;  %v230_v62 = vld [vmem:[#allocation13 + $0x270] sm:$0xff]  ;;  %v229_v37 = vld [vmem:[#allocation13 + $0x268] sm:$0xff] }
 0x617   :  { %4289 = vtanh.f32 %v2353_v59  ;;  %v227_v59 = vld [vmem:[#allocation13 + $0x258] sm:$0xff] }
 0x618   :  { %4291 = vrcp.f32 %v2345_v42  ;;  %v228_v42 = vld [vmem:[#allocation13 + $0x260] sm:$0xff] }
 0x620   :  { %v4286_v44 = vpop.eup %4285 }
 0x621   :  { %v2356_v46 = vsub.f32 %v5336_v23, %v4286_v44  ;;  %v4288_v47 = vpop.eup %4287  ;;  %v2512_v23 = vld [vmem:[#allocation10] sm:$0x1] }
 0x623   :  { %v2358_v41 = vmul.f32 %v4288_v47, %v2356_v46  ;;  %v225_v46 = vld [vmem:[#allocation13 + $0x248] sm:$0xff]  ;;  %v224_v47 = vld [vmem:[#allocation13 + $0x240] sm:$0xff] }
 0x624   :  { %v4290_v56 = vpop.eup %4289 }
 0x625   :  { %v2360_v43 = vadd.f32 %v4286_v44, %v2358_v41  ;;  %v2357_v52 = vsub.f32 %v5340_v28, %v4290_v56  ;;  %v4292_v10 = vpop.eup %4291  ;;  %v197_v28 = vld [vmem:[#allocation13 + $0x178] sm:$0xff]  ;;  %v226_v44 = vld [vmem:[#allocation13 + $0x250] sm:$0xff] }
 0x626   :  { %v223_v41 = vld [vmem:[#allocation13 + $0x238] sm:$0xff] }
 0x627   :  { %4030 = vmatpush3.msra.mxu1 %v2360_v43  ;;  %v2359_v31 = vmul.f32 %v4292_v10, %v2357_v52  ;;  %v219_v52 = vld [vmem:[#allocation13 + $0x218] sm:$0xff]  ;;  %v218_v10 = vld [vmem:[#allocation13 + $0x210] sm:$0xff] }
 0x628   :  { %4039 = vmatprep.subr.mxu1 %v5816_v34  ;;  %4032 = vmatmul.mubr.msk.f32.vlgmr.msra.gmra.mxu1 %vm587_vm1, %v2362_v24  ;;  %v220_v24 = vld [vmem:[#allocation13 + $0x220] sm:$0xff] }
 0x629   :  { %4040 = vmatpush3.msra.mxu1 %v2360_v43  ;;  %v2361_v12 = vadd.f32 %v4290_v56, %v2359_v31  ;;  %4041 = vmatprep.mubr.msk.f32.mxu1 %vm4582_vm0, %v5816_v34  ;;  %v222_v56 = vld [vmem:[#allocation13 + $0x230] sm:$0xff]  ;;  %v221_v43 = vld [vmem:[#allocation13 + $0x228] sm:$0xff] }
 0x62a   :  { %4049 = vmatprep.subr.mxu1 %v5816_v34  ;;  %v217_v31 = vld [vmem:[#allocation13 + $0x208] sm:$0xff] }
 0x62b   :  { %4035 = vmatpush3.msra.mxu0 %v2361_v12 }
 0x62c   :  { %4037 = vmatmul.mubr.msk.f32.vlgmr.msra.gmra.mxu0 %vm587_vm1, %v2363_v17  ;;  %4044 = vmatprep.subr.mxu0 %v5816_v34  ;;  %v4583_v17 = vmov 1966171168  }
 0x62d   :  { %4045 = vmatpush3.msra.mxu0 %v2361_v12  ;;  %4046 = vmatprep.mubr.msk.f32.mxu0 %vm4582_vm0, %v5816_v34  ;;  %v216_v12 = vld [vmem:[#allocation13 + $0x200] sm:$0xff] }
 0x62e   :  { %4042 = vmatmul.mubr.msk.f32.vlgmr.msra.gmra.mxu1 %vm587_vm1, %v2512_v23  ;;  %4084 = vmatprep.subr.mxu0 %v214_v18  ;;  %v2821_v23 = vunpack.c.l.s4 %v4583_v17  ;;  %v253_v17 = vld [vmem:[#allocation13 + $0x318] sm:$0xff] }
 0x62f   :  { %4050 = vmatpush3.msra.mxu1 %v197_v28  ;;  %4081 = vmatprep.mubr.msk.f32.mxu1 %vm4582_vm0, %v5816_v34  ;;  %v3334_v28 = vld [vmem:[%s5675_s8 + $0x4] ss:$0 sm:$0xff] }
 0x630   :  { %4047 = vmatmul.mubr.msk.f32.vlgmr.msra.gmra.mxu0 %vm587_vm1, %v2513_v11  ;;  %4051 = vmatprep.subr.mxu1 %v5816_v34 }
 0x631   :  { %4085 = vmatpush3.msra.mxu0 %v214_v18  ;;  %4052 = vmatpush3.msra.mxu1 %v196_v1  ;;  %v2822_v18 = vunpack.c.0.s8 %v2821_v23  ;;  %v252_v23 = vld [vmem:[#allocation13 + $0x310] sm:$0xff] }
 0x632   :  { %4086 = vmatprep.subr.mxu0 %v213_v16  ;;  %4053 = vmatprep.subr.mxu1 %v5816_v34 }
 0x633   :  { %4087 = vmatpush3.msra.mxu0 %v213_v16  ;;  %4054 = vmatpush3.msra.mxu1 %v195_v38  ;;  %v5594_v11 = vsub.s32 %v2822_v18, %v5297_v6  ;;  %v251_v18 = vld [vmem:[#allocation13 + $0x308] sm:$0xff] }
 0x634   :  { %4088 = vmatprep.subr.mxu0 %v212_v39  ;;  %4055 = vmatprep.subr.mxu1 %v5816_v34 }
 0x635   :  { %4089 = vmatpush3.msra.mxu0 %v212_v39  ;;  %4056 = vmatpush3.msra.mxu1 %v194_v40 }
 0x636   :  { %4090 = vmatprep.subr.mxu0 %v211_v45  ;;  %4057 = vmatprep.subr.mxu1 %v5816_v34 }
 0x637   :  { %4091 = vmatpush3.msra.mxu0 %v211_v45  ;;  %4058 = vmatpush3.msra.mxu1 %v193_v35 }
 0x638   :  { %4092 = vmatprep.subr.mxu0 %v210_v36  ;;  %4059 = vmatprep.subr.mxu1 %v5816_v34 }
 0x639   :  { %4093 = vmatpush3.msra.mxu0 %v210_v36  ;;  %4060 = vmatpush3.msra.mxu1 %v192_v48  ;;  %v3335_v48 = vld [vmem:[%s5675_s8 + $0x5] ss:$0 sm:$0xff] }
 0x63a   :  { %4094 = vmatprep.subr.mxu0 %v209_v50  ;;  %4061 = vmatprep.subr.mxu1 %v5816_v34 }
 0x63b   :  { %4095 = vmatpush3.msra.mxu0 %v209_v50  ;;  %4062 = vmatpush3.msra.mxu1 %v191_v51 }
 0x63c   :  { %4096 = vmatprep.subr.mxu0 %v208_v53  ;;  %4063 = vmatprep.subr.mxu1 %v5816_v34 }
 0x63d   :  { %4097 = vmatpush3.msra.mxu0 %v208_v53  ;;  %4064 = vmatpush3.msra.mxu1 %v190_v54 }
 0x63e   :  { %4098 = vmatprep.subr.mxu0 %v207_v57  ;;  %4065 = vmatprep.subr.mxu1 %v5816_v34 }
 0x63f   :  { %4099 = vmatpush3.msra.mxu0 %v207_v57  ;;  %4066 = vmatpush3.msra.mxu1 %v189_v60 }
 0x640   :  { %4100 = vmatprep.subr.mxu0 %v206_v19  ;;  %4067 = vmatprep.subr.mxu1 %v5816_v34 }
 0x641   :  { %4101 = vmatpush3.msra.mxu0 %v206_v19  ;;  %4068 = vmatpush3.msra.mxu1 %v188_v13 }
 0x642   :  { %4102 = vmatprep.subr.mxu0 %v205_v9  ;;  %4069 = vmatprep.subr.mxu1 %v5816_v34 }
 0x643   :  { %4103 = vmatpush3.msra.mxu0 %v205_v9  ;;  %4070 = vmatpush3.msra.mxu1 %v187_v4 }
 0x644   :  { %4104 = vmatprep.subr.mxu0 %v204_v14  ;;  %4071 = vmatprep.subr.mxu1 %v5816_v34 }
 0x645   :  { %4105 = vmatpush3.msra.mxu0 %v204_v14  ;;  %4072 = vmatpush3.msra.mxu1 %v186_v7 }
 0x646   :  { %4106 = vmatprep.subr.mxu0 %v203_v21  ;;  %4073 = vmatprep.subr.mxu1 %v5816_v34 }
 0x647   :  { %4107 = vmatpush3.msra.mxu0 %v203_v21  ;;  %4074 = vmatpush3.msra.mxu1 %v185_v25  ;;  %v244_v25 = vld [vmem:[#allocation13 + $0x2d8] sm:$0xff] }
 0x648   :  { %4108 = vmatprep.subr.mxu0 %v202_v20  ;;  %4075 = vmatprep.subr.mxu1 %v5816_v34 }
 0x649   :  { %4109 = vmatpush3.msra.mxu0 %v202_v20  ;;  %4076 = vmatpush3.msra.mxu1 %v184_v26  ;;  %v243_v26 = vld [vmem:[#allocation13 + $0x2d0] sm:$0xff] }
 0x64a   :  { %4110 = vmatprep.subr.mxu0 %v201_v22  ;;  %4077 = vmatprep.subr.mxu1 %v5816_v34 }
 0x64b   :  { %4111 = vmatpush3.msra.mxu0 %v201_v22  ;;  %4078 = vmatpush3.msra.mxu1 %v183_v29  ;;  %v247_v22 = vld [vmem:[#allocation13 + $0x2f0] sm:$0xff]  ;;  %v242_v29 = vld [vmem:[#allocation13 + $0x2c8] sm:$0xff] }
 0x64c   :  { %4112 = vmatprep.subr.mxu0 %v200_v3  ;;  %4079 = vmatprep.subr.mxu1 %v5816_v34 }
 0x64d   :  { %4113 = vmatpush3.msra.mxu0 %v200_v3  ;;  %4080 = vmatpush3.msra.mxu1 %v182_v27  ;;  %v246_v3 = vld [vmem:[#allocation13 + $0x2e8] sm:$0xff]  ;;  %v241_v27 = vld [vmem:[#allocation13 + $0x2c0] sm:$0xff] }
 0x64e   :  { %4114 = vmatprep.subr.mxu0 %v199_v15  ;;  %4119 = vmatprep.subr.mxu1 %v231_v5 }
 0x64f   :  { %4115 = vmatpush3.msra.mxu0 %v199_v15  ;;  %v245_v15 = vld [vmem:[#allocation13 + $0x2e0] sm:$0xff] }
 0x650   :  { %4154 = vmatprep.subr.mxu0 %v5816_v34 }
 0x6e8   :  { %v5575_v32 = vpop.f32.mrf.mxu1 }
 0x6e9   :  { %2510 = vst [vmem:[#allocation16] sm:$0xff] %v5575_v32  ;;  %4116 = vmatprep.mubr.f32.mxu0 %v5575_v32 }
 0x6ea   :  { %v4033_v30 = vpop.f32.mrf.mxu1 }
 0x6eb   :  { %v240_v30 = vld [vmem:[#allocation13 + $0x2b8] sm:$0xff] }
 0x6ec   :  { %v5579_v63 = vpop.f32.mrf.mxu0 }
 0x6ed   :  { %2511 = vst [vmem:[#allocation16 + $0x8] sm:$0xff] %v5579_v63  ;;  %4117 = vmatmul.mubr.f32.vlgmr.msra.gmra.mxu0 %v5579_v63 }
 0x6ee   :  { %v4038_v55 = vpop.f32.mrf.mxu0  ;;  %v2583_v33 = vpop.f32.mrf.mxu1  ;;  %4156 = vmatprep.mubr.msk.f32.mxu0 %vm4582_vm0, %v5816_v34 }
 0x6ef   :  { %v239_v55 = vld [vmem:[#allocation13 + $0x2b0] sm:$0xff] }
 0x6f0   :  { %v2656_v0 = vpop.f32.mrf.mxu0  ;;  %v4043_v58 = vpop.f32.mrf.mxu1 }
 0x6f1   :  { %v2666_v2 = vrot.slane %v2656_v0, 7  ;;  %v237_v0 = vld [vmem:[#allocation13 + $0x2a0] sm:$0xff] }
 0x6f2   :  { %v4048_v61 = vpop.f32.mrf.mxu0 }
 0x6f3   :  { %v5586_v49 = vsel %vm2667_vm2, %v2666_v2, %v2583_v33  ;;  %v238_v33 = vld [vmem:[#allocation13 + $0x2a8] sm:$0xff]  ;;  %v3338_v2 = vld [vmem:[%s5675_s8 + $0x6] ss:$0 sm:$0xff] }
 0x6f4   :  { %4082 = vmatmul.mubr.f32.vlgmr.msra.gmra.mxu1 %v5586_v49 }
 0x6f5   :  { %4120 = vmatpush3.msra.mxu1 %v231_v5 }
 0x6f6   :  { %4121 = vmatprep.subr.mxu1 %v230_v62 }
 0x6f7   :  { %4122 = vmatpush3.msra.mxu1 %v230_v62 }
 0x6f8   :  { %4123 = vmatprep.subr.mxu1 %v229_v37 }
 0x6f9   :  { %4124 = vmatpush3.msra.mxu1 %v229_v37 }
 0x6fa   :  { %4125 = vmatprep.subr.mxu1 %v228_v42 }
 0x6fb   :  { %4126 = vmatpush3.msra.mxu1 %v228_v42  ;;  %v2947_v42 = vld [vmem:[#allocation11] sm:$0x1] }
 0x6fc   :  { %4127 = vmatprep.subr.mxu1 %v227_v59 }
 0x6fd   :  { %4128 = vmatpush3.msra.mxu1 %v227_v59 }
 0x6fe   :  { %4129 = vmatprep.subr.mxu1 %v226_v44 }
 0x6ff   :  { %4130 = vmatpush3.msra.mxu1 %v226_v44  ;;  %v2948_v44 = vld [vmem:[#allocation11 + $0x1] sm:$0x1] }
 0x700   :  { %4131 = vmatprep.subr.mxu1 %v225_v46 }
 0x701   :  { %4132 = vmatpush3.msra.mxu1 %v225_v46  ;;  %v265_v46 = vld [vmem:[#allocation13 + $0x378] sm:$0xff] }
 0x702   :  { %4133 = vmatprep.subr.mxu1 %v224_v47 }
 0x703   :  { %4134 = vmatpush3.msra.mxu1 %v224_v47  ;;  %v264_v47 = vld [vmem:[#allocation13 + $0x370] sm:$0xff] }
 0x704   :  { %4135 = vmatprep.subr.mxu1 %v223_v41 }
 0x705   :  { %4136 = vmatpush3.msra.mxu1 %v223_v41  ;;  %v261_v41 = vld [vmem:[#allocation13 + $0x358] sm:$0xff] }
 0x706   :  { %4137 = vmatprep.subr.mxu1 %v222_v56 }
 0x707   :  { %4138 = vmatpush3.msra.mxu1 %v222_v56  ;;  %v260_v56 = vld [vmem:[#allocation13 + $0x350] sm:$0xff] }
 0x708   :  { %4139 = vmatprep.subr.mxu1 %v221_v43 }
 0x709   :  { %4140 = vmatpush3.msra.mxu1 %v221_v43  ;;  %v259_v43 = vld [vmem:[#allocation13 + $0x348] sm:$0xff] }
 0x70a   :  { %4141 = vmatprep.subr.mxu1 %v220_v24 }
 0x70b   :  { %4142 = vmatpush3.msra.mxu1 %v220_v24  ;;  %v258_v24 = vld [vmem:[#allocation13 + $0x340] sm:$0xff] }
 0x70c   :  { %4143 = vmatprep.subr.mxu1 %v219_v52 }
 0x70d   :  { %4144 = vmatpush3.msra.mxu1 %v219_v52  ;;  %v257_v52 = vld [vmem:[#allocation13 + $0x338] sm:$0xff] }
 0x70e   :  { %4145 = vmatprep.subr.mxu1 %v218_v10 }
 0x70f   :  { %4146 = vmatpush3.msra.mxu1 %v218_v10  ;;  %v256_v10 = vld [vmem:[#allocation13 + $0x330] sm:$0xff] }
 0x710   :  { %4147 = vmatprep.subr.mxu1 %v217_v31 }
 0x711   :  { %4148 = vmatpush3.msra.mxu1 %v217_v31  ;;  %v255_v31 = vld [vmem:[#allocation13 + $0x328] sm:$0xff] }
 0x712   :  { %4149 = vmatprep.subr.mxu1 %v216_v12 }
 0x713   :  { %4150 = vmatpush3.msra.mxu1 %v216_v12  ;;  %v254_v12 = vld [vmem:[#allocation13 + $0x320] sm:$0xff] }
 0x714   :  { %4199 = vmatprep.subr.mxu1 %v5816_v34 }
 0x7ad   :  { %v4118_v1 = vpop.f32.mrf.mxu0 }
 0x7ae   :  { %v2816_v53 = vadd.f32 %v4118_v1, %v3335_v48  ;;  %v236_v1 = vld [vmem:[#allocation13 + $0x298] sm:$0xff] }
 0x7af   :  { %v2810_v45 = vpop.f32.mrf.mxu0 }
 0x7b0   :  { %v2811_v50 = vadd.f32 %v3335_v48, %v2810_v45 }
 0x7b4   :  { %v2736_v16 = vpop.f32.mrf.mxu1 }
 0x7b5   :  { %v2737_v38 = vadd.f32 %v3334_v28, %v2736_v16  ;;  %v250_v28 = vld [vmem:[#allocation13 + $0x300] sm:$0xff]  ;;  %v235_v16 = vld [vmem:[#allocation13 + $0x290] sm:$0xff] }
 0x7b6   :  { %v4083_v39 = vpop.f32.mrf.mxu1 }
 0x7b7   :  { %v2826_v40 = vrot.slane %v2737_v38, %v5594_v11  ;;  %v234_v38 = vld [vmem:[#allocation13 + $0x288] sm:$0xff]  ;;  %v233_v39 = vld [vmem:[#allocation13 + $0x280] sm:$0xff] }
 0x7b9   :  { %v2827_v35 = vcombine.high %v2826_v40, %v2826_v40  ;;  %v2834_v36 = vrot.slane %v2826_v40, %v5594_v11 }
 0x7bb   :  { %v2841_v51 = vrot.slane %v2827_v35, %v5594_v11  ;;  %v2845_v6 = vrot.slane %v2834_v36, %v5300_v8 }
 0x7bd   :  { %v2849_v54 = vrot.slane %v2841_v51, %v5300_v8  ;;  %v2852_v57 = vadd.f32 %v2845_v6, %v2811_v50  ;;  %v248_v8 = vld [vmem:[#allocation13 + $0x2f8] sm:$0xff] }
 0x7bf   :  { %v2853_v60 = vadd.f32 %v2849_v54, %v2816_v53  ;;  %v3336_v19 = vmul.f32 -1.442695, %v2852_v57 }
 0x7c1   :  { %4293 = vpow2.f32 %v3336_v19  ;;  %v3337_v13 = vmul.f32 -1.442695, %v2853_v60 }
 0x7c3   :  { %4295 = vpow2.f32 %v3337_v13 }
 0x7ce   :  { %v4294_v9 = vpop.eup %4293 }
 0x7cf   :  { %v2860_v4 = vadd.f32 1.0, %v4294_v9 }
 0x7d0   :  { %v4296_v14 = vpop.eup %4295 }
 0x7d1   :  { %v2861_v7 = vadd.f32 1.0, %v4296_v14  ;;  %4297 = vrcp.f32 %v2860_v4 }
 0x7d3   :  { %4299 = vrcp.f32 %v2861_v7 }
 0x7de   :  { %v4298_v21 = vpop.eup %4297 }
 0x7df   :  { %4151 = vmatprep.mubr.f32.mxu1 %v4298_v21 }
 0x7e0   :  { %v4300_v20 = vpop.eup %4299 }
 0x7e1   :  { %4152 = vmatmul.mubr.f32.vlgmr.msra.gmra.mxu1 %v4300_v20 }
 0x7e2   :  { %4231 = vmatprep.mubr.msk.f32.mxu1 %vm4582_vm0, %v5816_v34  ;;  %4200 = vmatpush3.msra.mxu1 %v248_v8 }
 0x7e3   :  { %4201 = vmatprep.subr.mxu1 %v5816_v34 }
 0x7e4   :  { %4202 = vmatpush3.msra.mxu1 %v247_v22 }
 0x7e5   :  { %4203 = vmatprep.subr.mxu1 %v5816_v34 }
 0x7e6   :  { %4204 = vmatpush3.msra.mxu1 %v246_v3 }
 0x7e7   :  { %4205 = vmatprep.subr.mxu1 %v5816_v34 }
 0x7e8   :  { %4206 = vmatpush3.msra.mxu1 %v245_v15 }
 0x7e9   :  { %4207 = vmatprep.subr.mxu1 %v5816_v34 }
 0x7ea   :  { %4208 = vmatpush3.msra.mxu1 %v244_v25 }
 0x7eb   :  { %4209 = vmatprep.subr.mxu1 %v5816_v34 }
 0x7ec   :  { %4210 = vmatpush3.msra.mxu1 %v243_v26 }
 0x7ed   :  { %4211 = vmatprep.subr.mxu1 %v5816_v34 }
 0x7ee   :  { %4212 = vmatpush3.msra.mxu1 %v242_v29 }
 0x7ef   :  { %4213 = vmatprep.subr.mxu1 %v5816_v34 }
 0x7f0   :  { %4214 = vmatpush3.msra.mxu1 %v241_v27 }
 0x7f1   :  { %4215 = vmatprep.subr.mxu1 %v5816_v34 }
 0x7f2   :  { %4216 = vmatpush3.msra.mxu1 %v240_v30 }
 0x7f3   :  { %4217 = vmatprep.subr.mxu1 %v5816_v34 }
 0x7f4   :  { %4218 = vmatpush3.msra.mxu1 %v239_v55 }
 0x7f5   :  { %4219 = vmatprep.subr.mxu1 %v5816_v34 }
 0x7f6   :  { %4220 = vmatpush3.msra.mxu1 %v238_v33 }
 0x7f7   :  { %4221 = vmatprep.subr.mxu1 %v5816_v34 }
 0x7f8   :  { %4222 = vmatpush3.msra.mxu1 %v237_v0 }
 0x7f9   :  { %4223 = vmatprep.subr.mxu1 %v5816_v34 }
 0x7fa   :  { %4224 = vmatpush3.msra.mxu1 %v236_v1 }
 0x7fb   :  { %4225 = vmatprep.subr.mxu1 %v5816_v34 }
 0x7fc   :  { %4226 = vmatpush3.msra.mxu1 %v235_v16 }
 0x7fd   :  { %4227 = vmatprep.subr.mxu1 %v5816_v34 }
 0x7fe   :  { %4228 = vmatpush3.msra.mxu1 %v234_v38 }
 0x7ff   :  { %4229 = vmatprep.subr.mxu1 %v5816_v34 }
 0x800   :  { %4230 = vmatpush3.msra.mxu1 %v233_v39 }
 0x8a1   :  { %v4153_v58 = vpop.f32.mrf.mxu1 }
 0x8a2   :  { %v2942_v5 = vadd.f32 %v4153_v58, %v3338_v2 }
 0x8a3   :  { %v2936_v61 = vpop.f32.mrf.mxu1 }
 0x8a4   :  { %v2937_v62 = vadd.f32 %v3338_v2, %v2936_v61  ;;  %v2946_v59 = vmul.f32 %v2942_v5, %v5579_v63  ;;  %v262_v63 = vld [vmem:[#allocation13 + $0x360] sm:$0xff] }
 0x8a6   :  { %v2945_v37 = vmul.f32 %v2937_v62, %v5575_v32  ;;  %v263_v32 = vld [vmem:[#allocation13 + $0x368] sm:$0xff] }
 0x8a8   :  { %4155 = vmatpush3.msra.mxu0 %v2945_v37 }
 0x8a9   :  { %4157 = vmatmul.mubr.msk.f32.vlgmr.msra.gmra.mxu0 %vm587_vm1, %v2947_v42  ;;  %4159 = vmatprep.subr.mxu0 %v5816_v34 }
 0x8aa   :  { %4160 = vmatpush3.msra.mxu0 %v2946_v59  ;;  %4161 = vmatprep.mubr.msk.f32.mxu0 %vm4582_vm0, %v5816_v34 }
 0x8ab   :  { %4164 = vmatprep.subr.mxu0 %v5816_v34 }
 0x8ad   :  { %4162 = vmatmul.mubr.msk.f32.vlgmr.msra.gmra.mxu0 %vm587_vm1, %v2948_v44 }
 0x8ae   :  { %4165 = vmatpush3.msra.mxu0 %v265_v46  ;;  %4196 = vmatprep.mubr.msk.f32.mxu0 %vm4582_vm0, %v5816_v34 }
 0x8af   :  { %4166 = vmatprep.subr.mxu0 %v5816_v34 }
 0x8b0   :  { %4167 = vmatpush3.msra.mxu0 %v264_v47 }
 0x8b1   :  { %4168 = vmatprep.subr.mxu0 %v5816_v34 }
 0x8b2   :  { %4169 = vmatpush3.msra.mxu0 %v263_v32 }
 0x8b3   :  { %4170 = vmatprep.subr.mxu0 %v5816_v34 }
 0x8b4   :  { %4171 = vmatpush3.msra.mxu0 %v262_v63 }
 0x8b5   :  { %4172 = vmatprep.subr.mxu0 %v5816_v34 }
 0x8b6   :  { %4173 = vmatpush3.msra.mxu0 %v261_v41 }
 0x8b7   :  { %4174 = vmatprep.subr.mxu0 %v5816_v34 }
 0x8b8   :  { %4175 = vmatpush3.msra.mxu0 %v260_v56 }
 0x8b9   :  { %4176 = vmatprep.subr.mxu0 %v5816_v34 }
 0x8ba   :  { %4177 = vmatpush3.msra.mxu0 %v259_v43 }
 0x8bb   :  { %4178 = vmatprep.subr.mxu0 %v5816_v34 }
 0x8bc   :  { %4179 = vmatpush3.msra.mxu0 %v258_v24 }
 0x8bd   :  { %4180 = vmatprep.subr.mxu0 %v5816_v34 }
 0x8be   :  { %4181 = vmatpush3.msra.mxu0 %v257_v52 }
 0x8bf   :  { %4182 = vmatprep.subr.mxu0 %v5816_v34 }
 0x8c0   :  { %4183 = vmatpush3.msra.mxu0 %v256_v10 }
 0x8c1   :  { %4184 = vmatprep.subr.mxu0 %v5816_v34 }
 0x8c2   :  { %4185 = vmatpush3.msra.mxu0 %v255_v31 }
 0x8c3   :  { %4186 = vmatprep.subr.mxu0 %v5816_v34 }
 0x8c4   :  { %4187 = vmatpush3.msra.mxu0 %v254_v12 }
 0x8c5   :  { %4188 = vmatprep.subr.mxu0 %v5816_v34 }
 0x8c6   :  { %4189 = vmatpush3.msra.mxu0 %v253_v17 }
 0x8c7   :  { %4190 = vmatprep.subr.mxu0 %v5816_v34 }
 0x8c8   :  { %4191 = vmatpush3.msra.mxu0 %v252_v23 }
 0x8c9   :  { %4192 = vmatprep.subr.mxu0 %v5816_v34 }
 0x8ca   :  { %4193 = vmatpush3.msra.mxu0 %v251_v18 }
 0x8cb   :  { %4194 = vmatprep.subr.mxu0 %v5816_v34 }
 0x8cc   :  { %4195 = vmatpush3.msra.mxu0 %v250_v28 }
 0x8cd   :  { %4197 = vmatmul.mubr.f32.vlgmr.msra.gmra.mxu0 %v5586_v49 }
 0x969   :  { %v3018_v40 = vpop.f32.mrf.mxu0 }
 0x96b   :  { %v4158_v45 = vpop.f32.mrf.mxu0 }
 0x96d   :  { %v3091_v35 = vpop.f32.mrf.mxu0 }
 0x96e   :  { %v3167_v36 = vrot.slane %v3091_v35, 7 }
 0x96f   :  { %v4163_v48 = vpop.f32.mrf.mxu0 }
 0x970   :  { %v3168_v49 = vsel %vm2667_vm2, %v3167_v36, %v3018_v40 }
 0x971   :  { %4232 = vmatmul.mubr.f32.vlgmr.msra.gmra.mxu1 %v3168_v49 }
 0x98d   :  { %v3161_v50 = vpop.f32.mrf.mxu0 }
 0x98f   :  { %v4198_v51 = vpop.f32.mrf.mxu0 }
 0x990   :  { %4524 = shalt.err (!%p4521_p2)
}
 0x991   :  { %3283 = dma.vmem_to_hbm [thread:$0]  %s3278_s7, 256, %s5677_s10, [#allocation4], %s4569_s22, %s4569_s22, %s4570_s23  }
 0x992   :  { %v3341_v34 = vld [vmem:[%s5675_s8 + $0x7] ss:$0 sm:$0xff]  ;;  %s4585_s27 = smov [#allocation17]  }
 0x993   :  { %s3289_s0 = sshll.u32 %s4585_s27, 4  ;;  %s3290_s0 = int_to_ptr.vmem [resolvable:$true] %s3289_s0 }
 0x994   :  { %s4533_s28 = scalar_lea.vmem %s3290_s0, 32  ;;  %p4538_p4 = scmp.lt.s32.totalorder %s3290_s0, %s3290_s0 }
 0x995   :  { %p4534_p3 = scmp.ne.s32.totalorder %s3290_s0, %s4533_s28  ;;  %p4539_p5 = scmp.lt.s32.totalorder %s4533_s28, %s4533_s28 }
 0x997   :  { %p4540_p6 = por %p4539_p5, %p4538_p4 }
 0x999   :  { %p4541_p7 = pnand %p4540_p6, %p4534_p3 }
 0xa31   :  { %v3236_v6 = vpop.f32.mrf.mxu1 }
 0xa32   :  { %v3237_v53 = vadd.f32 %v3236_v6, %v3161_v50 }
 0xa33   :  { %v4233_v54 = vpop.f32.mrf.mxu1 }
 0xa34   :  { %v3244_v57 = vadd.f32 %v3341_v34, %v3237_v53 }
 0xa36   :  { %v3252_v60 = vrot.slane %v3244_v57, %v5594_v11 }
 0xa38   :  { %3342 = vst.sshfl [vmem:[#allocation17] sm:$0x1 pattern:$0x73625140] %v3252_v60  ;;  %v3253_v19 = vcombine.high %v3252_v60, %v3252_v60 }
 0xa3a   :  { %3343 = vst.sshfl [vmem:[#allocation17 + $0x1] sm:$0x1 pattern:$0x73625140] %v3253_v19 }
 0xa3b   :  { %4544 = shalt.err (!%p4541_p7)
}
 0xa3c   :  { %3295 = dma.vmem_to_hbm [thread:$0]  %s3290_s0, 32, %s5678_s11, [#allocation18], %s4573_s14, %s4573_s14, %s4574_s15  }
 0xa3d   :  { %4563 = dma.done.wait [#allocation4], 256  }
 0xa3e   :  { %4564 = vsyncadd [#allocation4], 4294967040 }
 0xa3f   :  { %4565 = dma.done.wait [#allocation18], 32  }
 0xa40   :  { %4566 = vsyncadd [#allocation18], 4294967264 }
 0xa41   :  { %3302 = vsyncpa [#allocation3], 1 }
 0xa42   :  { %3303 = vsyncpa [#allocation6], 1 }
 0xa43   :  { %3304 = vsyncpa [#allocation9], 1 }
 0xa44   :  { %3305 = vsyncpa [#allocation12], 1 }
 0xa45   :  { %3306 = vsyncpa [#allocation15], 1 }
 0xa46   :  { %3307 = vsyncpa [#allocation4], 1 }
 0xa47   :  { %3308 = vsyncpa [#allocation18], 1 }

</bundles_post_ra>
